<compile_context>
chip_gen: v6e
topology: v6e:2x2x1
jax: 0.10.0
libtpu: 0.0.40
codegen_flags: <defaults>
</compile_context>

<pallas_src>
import math

import jax
import jax.numpy as jnp
from jax.experimental import pallas as pl
from jax.experimental.pallas import tpu as pltpu

# Demo sizes (PyTorch module uses C_LEN=1024, hidden=256, vocab=output_size).
# HIDDEN / OUTPUT chosen = 128 so gate slices and output stores are lane-dense.
C_LEN = 128     # encoder hidden length fed to Cin
HIDDEN = 128    # hidden_size
OUTPUT = 128    # output_size == vocab size == embedding dim
BATCH = 16      # independent sequences decoded together (bf16 packs 16 rows / vreg)
SEQ_LEN = 8     # decoded time steps fused into one kernel

PARAM_ORDER = ("cin_w", "cin_b", "u_w", "u_b", "w_w", "w_b",
               "c_w", "c_b", "v_w", "v_b")


def _vmem_spec():
    return pl.BlockSpec(memory_space=pltpu.MemorySpace.VMEM)


# ----------------------------------------------------------------------------- kernel
def _decode_kernel(h_enc_ref, x_ref,
                   cin_w_ref, cin_b_ref,
                   u_w_ref, u_b_ref,
                   w_w_ref, w_b_ref,
                   c_w_ref, c_b_ref,
                   v_w_ref, v_b_ref,
                   out_ref, h_final_ref,
                   h_sc, gx_sc, hall_sc):
    """Fused DecoderRNN: context transform + T GRU-with-context steps + LogSoftmax."""
    H = HIDDEN
    T, B, E = x_ref.shape
    V = out_ref.shape[-1]

    # ---- one-time: C = tanh(Cin(encoder_hidden)); first hidden = C (first-call path).
    C = jnp.tanh(jnp.dot(h_enc_ref[...], cin_w_ref[...],
                         preferred_element_type=jnp.float32) + cin_b_ref[...])
    h_sc[...] = C

    # ---- one-time: constant-C gate contributions (Cz|Cr|Ch)(C) with their biases folded in.
    #      Kept as a value (only (B, 3H)) -- no scratch round-trip.
    cc = jnp.dot(C.astype(jnp.bfloat16), c_w_ref[...],
                 preferred_element_type=jnp.float32) + c_b_ref[...]

    # ---- one-time: x-dependent gate projections [Uz|Ur|Uh](x)+b for ALL steps,
    #      one wide (T*B, E) x (E, 3H) MXU matmul, stored to VMEM and read back per step.
    gx_all = jnp.dot(x_ref[...].reshape(T * B, E), u_w_ref[...],
                     preferred_element_type=jnp.float32) + u_b_ref[...]
    gx_sc[...] = gx_all.reshape(T, B, 3 * H)

    w_b = w_b_ref[...]          # tiny loop-invariant bias: keep hoisted

    # ---- serial recurrence: only the h-dependent matmul + gate elementwise ops remain.
    # TODO(synk): at production T, replace unroll=True + whole-array specs with grid=(T,),
    #             streamed x/out BlockSpecs ("arbitrary" axis) and a persistent h scratch
    #             initialized under pl.when(program_id == 0).
    # TODO(synk): on v6e/v7x, hold the loop-invariant W_all in MXU weight registers via
    #             pltpu.matmul_push_rhs once + matmul_acc_lhs/matmul_pop per step.
    @pl.loop(0, T, unroll=True)
    def _(t):
        h = h_sc[...]                                    # (B, H) previous hidden (f32)
        gx = gx_sc[t]                                    # (B, 3H) precomputed x-projection
        gh = jnp.dot(h.astype(jnp.bfloat16), w_w_ref[...],
                     preferred_element_type=jnp.float32) + w_b   # (B, 3H) [Wz|Wr|Wh](h)+b

        z_t1 = jax.nn.sigmoid(gx[:, 0:H] + gh[:, 0:H] + cc[:, 0:H])
        r_t1 = jax.nn.sigmoid(gx[:, H:2 * H] + gh[:, H:2 * H] + cc[:, H:2 * H])
        c_t1 = jnp.tanh(gx[:, 2 * H:3 * H] + r_t1 * (gh[:, 2 * H:3 * H] + cc[:, 2 * H:3 * H]))
        h_new = (1.0 - z_t1) * c_t1 + z_t1 * h

        hall_sc[t] = h_new
        h_sc[...] = h_new

    h_final_ref[...] = h_sc[...]

    # ---- epilogue (off the serial chain): V projection + LogSoftmax for all steps at once.
    # TODO(synk): at production vocab (>=10k) tile this over the vocab axis with a grid axis
    #             marked "parallel" (uses both TCs on v7x) and budget VMEM for 64 MiB per TC.
    h_flat = hall_sc[...].reshape(T * B, H).astype(jnp.bfloat16)
    logits = jnp.dot(h_flat, v_w_ref[...],
                     preferred_element_type=jnp.float32) + v_b_ref[...]   # (T*B, V)
    m = jnp.max(logits, axis=-1, keepdims=True)
    lse = jnp.log(jnp.sum(jnp.exp(logits - m), axis=-1, keepdims=True)) + m
    out_ref[...] = (logits - lse).reshape(T, B, V)


# ----------------------------------------------------------------------------- wrapper
@jax.jit
def decode_sequence(enc_hidden, x_seq,
                    cin_w, cin_b, u_w, u_b, w_w, w_b, c_w, c_b, v_w, v_b):
    """Run SEQ_LEN decoder steps (teacher-forced tokens) in a single pallas_call.

    enc_hidden: (B, C_LEN) bf16 — encoder final hidden (the original (1,1,C_LEN) per sequence).
    x_seq:      (T, B, OUTPUT) bf16 — embedded input tokens for each step.
    Returns (log_probs (T, B, OUTPUT) f32, final_hidden (B, HIDDEN) f32).
    """
    T, B, _ = x_seq.shape
    return pl.pallas_call(
        _decode_kernel,
        out_shape=(jax.ShapeDtypeStruct((T, B, OUTPUT), jnp.float32),
                   jax.ShapeDtypeStruct((B, HIDDEN), jnp.float32)),
        in_specs=[_vmem_spec()] * 12,
        out_specs=(_vmem_spec(), _vmem_spec()),
        scratch_shapes=[pltpu.VMEM((B, HIDDEN), jnp.float32),          # carried hidden state
                        pltpu.VMEM((T, B, 3 * HIDDEN), jnp.float32),   # precomputed x-gate terms
                        pltpu.VMEM((T, B, HIDDEN), jnp.float32)],      # all per-step hiddens
        compiler_params=pltpu.CompilerParams(vmem_limit_bytes=32 * 1024 * 1024),
    )(enc_hidden, x_seq, cin_w, cin_b, u_w, u_b, w_w, w_b, c_w, c_b, v_w, v_b)


# ----------------------------------------------------------------------------- params
def _xavier_normal_t(key, in_features, out_features):
    """torch.nn.init.xavier_normal_ on a (out, in) weight, returned transposed to (in, out)."""
    std = math.sqrt(2.0 / (in_features + out_features))
    w = std * jax.random.normal(key, (out_features, in_features), jnp.float32)
    return w.T


def _linear_bias(key, in_features, out_features):
    """Default torch.nn.Linear bias init: U(-1/sqrt(fan_in), 1/sqrt(fan_in)), shaped (1, out)."""
    bound = 1.0 / math.sqrt(in_features)
    return jax.random.uniform(key, (1, out_features), jnp.float32, -bound, bound)


def init_params(key):
    names = [("uz", OUTPUT, HIDDEN), ("ur", OUTPUT, HIDDEN), ("uh", OUTPUT, HIDDEN),
             ("wz", HIDDEN, HIDDEN), ("wr", HIDDEN, HIDDEN), ("wh", HIDDEN, HIDDEN),
             ("cz", HIDDEN, HIDDEN), ("cr", HIDDEN, HIDDEN), ("ch", HIDDEN, HIDDEN),
             ("v", HIDDEN, OUTPUT), ("cin", C_LEN, HIDDEN)]
    keys = jax.random.split(key, 2 * len(names) + 1)
    raw = {}
    for i, (name, fan_in, fan_out) in enumerate(names):
        raw[name + "_w"] = _xavier_normal_t(keys[2 * i], fan_in, fan_out)
        raw[name + "_b"] = _linear_bias(keys[2 * i + 1], fan_in, fan_out)

    cat = lambda a, b, c: jnp.concatenate([raw[a], raw[b], raw[c]], axis=1)
    params = {
        "cin_w": raw["cin_w"].astype(jnp.bfloat16), "cin_b": raw["cin_b"],
        "u_w": cat("uz_w", "ur_w", "uh_w").astype(jnp.bfloat16),
        "u_b": cat("uz_b", "ur_b", "uh_b"),
        "w_w": cat("wz_w", "wr_w", "wh_w").astype(jnp.bfloat16),
        "w_b": cat("wz_b", "wr_b", "wh_b"),
        "c_w": cat("cz_w", "cr_w", "ch_w").astype(jnp.bfloat16),
        "c_b": cat("cz_b", "cr_b", "ch_b"),
        "v_w": raw["v_w"].astype(jnp.bfloat16), "v_b": raw["v_b"],
        # nn.Embedding default init: N(0, 1)
        "embedding": jax.random.normal(keys[-1], (OUTPUT, OUTPUT), jnp.float32),
    }
    return params


# ----------------------------------------------------------------------------- reference
def reference_decode(enc_hidden, x_seq, params):
    """Pure-JAX replica of the PyTorch forward() iterated over x_seq (same bf16 matmuls)."""
    H = HIDDEN
    mm = lambda a, w: jnp.dot(a.astype(jnp.bfloat16), w, preferred_element_type=jnp.float32)
    C = jnp.tanh(mm(enc_hidden, params["cin_w"]) + params["cin_b"])
    cc = mm(C, params["c_w"]) + params["c_b"]
    h = C
    outs = []
    for t in range(x_seq.shape[0]):
        gx = mm(x_seq[t], params["u_w"]) + params["u_b"]
        gh = mm(h, params["w_w"]) + params["w_b"]
        z = jax.nn.sigmoid(gx[:, :H] + gh[:, :H] + cc[:, :H])
        r = jax.nn.sigmoid(gx[:, H:2 * H] + gh[:, H:2 * H] + cc[:, H:2 * H])
        c = jnp.tanh(gx[:, 2 * H:] + r * (gh[:, 2 * H:] + cc[:, 2 * H:]))
        h = (1.0 - z) * c + z * h
        logits = mm(h, params["v_w"]) + params["v_b"]
        outs.append(jax.nn.log_softmax(logits, axis=-1))
    return jnp.stack(outs), h


# ----------------------------------------------------------------------------- main
if __name__ == "__main__":
    key = jax.random.PRNGKey(0)
    k_params, k_enc, k_tok = jax.random.split(key, 3)

    params = init_params(k_params)

    # Encoder-final hidden states (one per sequence in the batch) and the token stream.
    # Activations are handed to the kernel in bf16 (halves DMA bytes, no in-loop casts).
    enc_hidden = jax.random.normal(k_enc, (BATCH, C_LEN), jnp.float32).astype(jnp.bfloat16)
    tokens = jax.random.randint(k_tok, (SEQ_LEN, BATCH), 0, OUTPUT)
    x_seq = params["embedding"][tokens].astype(jnp.bfloat16)   # (T, B, OUTPUT) embedding lookup

    out_seq, h_final = decode_sequence(enc_hidden, x_seq,
                                       *[params[k] for k in PARAM_ORDER])
    jax.block_until_ready((out_seq, h_final))

    # Correctness vs. pure-JAX reference of the original forward() semantics.
    ref_out, ref_h = reference_decode(enc_hidden, x_seq, params)
    assert out_seq.shape == (SEQ_LEN, BATCH, OUTPUT)
    assert h_final.shape == (BATCH, HIDDEN)
    assert bool(jnp.allclose(out_seq, ref_out, atol=2e-2, rtol=2e-2))
    assert bool(jnp.allclose(h_final, ref_h, atol=2e-2, rtol=2e-2))
    # LogSoftmax sanity: exp(row) sums to 1 for every step / batch element.
    assert float(jnp.max(jnp.abs(jnp.sum(jnp.exp(out_seq), axis=-1) - 1.0))) < 1e-3

    print("KERNEL_OK")
</pallas_src>

<mosaic_0001>
module attributes {stable_mosaic.version = 11 : i64} {
  func.func @_decode_kernel(%arg0: memref<16x128xbf16, #tpu.memory_space<vmem>>, %arg1: memref<8x16x128xbf16, #tpu.memory_space<vmem>>, %arg2: memref<128x128xbf16, #tpu.memory_space<vmem>>, %arg3: memref<1x128xf32, #tpu.memory_space<vmem>>, %arg4: memref<128x384xbf16, #tpu.memory_space<vmem>>, %arg5: memref<1x384xf32, #tpu.memory_space<vmem>>, %arg6: memref<128x384xbf16, #tpu.memory_space<vmem>>, %arg7: memref<1x384xf32, #tpu.memory_space<vmem>>, %arg8: memref<128x384xbf16, #tpu.memory_space<vmem>>, %arg9: memref<1x384xf32, #tpu.memory_space<vmem>>, %arg10: memref<128x128xbf16, #tpu.memory_space<vmem>>, %arg11: memref<1x128xf32, #tpu.memory_space<vmem>>, %arg12: memref<8x16x128xf32, #tpu.memory_space<vmem>>, %arg13: memref<16x128xf32, #tpu.memory_space<vmem>>, %arg14: memref<16x128xf32, #tpu.memory_space<vmem>>, %arg15: memref<8x16x384xf32, #tpu.memory_space<vmem>>, %arg16: memref<8x16x128xf32, #tpu.memory_space<vmem>>) attributes {dimension_semantics = [], scalar_prefetch = 0 : i64, scratch_operands = 3 : i64, tpu.core_type = #tpu.core_type<tc>} {
    %c0 = arith.constant 0 : index
    %c0_0 = arith.constant 0 : index
    %0 = vector.load %arg0[%c0, %c0_0] : memref<16x128xbf16, #tpu.memory_space<vmem>>, vector<16x128xbf16>
    %c0_1 = arith.constant 0 : index
    %c0_2 = arith.constant 0 : index
    %1 = vector.load %arg2[%c0_1, %c0_2] : memref<128x128xbf16, #tpu.memory_space<vmem>>, vector<128x128xbf16>
    %cst = arith.constant dense<0.000000e+00> : vector<16x128xf32>
    %2 = tpu.matmul %0, %1, %cst {dimension_numbers = #tpu.dot_dimension_numbers<[1], [0], [0], [1], [0, 0, 1, 1], [], []>} : vector<16x128xbf16>, vector<128x128xbf16>, vector<16x128xf32> -> vector<16x128xf32>
    %c0_3 = arith.constant 0 : index
    %c0_4 = arith.constant 0 : index
    %3 = vector.load %arg3[%c0_3, %c0_4] : memref<1x128xf32, #tpu.memory_space<vmem>>, vector<1x128xf32>
    %4 = vector.broadcast %3 : vector<1x128xf32> to vector<16x128xf32>
    %5 = arith.addf %2, %4 : vector<16x128xf32>
    %6 = math.tanh %5 : vector<16x128xf32>
    %c0_5 = arith.constant 0 : index
    %c0_6 = arith.constant 0 : index
    %7 = vector.load %arg14[%c0_5, %c0_6] : memref<16x128xf32, #tpu.memory_space<vmem>>, vector<16x128xf32>
    tpu.vector_store %arg14[%c0_5, %c0_6], %6 {strides = array<i32>} : memref<16x128xf32, #tpu.memory_space<vmem>>, vector<16x128xf32>,
    %8 = arith.truncf %6 : vector<16x128xf32> to vector<16x128xbf16>
    %c0_7 = arith.constant 0 : index
    %c0_8 = arith.constant 0 : index
    %9 = vector.load %arg8[%c0_7, %c0_8] : memref<128x384xbf16, #tpu.memory_space<vmem>>, vector<128x384xbf16>
    %cst_9 = arith.constant dense<0.000000e+00> : vector<16x384xf32>
    %10 = tpu.matmul %8, %9, %cst_9 {dimension_numbers = #tpu.dot_dimension_numbers<[1], [0], [0], [1], [0, 0, 1, 1], [], []>} : vector<16x128xbf16>, vector<128x384xbf16>, vector<16x384xf32> -> vector<16x384xf32>
    %c0_10 = arith.constant 0 : index
    %c0_11 = arith.constant 0 : index
    %11 = vector.load %arg9[%c0_10, %c0_11] : memref<1x384xf32, #tpu.memory_space<vmem>>, vector<1x384xf32>
    %12 = vector.broadcast %11 : vector<1x384xf32> to vector<16x384xf32>
    %13 = arith.addf %10, %12 : vector<16x384xf32>
    %c0_12 = arith.constant 0 : index
    %c0_13 = arith.constant 0 : index
    %c0_14 = arith.constant 0 : index
    %14 = vector.load %arg1[%c0_12, %c0_13, %c0_14] : memref<8x16x128xbf16, #tpu.memory_space<vmem>>, vector<8x16x128xbf16>
    %15 = vector.shape_cast %14 : vector<8x16x128xbf16> to vector<128x128xbf16>
    %c0_15 = arith.constant 0 : index
    %c0_16 = arith.constant 0 : index
    %16 = vector.load %arg4[%c0_15, %c0_16] : memref<128x384xbf16, #tpu.memory_space<vmem>>, vector<128x384xbf16>
    %cst_17 = arith.constant dense<0.000000e+00> : vector<128x384xf32>
    %17 = tpu.matmul %15, %16, %cst_17 {dimension_numbers = #tpu.dot_dimension_numbers<[1], [0], [0], [1], [0, 0, 1, 1], [], []>} : vector<128x128xbf16>, vector<128x384xbf16>, vector<128x384xf32> -> vector<128x384xf32>
    %c0_18 = arith.constant 0 : index
    %c0_19 = arith.constant 0 : index
    %18 = vector.load %arg5[%c0_18, %c0_19] : memref<1x384xf32, #tpu.memory_space<vmem>>, vector<1x384xf32>
    %19 = vector.broadcast %18 : vector<1x384xf32> to vector<128x384xf32>
    %20 = arith.addf %17, %19 : vector<128x384xf32>
    %21 = vector.shape_cast %20 : vector<128x384xf32> to vector<8x16x384xf32>
    %c0_20 = arith.constant 0 : index
    %c0_21 = arith.constant 0 : index
    %c0_22 = arith.constant 0 : index
    %22 = vector.load %arg15[%c0_20, %c0_21, %c0_22] : memref<8x16x384xf32, #tpu.memory_space<vmem>>, vector<8x16x384xf32>
    tpu.vector_store %arg15[%c0_20, %c0_21, %c0_22], %21 {strides = array<i32>} : memref<8x16x384xf32, #tpu.memory_space<vmem>>, vector<8x16x384xf32>,
    %c0_23 = arith.constant 0 : index
    %c0_24 = arith.constant 0 : index
    %23 = vector.load %arg7[%c0_23, %c0_24] : memref<1x384xf32, #tpu.memory_space<vmem>>, vector<1x384xf32>
    %c0_i32 = arith.constant 0 : i32
    %c1_i32 = arith.constant 1 : i32
    %24 = arith.muli %c0_i32, %c1_i32 : i32
    %c0_i32_25 = arith.constant 0 : i32
    %25 = arith.addi %c0_i32_25, %24 : i32
    %c0_26 = arith.constant 0 : index
    %c0_27 = arith.constant 0 : index
    %26 = vector.load %arg14[%c0_26, %c0_27] : memref<16x128xf32, #tpu.memory_space<vmem>>, vector<16x128xf32>
    %27 = arith.index_cast %25 : i32 to index
    %c0_28 = arith.constant 0 : index
    %c0_29 = arith.constant 0 : index
    %28 = vector.load %arg15[%27, %c0_28, %c0_29] : memref<8x16x384xf32, #tpu.memory_space<vmem>>, vector<1x16x384xf32>
    %29 = vector.shape_cast %28 : vector<1x16x384xf32> to vector<16x384xf32>
    %30 = arith.truncf %26 : vector<16x128xf32> to vector<16x128xbf16>
    %c0_30 = arith.constant 0 : index
    %c0_31 = arith.constant 0 : index
    %31 = vector.load %arg6[%c0_30, %c0_31] : memref<128x384xbf16, #tpu.memory_space<vmem>>, vector<128x384xbf16>
    %cst_32 = arith.constant dense<0.000000e+00> : vector<16x384xf32>
    %32 = tpu.matmul %30, %31, %cst_32 {dimension_numbers = #tpu.dot_dimension_numbers<[1], [0], [0], [1], [0, 0, 1, 1], [], []>} : vector<16x128xbf16>, vector<128x384xbf16>, vector<16x384xf32> -> vector<16x384xf32>
    %33 = vector.broadcast %23 : vector<1x384xf32> to vector<16x384xf32>
    %34 = arith.addf %32, %33 : vector<16x384xf32>
    %35 = vector.extract_strided_slice %29 {offsets = [0, 0], sizes = [16, 128], strides = [1, 1]} : vector<16x384xf32> to vector<16x128xf32>
    %36 = vector.extract_strided_slice %34 {offsets = [0, 0], sizes = [16, 128], strides = [1, 1]} : vector<16x384xf32> to vector<16x128xf32>
    %37 = arith.addf %35, %36 : vector<16x128xf32>
    %38 = vector.extract_strided_slice %13 {offsets = [0, 0], sizes = [16, 128], strides = [1, 1]} : vector<16x384xf32> to vector<16x128xf32>
    %39 = arith.addf %37, %38 : vector<16x128xf32>
    %40 = arith.negf %39 : vector<16x128xf32>
    %41 = math.exp %40 : vector<16x128xf32>
    %cst_33 = arith.constant 1.000000e+00 : f32
    %42 = vector.broadcast %cst_33 : f32 to vector<16x128xf32>
    %43 = arith.addf %42, %41 : vector<16x128xf32>
    %44 = arith.divf %42, %43 : vector<16x128xf32>
    %45 = vector.extract_strided_slice %29 {offsets = [0, 128], sizes = [16, 128], strides = [1, 1]} : vector<16x384xf32> to vector<16x128xf32>
    %46 = vector.extract_strided_slice %34 {offsets = [0, 128], sizes = [16, 128], strides = [1, 1]} : vector<16x384xf32> to vector<16x128xf32>
    %47 = arith.addf %45, %46 : vector<16x128xf32>
    %48 = vector.extract_strided_slice %13 {offsets = [0, 128], sizes = [16, 128], strides = [1, 1]} : vector<16x384xf32> to vector<16x128xf32>
    %49 = arith.addf %47, %48 : vector<16x128xf32>
    %50 = arith.negf %49 : vector<16x128xf32>
    %51 = math.exp %50 : vector<16x128xf32>
    %cst_34 = arith.constant 1.000000e+00 : f32
    %52 = vector.broadcast %cst_34 : f32 to vector<16x128xf32>
    %53 = arith.addf %52, %51 : vector<16x128xf32>
    %54 = arith.divf %52, %53 : vector<16x128xf32>
    %55 = vector.extract_strided_slice %29 {offsets = [0, 256], sizes = [16, 128], strides = [1, 1]} : vector<16x384xf32> to vector<16x128xf32>
    %56 = vector.extract_strided_slice %34 {offsets = [0, 256], sizes = [16, 128], strides = [1, 1]} : vector<16x384xf32> to vector<16x128xf32>
    %57 = vector.extract_strided_slice %13 {offsets = [0, 256], sizes = [16, 128], strides = [1, 1]} : vector<16x384xf32> to vector<16x128xf32>
    %58 = arith.addf %56, %57 : vector<16x128xf32>
    %59 = arith.mulf %54, %58 : vector<16x128xf32>
    %60 = arith.addf %55, %59 : vector<16x128xf32>
    %61 = math.tanh %60 : vector<16x128xf32>
    %cst_35 = arith.constant 1.000000e+00 : f32
    %62 = vector.broadcast %cst_35 : f32 to vector<16x128xf32>
    %63 = arith.subf %62, %44 : vector<16x128xf32>
    %64 = arith.mulf %63, %61 : vector<16x128xf32>
    %65 = arith.mulf %44, %26 : vector<16x128xf32>
    %66 = arith.addf %64, %65 : vector<16x128xf32>
    %67 = arith.index_cast %25 : i32 to index
    %c0_36 = arith.constant 0 : index
    %c0_37 = arith.constant 0 : index
    %68 = vector.load %arg16[%67, %c0_36, %c0_37] : memref<8x16x128xf32, #tpu.memory_space<vmem>>, vector<1x16x128xf32>
    %69 = vector.shape_cast %68 : vector<1x16x128xf32> to vector<16x128xf32>
    %70 = vector.shape_cast %66 : vector<16x128xf32> to vector<1x16x128xf32>
    tpu.vector_store %arg16[%67, %c0_36, %c0_37], %70 {strides = array<i32>} : memref<8x16x128xf32, #tpu.memory_space<vmem>>, vector<1x16x128xf32>,
    %c0_38 = arith.constant 0 : index
    %c0_39 = arith.constant 0 : index
    %71 = vector.load %arg14[%c0_38, %c0_39] : memref<16x128xf32, #tpu.memory_space<vmem>>, vector<16x128xf32>
    tpu.vector_store %arg14[%c0_38, %c0_39], %66 {strides = array<i32>} : memref<16x128xf32, #tpu.memory_space<vmem>>, vector<16x128xf32>,
    %c1_i32_40 = arith.constant 1 : i32
    %c1_i32_41 = arith.constant 1 : i32
    %72 = arith.muli %c1_i32_40, %c1_i32_41 : i32
    %c0_i32_42 = arith.constant 0 : i32
    %73 = arith.addi %c0_i32_42, %72 : i32
    %c0_43 = arith.constant 0 : index
    %c0_44 = arith.constant 0 : index
    %74 = vector.load %arg14[%c0_43, %c0_44] : memref<16x128xf32, #tpu.memory_space<vmem>>, vector<16x128xf32>
    %75 = arith.index_cast %73 : i32 to index
    %c0_45 = arith.constant 0 : index
    %c0_46 = arith.constant 0 : index
    %76 = vector.load %arg15[%75, %c0_45, %c0_46] : memref<8x16x384xf32, #tpu.memory_space<vmem>>, vector<1x16x384xf32>
    %77 = vector.shape_cast %76 : vector<1x16x384xf32> to vector<16x384xf32>
    %78 = arith.truncf %74 : vector<16x128xf32> to vector<16x128xbf16>
    %c0_47 = arith.constant 0 : index
    %c0_48 = arith.constant 0 : index
    %79 = vector.load %arg6[%c0_47, %c0_48] : memref<128x384xbf16, #tpu.memory_space<vmem>>, vector<128x384xbf16>
    %cst_49 = arith.constant dense<0.000000e+00> : vector<16x384xf32>
    %80 = tpu.matmul %78, %79, %cst_49 {dimension_numbers = #tpu.dot_dimension_numbers<[1], [0], [0], [1], [0, 0, 1, 1], [], []>} : vector<16x128xbf16>, vector<128x384xbf16>, vector<16x384xf32> -> vector<16x384xf32>
    %81 = vector.broadcast %23 : vector<1x384xf32> to vector<16x384xf32>
    %82 = arith.addf %80, %81 : vector<16x384xf32>
    %83 = vector.extract_strided_slice %77 {offsets = [0, 0], sizes = [16, 128], strides = [1, 1]} : vector<16x384xf32> to vector<16x128xf32>
    %84 = vector.extract_strided_slice %82 {offsets = [0, 0], sizes = [16, 128], strides = [1, 1]} : vector<16x384xf32> to vector<16x128xf32>
    %85 = arith.addf %83, %84 : vector<16x128xf32>
    %86 = vector.extract_strided_slice %13 {offsets = [0, 0], sizes = [16, 128], strides = [1, 1]} : vector<16x384xf32> to vector<16x128xf32>
    %87 = arith.addf %85, %86 : vector<16x128xf32>
    %88 = arith.negf %87 : vector<16x128xf32>
    %89 = math.exp %88 : vector<16x128xf32>
    %cst_50 = arith.constant 1.000000e+00 : f32
    %90 = vector.broadcast %cst_50 : f32 to vector<16x128xf32>
    %91 = arith.addf %90, %89 : vector<16x128xf32>
    %92 = arith.divf %90, %91 : vector<16x128xf32>
    %93 = vector.extract_strided_slice %77 {offsets = [0, 128], sizes = [16, 128], strides = [1, 1]} : vector<16x384xf32> to vector<16x128xf32>
    %94 = vector.extract_strided_slice %82 {offsets = [0, 128], sizes = [16, 128], strides = [1, 1]} : vector<16x384xf32> to vector<16x128xf32>
    %95 = arith.addf %93, %94 : vector<16x128xf32>
    %96 = vector.extract_strided_slice %13 {offsets = [0, 128], sizes = [16, 128], strides = [1, 1]} : vector<16x384xf32> to vector<16x128xf32>
    %97 = arith.addf %95, %96 : vector<16x128xf32>
    %98 = arith.negf %97 : vector<16x128xf32>
    %99 = math.exp %98 : vector<16x128xf32>
    %cst_51 = arith.constant 1.000000e+00 : f32
    %100 = vector.broadcast %cst_51 : f32 to vector<16x128xf32>
    %101 = arith.addf %100, %99 : vector<16x128xf32>
    %102 = arith.divf %100, %101 : vector<16x128xf32>
    %103 = vector.extract_strided_slice %77 {offsets = [0, 256], sizes = [16, 128], strides = [1, 1]} : vector<16x384xf32> to vector<16x128xf32>
    %104 = vector.extract_strided_slice %82 {offsets = [0, 256], sizes = [16, 128], strides = [1, 1]} : vector<16x384xf32> to vector<16x128xf32>
    %105 = vector.extract_strided_slice %13 {offsets = [0, 256], sizes = [16, 128], strides = [1, 1]} : vector<16x384xf32> to vector<16x128xf32>
    %106 = arith.addf %104, %105 : vector<16x128xf32>
    %107 = arith.mulf %102, %106 : vector<16x128xf32>
    %108 = arith.addf %103, %107 : vector<16x128xf32>
    %109 = math.tanh %108 : vector<16x128xf32>
    %cst_52 = arith.constant 1.000000e+00 : f32
    %110 = vector.broadcast %cst_52 : f32 to vector<16x128xf32>
    %111 = arith.subf %110, %92 : vector<16x128xf32>
    %112 = arith.mulf %111, %109 : vector<16x128xf32>
    %113 = arith.mulf %92, %74 : vector<16x128xf32>
    %114 = arith.addf %112, %113 : vector<16x128xf32>
    %115 = arith.index_cast %73 : i32 to index
    %c0_53 = arith.constant 0 : index
    %c0_54 = arith.constant 0 : index
    %116 = vector.load %arg16[%115, %c0_53, %c0_54] : memref<8x16x128xf32, #tpu.memory_space<vmem>>, vector<1x16x128xf32>
    %117 = vector.shape_cast %116 : vector<1x16x128xf32> to vector<16x128xf32>
    %118 = vector.shape_cast %114 : vector<16x128xf32> to vector<1x16x128xf32>
    tpu.vector_store %arg16[%115, %c0_53, %c0_54], %118 {strides = array<i32>} : memref<8x16x128xf32, #tpu.memory_space<vmem>>, vector<1x16x128xf32>,
    %c0_55 = arith.constant 0 : index
    %c0_56 = arith.constant 0 : index
    %119 = vector.load %arg14[%c0_55, %c0_56] : memref<16x128xf32, #tpu.memory_space<vmem>>, vector<16x128xf32>
    tpu.vector_store %arg14[%c0_55, %c0_56], %114 {strides = array<i32>} : memref<16x128xf32, #tpu.memory_space<vmem>>, vector<16x128xf32>,
    %c2_i32 = arith.constant 2 : i32
    %c1_i32_57 = arith.constant 1 : i32
    %120 = arith.muli %c2_i32, %c1_i32_57 : i32
    %c0_i32_58 = arith.constant 0 : i32
    %121 = arith.addi %c0_i32_58, %120 : i32
    %c0_59 = arith.constant 0 : index
    %c0_60 = arith.constant 0 : index
    %122 = vector.load %arg14[%c0_59, %c0_60] : memref<16x128xf32, #tpu.memory_space<vmem>>, vector<16x128xf32>
    %123 = arith.index_cast %121 : i32 to index
    %c0_61 = arith.constant 0 : index
    %c0_62 = arith.constant 0 : index
    %124 = vector.load %arg15[%123, %c0_61, %c0_62] : memref<8x16x384xf32, #tpu.memory_space<vmem>>, vector<1x16x384xf32>
    %125 = vector.shape_cast %124 : vector<1x16x384xf32> to vector<16x384xf32>
    %126 = arith.truncf %122 : vector<16x128xf32> to vector<16x128xbf16>
    %c0_63 = arith.constant 0 : index
    %c0_64 = arith.constant 0 : index
    %127 = vector.load %arg6[%c0_63, %c0_64] : memref<128x384xbf16, #tpu.memory_space<vmem>>, vector<128x384xbf16>
    %cst_65 = arith.constant dense<0.000000e+00> : vector<16x384xf32>
    %128 = tpu.matmul %126, %127, %cst_65 {dimension_numbers = #tpu.dot_dimension_numbers<[1], [0], [0], [1], [0, 0, 1, 1], [], []>} : vector<16x128xbf16>, vector<128x384xbf16>, vector<16x384xf32> -> vector<16x384xf32>
    %129 = vector.broadcast %23 : vector<1x384xf32> to vector<16x384xf32>
    %130 = arith.addf %128, %129 : vector<16x384xf32>
    %131 = vector.extract_strided_slice %125 {offsets = [0, 0], sizes = [16, 128], strides = [1, 1]} : vector<16x384xf32> to vector<16x128xf32>
    %132 = vector.extract_strided_slice %130 {offsets = [0, 0], sizes = [16, 128], strides = [1, 1]} : vector<16x384xf32> to vector<16x128xf32>
    %133 = arith.addf %131, %132 : vector<16x128xf32>
    %134 = vector.extract_strided_slice %13 {offsets = [0, 0], sizes = [16, 128], strides = [1, 1]} : vector<16x384xf32> to vector<16x128xf32>
    %135 = arith.addf %133, %134 : vector<16x128xf32>
    %136 = arith.negf %135 : vector<16x128xf32>
    %137 = math.exp %136 : vector<16x128xf32>
    %cst_66 = arith.constant 1.000000e+00 : f32
    %138 = vector.broadcast %cst_66 : f32 to vector<16x128xf32>
    %139 = arith.addf %138, %137 : vector<16x128xf32>
    %140 = arith.divf %138, %139 : vector<16x128xf32>
    %141 = vector.extract_strided_slice %125 {offsets = [0, 128], sizes = [16, 128], strides = [1, 1]} : vector<16x384xf32> to vector<16x128xf32>
    %142 = vector.extract_strided_slice %130 {offsets = [0, 128], sizes = [16, 128], strides = [1, 1]} : vector<16x384xf32> to vector<16x128xf32>
    %143 = arith.addf %141, %142 : vector<16x128xf32>
    %144 = vector.extract_strided_slice %13 {offsets = [0, 128], sizes = [16, 128], strides = [1, 1]} : vector<16x384xf32> to vector<16x128xf32>
    %145 = arith.addf %143, %144 : vector<16x128xf32>
    %146 = arith.negf %145 : vector<16x128xf32>
    %147 = math.exp %146 : vector<16x128xf32>
    %cst_67 = arith.constant 1.000000e+00 : f32
    %148 = vector.broadcast %cst_67 : f32 to vector<16x128xf32>
    %149 = arith.addf %148, %147 : vector<16x128xf32>
    %150 = arith.divf %148, %149 : vector<16x128xf32>
    %151 = vector.extract_strided_slice %125 {offsets = [0, 256], sizes = [16, 128], strides = [1, 1]} : vector<16x384xf32> to vector<16x128xf32>
    %152 = vector.extract_strided_slice %130 {offsets = [0, 256], sizes = [16, 128], strides = [1, 1]} : vector<16x384xf32> to vector<16x128xf32>
    %153 = vector.extract_strided_slice %13 {offsets = [0, 256], sizes = [16, 128], strides = [1, 1]} : vector<16x384xf32> to vector<16x128xf32>
    %154 = arith.addf %152, %153 : vector<16x128xf32>
    %155 = arith.mulf %150, %154 : vector<16x128xf32>
    %156 = arith.addf %151, %155 : vector<16x128xf32>
    %157 = math.tanh %156 : vector<16x128xf32>
    %cst_68 = arith.constant 1.000000e+00 : f32
    %158 = vector.broadcast %cst_68 : f32 to vector<16x128xf32>
    %159 = arith.subf %158, %140 : vector<16x128xf32>
    %160 = arith.mulf %159, %157 : vector<16x128xf32>
    %161 = arith.mulf %140, %122 : vector<16x128xf32>
    %162 = arith.addf %160, %161 : vector<16x128xf32>
    %163 = arith.index_cast %121 : i32 to index
    %c0_69 = arith.constant 0 : index
    %c0_70 = arith.constant 0 : index
    %164 = vector.load %arg16[%163, %c0_69, %c0_70] : memref<8x16x128xf32, #tpu.memory_space<vmem>>, vector<1x16x128xf32>
    %165 = vector.shape_cast %164 : vector<1x16x128xf32> to vector<16x128xf32>
    %166 = vector.shape_cast %162 : vector<16x128xf32> to vector<1x16x128xf32>
    tpu.vector_store %arg16[%163, %c0_69, %c0_70], %166 {strides = array<i32>} : memref<8x16x128xf32, #tpu.memory_space<vmem>>, vector<1x16x128xf32>,
    %c0_71 = arith.constant 0 : index
    %c0_72 = arith.constant 0 : index
    %167 = vector.load %arg14[%c0_71, %c0_72] : memref<16x128xf32, #tpu.memory_space<vmem>>, vector<16x128xf32>
    tpu.vector_store %arg14[%c0_71, %c0_72], %162 {strides = array<i32>} : memref<16x128xf32, #tpu.memory_space<vmem>>, vector<16x128xf32>,
    %c3_i32 = arith.constant 3 : i32
    %c1_i32_73 = arith.constant 1 : i32
    %168 = arith.muli %c3_i32, %c1_i32_73 : i32
    %c0_i32_74 = arith.constant 0 : i32
    %169 = arith.addi %c0_i32_74, %168 : i32
    %c0_75 = arith.constant 0 : index
    %c0_76 = arith.constant 0 : index
    %170 = vector.load %arg14[%c0_75, %c0_76] : memref<16x128xf32, #tpu.memory_space<vmem>>, vector<16x128xf32>
    %171 = arith.index_cast %169 : i32 to index
    %c0_77 = arith.constant 0 : index
    %c0_78 = arith.constant 0 : index
    %172 = vector.load %arg15[%171, %c0_77, %c0_78] : memref<8x16x384xf32, #tpu.memory_space<vmem>>, vector<1x16x384xf32>
    %173 = vector.shape_cast %172 : vector<1x16x384xf32> to vector<16x384xf32>
    %174 = arith.truncf %170 : vector<16x128xf32> to vector<16x128xbf16>
    %c0_79 = arith.constant 0 : index
    %c0_80 = arith.constant 0 : index
    %175 = vector.load %arg6[%c0_79, %c0_80] : memref<128x384xbf16, #tpu.memory_space<vmem>>, vector<128x384xbf16>
    %cst_81 = arith.constant dense<0.000000e+00> : vector<16x384xf32>
    %176 = tpu.matmul %174, %175, %cst_81 {dimension_numbers = #tpu.dot_dimension_numbers<[1], [0], [0], [1], [0, 0, 1, 1], [], []>} : vector<16x128xbf16>, vector<128x384xbf16>, vector<16x384xf32> -> vector<16x384xf32>
    %177 = vector.broadcast %23 : vector<1x384xf32> to vector<16x384xf32>
    %178 = arith.addf %176, %177 : vector<16x384xf32>
    %179 = vector.extract_strided_slice %173 {offsets = [0, 0], sizes = [16, 128], strides = [1, 1]} : vector<16x384xf32> to vector<16x128xf32>
    %180 = vector.extract_strided_slice %178 {offsets = [0, 0], sizes = [16, 128], strides = [1, 1]} : vector<16x384xf32> to vector<16x128xf32>
    %181 = arith.addf %179, %180 : vector<16x128xf32>
    %182 = vector.extract_strided_slice %13 {offsets = [0, 0], sizes = [16, 128], strides = [1, 1]} : vector<16x384xf32> to vector<16x128xf32>
    %183 = arith.addf %181, %182 : vector<16x128xf32>
    %184 = arith.negf %183 : vector<16x128xf32>
    %185 = math.exp %184 : vector<16x128xf32>
    %cst_82 = arith.constant 1.000000e+00 : f32
    %186 = vector.broadcast %cst_82 : f32 to vector<16x128xf32>
    %187 = arith.addf %186, %185 : vector<16x128xf32>
    %188 = arith.divf %186, %187 : vector<16x128xf32>
    %189 = vector.extract_strided_slice %173 {offsets = [0, 128], sizes = [16, 128], strides = [1, 1]} : vector<16x384xf32> to vector<16x128xf32>
    %190 = vector.extract_strided_slice %178 {offsets = [0, 128], sizes = [16, 128], strides = [1, 1]} : vector<16x384xf32> to vector<16x128xf32>
    %191 = arith.addf %189, %190 : vector<16x128xf32>
    %192 = vector.extract_strided_slice %13 {offsets = [0, 128], sizes = [16, 128], strides = [1, 1]} : vector<16x384xf32> to vector<16x128xf32>
    %193 = arith.addf %191, %192 : vector<16x128xf32>
    %194 = arith.negf %193 : vector<16x128xf32>
    %195 = math.exp %194 : vector<16x128xf32>
    %cst_83 = arith.constant 1.000000e+00 : f32
    %196 = vector.broadcast %cst_83 : f32 to vector<16x128xf32>
    %197 = arith.addf %196, %195 : vector<16x128xf32>
    %198 = arith.divf %196, %197 : vector<16x128xf32>
    %199 = vector.extract_strided_slice %173 {offsets = [0, 256], sizes = [16, 128], strides = [1, 1]} : vector<16x384xf32> to vector<16x128xf32>
    %200 = vector.extract_strided_slice %178 {offsets = [0, 256], sizes = [16, 128], strides = [1, 1]} : vector<16x384xf32> to vector<16x128xf32>
    %201 = vector.extract_strided_slice %13 {offsets = [0, 256], sizes = [16, 128], strides = [1, 1]} : vector<16x384xf32> to vector<16x128xf32>
    %202 = arith.addf %200, %201 : vector<16x128xf32>
    %203 = arith.mulf %198, %202 : vector<16x128xf32>
    %204 = arith.addf %199, %203 : vector<16x128xf32>
    %205 = math.tanh %204 : vector<16x128xf32>
    %cst_84 = arith.constant 1.000000e+00 : f32
    %206 = vector.broadcast %cst_84 : f32 to vector<16x128xf32>
    %207 = arith.subf %206, %188 : vector<16x128xf32>
    %208 = arith.mulf %207, %205 : vector<16x128xf32>
    %209 = arith.mulf %188, %170 : vector<16x128xf32>
    %210 = arith.addf %208, %209 : vector<16x128xf32>
    %211 = arith.index_cast %169 : i32 to index
    %c0_85 = arith.constant 0 : index
    %c0_86 = arith.constant 0 : index
    %212 = vector.load %arg16[%211, %c0_85, %c0_86] : memref<8x16x128xf32, #tpu.memory_space<vmem>>, vector<1x16x128xf32>
    %213 = vector.shape_cast %212 : vector<1x16x128xf32> to vector<16x128xf32>
    %214 = vector.shape_cast %210 : vector<16x128xf32> to vector<1x16x128xf32>
    tpu.vector_store %arg16[%211, %c0_85, %c0_86], %214 {strides = array<i32>} : memref<8x16x128xf32, #tpu.memory_space<vmem>>, vector<1x16x128xf32>,
    %c0_87 = arith.constant 0 : index
    %c0_88 = arith.constant 0 : index
    %215 = vector.load %arg14[%c0_87, %c0_88] : memref<16x128xf32, #tpu.memory_space<vmem>>, vector<16x128xf32>
    tpu.vector_store %arg14[%c0_87, %c0_88], %210 {strides = array<i32>} : memref<16x128xf32, #tpu.memory_space<vmem>>, vector<16x128xf32>,
    %c4_i32 = arith.constant 4 : i32
    %c1_i32_89 = arith.constant 1 : i32
    %216 = arith.muli %c4_i32, %c1_i32_89 : i32
    %c0_i32_90 = arith.constant 0 : i32
    %217 = arith.addi %c0_i32_90, %216 : i32
    %c0_91 = arith.constant 0 : index
    %c0_92 = arith.constant 0 : index
    %218 = vector.load %arg14[%c0_91, %c0_92] : memref<16x128xf32, #tpu.memory_space<vmem>>, vector<16x128xf32>
    %219 = arith.index_cast %217 : i32 to index
    %c0_93 = arith.constant 0 : index
    %c0_94 = arith.constant 0 : index
    %220 = vector.load %arg15[%219, %c0_93, %c0_94] : memref<8x16x384xf32, #tpu.memory_space<vmem>>, vector<1x16x384xf32>
    %221 = vector.shape_cast %220 : vector<1x16x384xf32> to vector<16x384xf32>
    %222 = arith.truncf %218 : vector<16x128xf32> to vector<16x128xbf16>
    %c0_95 = arith.constant 0 : index
    %c0_96 = arith.constant 0 : index
    %223 = vector.load %arg6[%c0_95, %c0_96] : memref<128x384xbf16, #tpu.memory_space<vmem>>, vector<128x384xbf16>
    %cst_97 = arith.constant dense<0.000000e+00> : vector<16x384xf32>
    %224 = tpu.matmul %222, %223, %cst_97 {dimension_numbers = #tpu.dot_dimension_numbers<[1], [0], [0], [1], [0, 0, 1, 1], [], []>} : vector<16x128xbf16>, vector<128x384xbf16>, vector<16x384xf32> -> vector<16x384xf32>
    %225 = vector.broadcast %23 : vector<1x384xf32> to vector<16x384xf32>
    %226 = arith.addf %224, %225 : vector<16x384xf32>
    %227 = vector.extract_strided_slice %221 {offsets = [0, 0], sizes = [16, 128], strides = [1, 1]} : vector<16x384xf32> to vector<16x128xf32>
    %228 = vector.extract_strided_slice %226 {offsets = [0, 0], sizes = [16, 128], strides = [1, 1]} : vector<16x384xf32> to vector<16x128xf32>
    %229 = arith.addf %227, %228 : vector<16x128xf32>
    %230 = vector.extract_strided_slice %13 {offsets = [0, 0], sizes = [16, 128], strides = [1, 1]} : vector<16x384xf32> to vector<16x128xf32>
    %231 = arith.addf %229, %230 : vector<16x128xf32>
    %232 = arith.negf %231 : vector<16x128xf32>
    %233 = math.exp %232 : vector<16x128xf32>
    %cst_98 = arith.constant 1.000000e+00 : f32
    %234 = vector.broadcast %cst_98 : f32 to vector<16x128xf32>
    %235 = arith.addf %234, %233 : vector<16x128xf32>
    %236 = arith.divf %234, %235 : vector<16x128xf32>
    %237 = vector.extract_strided_slice %221 {offsets = [0, 128], sizes = [16, 128], strides = [1, 1]} : vector<16x384xf32> to vector<16x128xf32>
    %238 = vector.extract_strided_slice %226 {offsets = [0, 128], sizes = [16, 128], strides = [1, 1]} : vector<16x384xf32> to vector<16x128xf32>
    %239 = arith.addf %237, %238 : vector<16x128xf32>
    %240 = vector.extract_strided_slice %13 {offsets = [0, 128], sizes = [16, 128], strides = [1, 1]} : vector<16x384xf32> to vector<16x128xf32>
    %241 = arith.addf %239, %240 : vector<16x128xf32>
    %242 = arith.negf %241 : vector<16x128xf32>
    %243 = math.exp %242 : vector<16x128xf32>
    %cst_99 = arith.constant 1.000000e+00 : f32
    %244 = vector.broadcast %cst_99 : f32 to vector<16x128xf32>
    %245 = arith.addf %244, %243 : vector<16x128xf32>
    %246 = arith.divf %244, %245 : vector<16x128xf32>
    %247 = vector.extract_strided_slice %221 {offsets = [0, 256], sizes = [16, 128], strides = [1, 1]} : vector<16x384xf32> to vector<16x128xf32>
    %248 = vector.extract_strided_slice %226 {offsets = [0, 256], sizes = [16, 128], strides = [1, 1]} : vector<16x384xf32> to vector<16x128xf32>
    %249 = vector.extract_strided_slice %13 {offsets = [0, 256], sizes = [16, 128], strides = [1, 1]} : vector<16x384xf32> to vector<16x128xf32>
    %250 = arith.addf %248, %249 : vector<16x128xf32>
    %251 = arith.mulf %246, %250 : vector<16x128xf32>
    %252 = arith.addf %247, %251 : vector<16x128xf32>
    %253 = math.tanh %252 : vector<16x128xf32>
    %cst_100 = arith.constant 1.000000e+00 : f32
    %254 = vector.broadcast %cst_100 : f32 to vector<16x128xf32>
    %255 = arith.subf %254, %236 : vector<16x128xf32>
    %256 = arith.mulf %255, %253 : vector<16x128xf32>
    %257 = arith.mulf %236, %218 : vector<16x128xf32>
    %258 = arith.addf %256, %257 : vector<16x128xf32>
    %259 = arith.index_cast %217 : i32 to index
    %c0_101 = arith.constant 0 : index
    %c0_102 = arith.constant 0 : index
    %260 = vector.load %arg16[%259, %c0_101, %c0_102] : memref<8x16x128xf32, #tpu.memory_space<vmem>>, vector<1x16x128xf32>
    %261 = vector.shape_cast %260 : vector<1x16x128xf32> to vector<16x128xf32>
    %262 = vector.shape_cast %258 : vector<16x128xf32> to vector<1x16x128xf32>
    tpu.vector_store %arg16[%259, %c0_101, %c0_102], %262 {strides = array<i32>} : memref<8x16x128xf32, #tpu.memory_space<vmem>>, vector<1x16x128xf32>,
    %c0_103 = arith.constant 0 : index
    %c0_104 = arith.constant 0 : index
    %263 = vector.load %arg14[%c0_103, %c0_104] : memref<16x128xf32, #tpu.memory_space<vmem>>, vector<16x128xf32>
    tpu.vector_store %arg14[%c0_103, %c0_104], %258 {strides = array<i32>} : memref<16x128xf32, #tpu.memory_space<vmem>>, vector<16x128xf32>,
    %c5_i32 = arith.constant 5 : i32
    %c1_i32_105 = arith.constant 1 : i32
    %264 = arith.muli %c5_i32, %c1_i32_105 : i32
    %c0_i32_106 = arith.constant 0 : i32
    %265 = arith.addi %c0_i32_106, %264 : i32
    %c0_107 = arith.constant 0 : index
    %c0_108 = arith.constant 0 : index
    %266 = vector.load %arg14[%c0_107, %c0_108] : memref<16x128xf32, #tpu.memory_space<vmem>>, vector<16x128xf32>
    %267 = arith.index_cast %265 : i32 to index
    %c0_109 = arith.constant 0 : index
    %c0_110 = arith.constant 0 : index
    %268 = vector.load %arg15[%267, %c0_109, %c0_110] : memref<8x16x384xf32, #tpu.memory_space<vmem>>, vector<1x16x384xf32>
    %269 = vector.shape_cast %268 : vector<1x16x384xf32> to vector<16x384xf32>
    %270 = arith.truncf %266 : vector<16x128xf32> to vector<16x128xbf16>
    %c0_111 = arith.constant 0 : index
    %c0_112 = arith.constant 0 : index
    %271 = vector.load %arg6[%c0_111, %c0_112] : memref<128x384xbf16, #tpu.memory_space<vmem>>, vector<128x384xbf16>
    %cst_113 = arith.constant dense<0.000000e+00> : vector<16x384xf32>
    %272 = tpu.matmul %270, %271, %cst_113 {dimension_numbers = #tpu.dot_dimension_numbers<[1], [0], [0], [1], [0, 0, 1, 1], [], []>} : vector<16x128xbf16>, vector<128x384xbf16>, vector<16x384xf32> -> vector<16x384xf32>
    %273 = vector.broadcast %23 : vector<1x384xf32> to vector<16x384xf32>
    %274 = arith.addf %272, %273 : vector<16x384xf32>
    %275 = vector.extract_strided_slice %269 {offsets = [0, 0], sizes = [16, 128], strides = [1, 1]} : vector<16x384xf32> to vector<16x128xf32>
    %276 = vector.extract_strided_slice %274 {offsets = [0, 0], sizes = [16, 128], strides = [1, 1]} : vector<16x384xf32> to vector<16x128xf32>
    %277 = arith.addf %275, %276 : vector<16x128xf32>
    %278 = vector.extract_strided_slice %13 {offsets = [0, 0], sizes = [16, 128], strides = [1, 1]} : vector<16x384xf32> to vector<16x128xf32>
    %279 = arith.addf %277, %278 : vector<16x128xf32>
    %280 = arith.negf %279 : vector<16x128xf32>
    %281 = math.exp %280 : vector<16x128xf32>
    %cst_114 = arith.constant 1.000000e+00 : f32
    %282 = vector.broadcast %cst_114 : f32 to vector<16x128xf32>
    %283 = arith.addf %282, %281 : vector<16x128xf32>
    %284 = arith.divf %282, %283 : vector<16x128xf32>
    %285 = vector.extract_strided_slice %269 {offsets = [0, 128], sizes = [16, 128], strides = [1, 1]} : vector<16x384xf32> to vector<16x128xf32>
    %286 = vector.extract_strided_slice %274 {offsets = [0, 128], sizes = [16, 128], strides = [1, 1]} : vector<16x384xf32> to vector<16x128xf32>
    %287 = arith.addf %285, %286 : vector<16x128xf32>
    %288 = vector.extract_strided_slice %13 {offsets = [0, 128], sizes = [16, 128], strides = [1, 1]} : vector<16x384xf32> to vector<16x128xf32>
    %289 = arith.addf %287, %288 : vector<16x128xf32>
    %290 = arith.negf %289 : vector<16x128xf32>
    %291 = math.exp %290 : vector<16x128xf32>
    %cst_115 = arith.constant 1.000000e+00 : f32
    %292 = vector.broadcast %cst_115 : f32 to vector<16x128xf32>
    %293 = arith.addf %292, %291 : vector<16x128xf32>
    %294 = arith.divf %292, %293 : vector<16x128xf32>
    %295 = vector.extract_strided_slice %269 {offsets = [0, 256], sizes = [16, 128], strides = [1, 1]} : vector<16x384xf32> to vector<16x128xf32>
    %296 = vector.extract_strided_slice %274 {offsets = [0, 256], sizes = [16, 128], strides = [1, 1]} : vector<16x384xf32> to vector<16x128xf32>
    %297 = vector.extract_strided_slice %13 {offsets = [0, 256], sizes = [16, 128], strides = [1, 1]} : vector<16x384xf32> to vector<16x128xf32>
    %298 = arith.addf %296, %297 : vector<16x128xf32>
    %299 = arith.mulf %294, %298 : vector<16x128xf32>
    %300 = arith.addf %295, %299 : vector<16x128xf32>
    %301 = math.tanh %300 : vector<16x128xf32>
    %cst_116 = arith.constant 1.000000e+00 : f32
    %302 = vector.broadcast %cst_116 : f32 to vector<16x128xf32>
    %303 = arith.subf %302, %284 : vector<16x128xf32>
    %304 = arith.mulf %303, %301 : vector<16x128xf32>
    %305 = arith.mulf %284, %266 : vector<16x128xf32>
    %306 = arith.addf %304, %305 : vector<16x128xf32>
    %307 = arith.index_cast %265 : i32 to index
    %c0_117 = arith.constant 0 : index
    %c0_118 = arith.constant 0 : index
    %308 = vector.load %arg16[%307, %c0_117, %c0_118] : memref<8x16x128xf32, #tpu.memory_space<vmem>>, vector<1x16x128xf32>
    %309 = vector.shape_cast %308 : vector<1x16x128xf32> to vector<16x128xf32>
    %310 = vector.shape_cast %306 : vector<16x128xf32> to vector<1x16x128xf32>
    tpu.vector_store %arg16[%307, %c0_117, %c0_118], %310 {strides = array<i32>} : memref<8x16x128xf32, #tpu.memory_space<vmem>>, vector<1x16x128xf32>,
    %c0_119 = arith.constant 0 : index
    %c0_120 = arith.constant 0 : index
    %311 = vector.load %arg14[%c0_119, %c0_120] : memref<16x128xf32, #tpu.memory_space<vmem>>, vector<16x128xf32>
    tpu.vector_store %arg14[%c0_119, %c0_120], %306 {strides = array<i32>} : memref<16x128xf32, #tpu.memory_space<vmem>>, vector<16x128xf32>,
    %c6_i32 = arith.constant 6 : i32
    %c1_i32_121 = arith.constant 1 : i32
    %312 = arith.muli %c6_i32, %c1_i32_121 : i32
    %c0_i32_122 = arith.constant 0 : i32
    %313 = arith.addi %c0_i32_122, %312 : i32
    %c0_123 = arith.constant 0 : index
    %c0_124 = arith.constant 0 : index
    %314 = vector.load %arg14[%c0_123, %c0_124] : memref<16x128xf32, #tpu.memory_space<vmem>>, vector<16x128xf32>
    %315 = arith.index_cast %313 : i32 to index
    %c0_125 = arith.constant 0 : index
    %c0_126 = arith.constant 0 : index
    %316 = vector.load %arg15[%315, %c0_125, %c0_126] : memref<8x16x384xf32, #tpu.memory_space<vmem>>, vector<1x16x384xf32>
    %317 = vector.shape_cast %316 : vector<1x16x384xf32> to vector<16x384xf32>
    %318 = arith.truncf %314 : vector<16x128xf32> to vector<16x128xbf16>
    %c0_127 = arith.constant 0 : index
    %c0_128 = arith.constant 0 : index
    %319 = vector.load %arg6[%c0_127, %c0_128] : memref<128x384xbf16, #tpu.memory_space<vmem>>, vector<128x384xbf16>
    %cst_129 = arith.constant dense<0.000000e+00> : vector<16x384xf32>
    %320 = tpu.matmul %318, %319, %cst_129 {dimension_numbers = #tpu.dot_dimension_numbers<[1], [0], [0], [1], [0, 0, 1, 1], [], []>} : vector<16x128xbf16>, vector<128x384xbf16>, vector<16x384xf32> -> vector<16x384xf32>
    %321 = vector.broadcast %23 : vector<1x384xf32> to vector<16x384xf32>
    %322 = arith.addf %320, %321 : vector<16x384xf32>
    %323 = vector.extract_strided_slice %317 {offsets = [0, 0], sizes = [16, 128], strides = [1, 1]} : vector<16x384xf32> to vector<16x128xf32>
    %324 = vector.extract_strided_slice %322 {offsets = [0, 0], sizes = [16, 128], strides = [1, 1]} : vector<16x384xf32> to vector<16x128xf32>
    %325 = arith.addf %323, %324 : vector<16x128xf32>
    %326 = vector.extract_strided_slice %13 {offsets = [0, 0], sizes = [16, 128], strides = [1, 1]} : vector<16x384xf32> to vector<16x128xf32>
    %327 = arith.addf %325, %326 : vector<16x128xf32>
    %328 = arith.negf %327 : vector<16x128xf32>
    %329 = math.exp %328 : vector<16x128xf32>
    %cst_130 = arith.constant 1.000000e+00 : f32
    %330 = vector.broadcast %cst_130 : f32 to vector<16x128xf32>
    %331 = arith.addf %330, %329 : vector<16x128xf32>
    %332 = arith.divf %330, %331 : vector<16x128xf32>
    %333 = vector.extract_strided_slice %317 {offsets = [0, 128], sizes = [16, 128], strides = [1, 1]} : vector<16x384xf32> to vector<16x128xf32>
    %334 = vector.extract_strided_slice %322 {offsets = [0, 128], sizes = [16, 128], strides = [1, 1]} : vector<16x384xf32> to vector<16x128xf32>
    %335 = arith.addf %333, %334 : vector<16x128xf32>
    %336 = vector.extract_strided_slice %13 {offsets = [0, 128], sizes = [16, 128], strides = [1, 1]} : vector<16x384xf32> to vector<16x128xf32>
    %337 = arith.addf %335, %336 : vector<16x128xf32>
    %338 = arith.negf %337 : vector<16x128xf32>
    %339 = math.exp %338 : vector<16x128xf32>
    %cst_131 = arith.constant 1.000000e+00 : f32
    %340 = vector.broadcast %cst_131 : f32 to vector<16x128xf32>
    %341 = arith.addf %340, %339 : vector<16x128xf32>
    %342 = arith.divf %340, %341 : vector<16x128xf32>
    %343 = vector.extract_strided_slice %317 {offsets = [0, 256], sizes = [16, 128], strides = [1, 1]} : vector<16x384xf32> to vector<16x128xf32>
    %344 = vector.extract_strided_slice %322 {offsets = [0, 256], sizes = [16, 128], strides = [1, 1]} : vector<16x384xf32> to vector<16x128xf32>
    %345 = vector.extract_strided_slice %13 {offsets = [0, 256], sizes = [16, 128], strides = [1, 1]} : vector<16x384xf32> to vector<16x128xf32>
    %346 = arith.addf %344, %345 : vector<16x128xf32>
    %347 = arith.mulf %342, %346 : vector<16x128xf32>
    %348 = arith.addf %343, %347 : vector<16x128xf32>
    %349 = math.tanh %348 : vector<16x128xf32>
    %cst_132 = arith.constant 1.000000e+00 : f32
    %350 = vector.broadcast %cst_132 : f32 to vector<16x128xf32>
    %351 = arith.subf %350, %332 : vector<16x128xf32>
    %352 = arith.mulf %351, %349 : vector<16x128xf32>
    %353 = arith.mulf %332, %314 : vector<16x128xf32>
    %354 = arith.addf %352, %353 : vector<16x128xf32>
    %355 = arith.index_cast %313 : i32 to index
    %c0_133 = arith.constant 0 : index
    %c0_134 = arith.constant 0 : index
    %356 = vector.load %arg16[%355, %c0_133, %c0_134] : memref<8x16x128xf32, #tpu.memory_space<vmem>>, vector<1x16x128xf32>
    %357 = vector.shape_cast %356 : vector<1x16x128xf32> to vector<16x128xf32>
    %358 = vector.shape_cast %354 : vector<16x128xf32> to vector<1x16x128xf32>
    tpu.vector_store %arg16[%355, %c0_133, %c0_134], %358 {strides = array<i32>} : memref<8x16x128xf32, #tpu.memory_space<vmem>>, vector<1x16x128xf32>,
    %c0_135 = arith.constant 0 : index
    %c0_136 = arith.constant 0 : index
    %359 = vector.load %arg14[%c0_135, %c0_136] : memref<16x128xf32, #tpu.memory_space<vmem>>, vector<16x128xf32>
    tpu.vector_store %arg14[%c0_135, %c0_136], %354 {strides = array<i32>} : memref<16x128xf32, #tpu.memory_space<vmem>>, vector<16x128xf32>,
    %c7_i32 = arith.constant 7 : i32
    %c1_i32_137 = arith.constant 1 : i32
    %360 = arith.muli %c7_i32, %c1_i32_137 : i32
    %c0_i32_138 = arith.constant 0 : i32
    %361 = arith.addi %c0_i32_138, %360 : i32
    %c0_139 = arith.constant 0 : index
    %c0_140 = arith.constant 0 : index
    %362 = vector.load %arg14[%c0_139, %c0_140] : memref<16x128xf32, #tpu.memory_space<vmem>>, vector<16x128xf32>
    %363 = arith.index_cast %361 : i32 to index
    %c0_141 = arith.constant 0 : index
    %c0_142 = arith.constant 0 : index
    %364 = vector.load %arg15[%363, %c0_141, %c0_142] : memref<8x16x384xf32, #tpu.memory_space<vmem>>, vector<1x16x384xf32>
    %365 = vector.shape_cast %364 : vector<1x16x384xf32> to vector<16x384xf32>
    %366 = arith.truncf %362 : vector<16x128xf32> to vector<16x128xbf16>
    %c0_143 = arith.constant 0 : index
    %c0_144 = arith.constant 0 : index
    %367 = vector.load %arg6[%c0_143, %c0_144] : memref<128x384xbf16, #tpu.memory_space<vmem>>, vector<128x384xbf16>
    %cst_145 = arith.constant dense<0.000000e+00> : vector<16x384xf32>
    %368 = tpu.matmul %366, %367, %cst_145 {dimension_numbers = #tpu.dot_dimension_numbers<[1], [0], [0], [1], [0, 0, 1, 1], [], []>} : vector<16x128xbf16>, vector<128x384xbf16>, vector<16x384xf32> -> vector<16x384xf32>
    %369 = vector.broadcast %23 : vector<1x384xf32> to vector<16x384xf32>
    %370 = arith.addf %368, %369 : vector<16x384xf32>
    %371 = vector.extract_strided_slice %365 {offsets = [0, 0], sizes = [16, 128], strides = [1, 1]} : vector<16x384xf32> to vector<16x128xf32>
    %372 = vector.extract_strided_slice %370 {offsets = [0, 0], sizes = [16, 128], strides = [1, 1]} : vector<16x384xf32> to vector<16x128xf32>
    %373 = arith.addf %371, %372 : vector<16x128xf32>
    %374 = vector.extract_strided_slice %13 {offsets = [0, 0], sizes = [16, 128], strides = [1, 1]} : vector<16x384xf32> to vector<16x128xf32>
    %375 = arith.addf %373, %374 : vector<16x128xf32>
    %376 = arith.negf %375 : vector<16x128xf32>
    %377 = math.exp %376 : vector<16x128xf32>
    %cst_146 = arith.constant 1.000000e+00 : f32
    %378 = vector.broadcast %cst_146 : f32 to vector<16x128xf32>
    %379 = arith.addf %378, %377 : vector<16x128xf32>
    %380 = arith.divf %378, %379 : vector<16x128xf32>
    %381 = vector.extract_strided_slice %365 {offsets = [0, 128], sizes = [16, 128], strides = [1, 1]} : vector<16x384xf32> to vector<16x128xf32>
    %382 = vector.extract_strided_slice %370 {offsets = [0, 128], sizes = [16, 128], strides = [1, 1]} : vector<16x384xf32> to vector<16x128xf32>
    %383 = arith.addf %381, %382 : vector<16x128xf32>
    %384 = vector.extract_strided_slice %13 {offsets = [0, 128], sizes = [16, 128], strides = [1, 1]} : vector<16x384xf32> to vector<16x128xf32>
    %385 = arith.addf %383, %384 : vector<16x128xf32>
    %386 = arith.negf %385 : vector<16x128xf32>
    %387 = math.exp %386 : vector<16x128xf32>
    %cst_147 = arith.constant 1.000000e+00 : f32
    %388 = vector.broadcast %cst_147 : f32 to vector<16x128xf32>
    %389 = arith.addf %388, %387 : vector<16x128xf32>
    %390 = arith.divf %388, %389 : vector<16x128xf32>
    %391 = vector.extract_strided_slice %365 {offsets = [0, 256], sizes = [16, 128], strides = [1, 1]} : vector<16x384xf32> to vector<16x128xf32>
    %392 = vector.extract_strided_slice %370 {offsets = [0, 256], sizes = [16, 128], strides = [1, 1]} : vector<16x384xf32> to vector<16x128xf32>
    %393 = vector.extract_strided_slice %13 {offsets = [0, 256], sizes = [16, 128], strides = [1, 1]} : vector<16x384xf32> to vector<16x128xf32>
    %394 = arith.addf %392, %393 : vector<16x128xf32>
    %395 = arith.mulf %390, %394 : vector<16x128xf32>
    %396 = arith.addf %391, %395 : vector<16x128xf32>
    %397 = math.tanh %396 : vector<16x128xf32>
    %cst_148 = arith.constant 1.000000e+00 : f32
    %398 = vector.broadcast %cst_148 : f32 to vector<16x128xf32>
    %399 = arith.subf %398, %380 : vector<16x128xf32>
    %400 = arith.mulf %399, %397 : vector<16x128xf32>
    %401 = arith.mulf %380, %362 : vector<16x128xf32>
    %402 = arith.addf %400, %401 : vector<16x128xf32>
    %403 = arith.index_cast %361 : i32 to index
    %c0_149 = arith.constant 0 : index
    %c0_150 = arith.constant 0 : index
    %404 = vector.load %arg16[%403, %c0_149, %c0_150] : memref<8x16x128xf32, #tpu.memory_space<vmem>>, vector<1x16x128xf32>
    %405 = vector.shape_cast %404 : vector<1x16x128xf32> to vector<16x128xf32>
    %406 = vector.shape_cast %402 : vector<16x128xf32> to vector<1x16x128xf32>
    tpu.vector_store %arg16[%403, %c0_149, %c0_150], %406 {strides = array<i32>} : memref<8x16x128xf32, #tpu.memory_space<vmem>>, vector<1x16x128xf32>,
    %c0_151 = arith.constant 0 : index
    %c0_152 = arith.constant 0 : index
    %407 = vector.load %arg14[%c0_151, %c0_152] : memref<16x128xf32, #tpu.memory_space<vmem>>, vector<16x128xf32>
    tpu.vector_store %arg14[%c0_151, %c0_152], %402 {strides = array<i32>} : memref<16x128xf32, #tpu.memory_space<vmem>>, vector<16x128xf32>,
    %c8_i32 = arith.constant 8 : i32
    %c0_153 = arith.constant 0 : index
    %c0_154 = arith.constant 0 : index
    %408 = vector.load %arg14[%c0_153, %c0_154] : memref<16x128xf32, #tpu.memory_space<vmem>>, vector<16x128xf32>
    %c0_155 = arith.constant 0 : index
    %c0_156 = arith.constant 0 : index
    %409 = vector.load %arg13[%c0_155, %c0_156] : memref<16x128xf32, #tpu.memory_space<vmem>>, vector<16x128xf32>
    tpu.vector_store %arg13[%c0_155, %c0_156], %408 {strides = array<i32>} : memref<16x128xf32, #tpu.memory_space<vmem>>, vector<16x128xf32>,
    %c0_157 = arith.constant 0 : index
    %c0_158 = arith.constant 0 : index
    %c0_159 = arith.constant 0 : index
    %410 = vector.load %arg16[%c0_157, %c0_158, %c0_159] : memref<8x16x128xf32, #tpu.memory_space<vmem>>, vector<8x16x128xf32>
    %411 = vector.shape_cast %410 : vector<8x16x128xf32> to vector<128x128xf32>
    %412 = arith.truncf %411 : vector<128x128xf32> to vector<128x128xbf16>
    %c0_160 = arith.constant 0 : index
    %c0_161 = arith.constant 0 : index
    %413 = vector.load %arg10[%c0_160, %c0_161] : memref<128x128xbf16, #tpu.memory_space<vmem>>, vector<128x128xbf16>
    %cst_162 = arith.constant dense<0.000000e+00> : vector<128x128xf32>
    %414 = tpu.matmul %412, %413, %cst_162 {dimension_numbers = #tpu.dot_dimension_numbers<[1], [0], [0], [1], [0, 0, 1, 1], [], []>} : vector<128x128xbf16>, vector<128x128xbf16>, vector<128x128xf32> -> vector<128x128xf32>
    %c0_163 = arith.constant 0 : index
    %c0_164 = arith.constant 0 : index
    %415 = vector.load %arg11[%c0_163, %c0_164] : memref<1x128xf32, #tpu.memory_space<vmem>>, vector<1x128xf32>
    %416 = vector.broadcast %415 : vector<1x128xf32> to vector<128x128xf32>
    %417 = arith.addf %414, %416 : vector<128x128xf32>
    %cst_165 = arith.constant dense<0xFF800000> : vector<128xf32>
    %418 = vector.multi_reduction <maximumf>, %417, %cst_165 [1] : vector<128x128xf32> to vector<128xf32>
    %419 = vector.shape_cast %418 : vector<128xf32> to vector<128x1xf32>
    %420 = vector.broadcast %419 : vector<128x1xf32> to vector<128x128xf32>
    %421 = arith.subf %417, %420 : vector<128x128xf32>
    %422 = math.exp %421 : vector<128x128xf32>
    %cst_166 = arith.constant dense<0.000000e+00> : vector<128xf32>
    %423 = vector.multi_reduction <add>, %422, %cst_166 [1] : vector<128x128xf32> to vector<128xf32>
    %424 = vector.shape_cast %423 : vector<128xf32> to vector<128x1xf32>
    %425 = math.log %424 : vector<128x1xf32>
    %426 = arith.addf %425, %419 : vector<128x1xf32>
    %427 = vector.broadcast %426 : vector<128x1xf32> to vector<128x128xf32>
    %428 = arith.subf %417, %427 : vector<128x128xf32>
    %429 = vector.shape_cast %428 : vector<128x128xf32> to vector<8x16x128xf32>
    %c0_167 = arith.constant 0 : index
    %c0_168 = arith.constant 0 : index
    %c0_169 = arith.constant 0 : index
    %430 = vector.load %arg12[%c0_167, %c0_168, %c0_169] : memref<8x16x128xf32, #tpu.memory_space<vmem>>, vector<8x16x128xf32>
    tpu.vector_store %arg12[%c0_167, %c0_168, %c0_169], %429 {strides = array<i32>} : memref<8x16x128xf32, #tpu.memory_space<vmem>>, vector<8x16x128xf32>,
    return
  }
}

</mosaic_0001>

<bundles_post_ra>
// kernel: decode_sequence.1
= control target key start
LH: loop header
LB: loop body
LE: loop exit
PB: predicated region body
PF: predicated region fallthrough
CT: control target
= control target key end

     0   :  { %19 = vsyncpa [#allocation6], 0  ;;  %s6372_s0 = inlined_call_operand.hbm [shape: bf16[16,128], index: 0, kind: input, shape index: {}]   ;;  %s6373_s1 = inlined_call_operand.hbm [shape: bf16[8,16,128], index: 1, kind: input, shape index: {}]   ;;  %s6374_s2 = inlined_call_operand.hbm [shape: bf16[128,128], index: 2, kind: input, shape index: {}]   ;;  %s6375_s3 = inlined_call_operand.hbm [shape: f32[1,128], index: 3, kind: input, shape index: {}]   ;;  %s6376_s4 = inlined_call_operand.hbm [shape: bf16[128,384], index: 4, kind: input, shape index: {}]   ;;  %s6377_s5 = inlined_call_operand.vmem [shape: f32[1,384], index: 5, kind: input, shape index: {}]   ;;  %s6378_s6 = inlined_call_operand.hbm [shape: bf16[128,384], index: 6, kind: input, shape index: {}]   ;;  %s6379_s7 = inlined_call_operand.vmem [shape: f32[1,384], index: 7, kind: input, shape index: {}]   ;;  %s6380_s8 = inlined_call_operand.hbm [shape: bf16[128,384], index: 8, kind: input, shape index: {}]   ;;  %s6381_s9 = inlined_call_operand.vmem [shape: f32[1,384], index: 9, kind: input, shape index: {}]   ;;  %s6382_s10 = inlined_call_operand.hbm [shape: bf16[128,128], index: 10, kind: input, shape index: {}]   ;;  %s6383_s11 = inlined_call_operand.vmem [shape: f32[1,128], index: 11, kind: input, shape index: {}]   ;;  %s6384_s12 = inlined_call_operand.hbm [shape: f32[8,16,128], index: 12, kind: output, shape index: {0}]   ;;  %s6385_s13 = inlined_call_operand.hbm [shape: f32[16,128], index: 13, kind: output, shape index: {1}]  }
   0x1   :  { %20 = vsyncpa [#allocation9], 0 }
   0x2   :  { %21 = vsyncpa [#allocation12], 0 }
   0x3   :  { %22 = vsyncpa [#allocation15], 0 }
   0x4   :  { %23 = vsyncpa [#allocation18], 0 }
   0x5   :  { %24 = vsyncpa [#allocation7], 0 }
   0x6   :  { %25 = vsyncpa [#allocation21], 0  ;;  %s5305_s25 = smov [#allocation8]   ;;  %s5306_s27 = smov [#allocation11]  }
   0x7   :  { %s43_s26 = sshll.u32 %s5305_s25, 4  ;;  %s68_s28 = sshll.u32 %s5306_s27, 4  ;;  %s44_s26 = int_to_ptr.vmem [resolvable:$true] %s43_s26  ;;  %s69_s28 = int_to_ptr.vmem [resolvable:$true] %s68_s28 }
   0x8   :  { %s5099_s29 = scalar_lea.vmem %s44_s26, 1024  ;;  %p5104_p1 = scmp.lt.s32.totalorder %s44_s26, %s44_s26 }
   0x9   :  { %p5100_p0 = scmp.ne.s32.totalorder %s44_s26, %s5099_s29  ;;  %p5105_p2 = scmp.lt.s32.totalorder %s5099_s29, %s5099_s29 }
   0xb   :  { %p5106_p3 = por %p5105_p2, %p5104_p1 }
   0xd   :  { %p5107_p4 = pnand %p5106_p3, %p5100_p0 }
   0xf   :  { %5110 = shalt.err (!%p5107_p4)
}
  0x10   :  { %s5307_s30 = smov 64   ;;  %s5308_s14 = smov 4  }
  0x11   :  { %49 = dma.hbm_to_vmem [thread:$0]  %s6373_s1, 1024, %s44_s26, [#allocation9], %s5307_s30, %s5307_s30, %s5308_s14  }
  0x12   :  { %s5119_s17 = scalar_lea.vmem %s69_s28, 16  ;;  %s5123_s18 = scalar_lea.vmem %s69_s28, 32 }
  0x13   :  { %p5120_p5 = scmp.ne.s32.totalorder %s69_s28, %s5119_s17  ;;  %p5124_p6 = scmp.lt.s32.totalorder %s69_s28, %s69_s28 }
  0x14   :  { %p5125_p7 = scmp.lt.s32.totalorder %s5123_s18, %s5119_s17 }
  0x16   :  { %p5126_p8 = por %p5125_p7, %p5124_p6 }
  0x18   :  { %p5127_p9 = pnand %p5126_p8, %p5120_p5 }
  0x1a   :  { %5130 = shalt.err (!%p5127_p9)
}
  0x1b   :  { %71 = dma.hbm_to_vmem [thread:$0]  %s6375_s3, 16, %s69_s28, [#allocation12]  }
  0x1c   :  { %s5309_s21 = smov [#allocation14]   ;;  %s5310_s23 = smov [#allocation5]  }
  0x1d   :  { %s91_s22 = sshll.u32 %s5309_s21, 4  ;;  %s31_s24 = sshll.u32 %s5310_s23, 4  ;;  %s92_s22 = int_to_ptr.vmem [resolvable:$true] %s91_s22  ;;  %s32_s24 = int_to_ptr.vmem [resolvable:$true] %s31_s24 }
  0x1e   :  { %s5139_s25 = scalar_lea.vmem %s92_s22, 3072  ;;  %p5144_p11 = scmp.lt.s32.totalorder %s92_s22, %s92_s22 }
  0x1f   :  { %p5140_p10 = scmp.ne.s32.totalorder %s92_s22, %s5139_s25  ;;  %p5145_p12 = scmp.lt.s32.totalorder %s5139_s25, %s5139_s25 }
  0x21   :  { %p5146_p13 = por %p5145_p12, %p5144_p11 }
  0x23   :  { %p5147_p0 = pnand %p5146_p13, %p5140_p10 }
  0x25   :  { %5150 = shalt.err (!%p5147_p0)
}
  0x26   :  { %s5311_s1 = smov 192   ;;  %s5312_s26 = smov 12  }
  0x27   :  { %97 = dma.hbm_to_vmem [thread:$0]  %s6378_s6, 3072, %s92_s22, [#allocation15], %s5311_s1, %s5311_s1, %s5312_s26  }
  0x28   :  { %s5159_s28 = scalar_lea.vmem %s32_s24, 128  ;;  %p5164_p2 = scmp.lt.s32.totalorder %s32_s24, %s32_s24 }
  0x29   :  { %p5160_p1 = scmp.ne.s32.totalorder %s32_s24, %s5159_s28  ;;  %p5165_p3 = scmp.lt.s32.totalorder %s5159_s28, %s5159_s28 }
  0x2b   :  { %p5166_p4 = por %p5165_p3, %p5164_p2 }
  0x2d   :  { %p5167_p5 = pnand %p5166_p4, %p5160_p1 }
  0x2f   :  { %5170 = shalt.err (!%p5167_p5)
}
  0x30   :  { %37 = dma.hbm_to_vmem [thread:$0]  %s6372_s0, 128, %s32_s24, [#allocation6], %s5307_s30, %s5307_s30, %s5308_s14  }
  0x31   :  { %s5313_s16 = smov [#allocation10]   ;;  %s5314_s18 = smov [#allocation13]  }
  0x32   :  { %s55_s17 = sshll.u32 %s5313_s16, 4  ;;  %s77_s19 = sshll.u32 %s5314_s18, 4  ;;  %s56_s17 = int_to_ptr.vmem [resolvable:$true] %s55_s17  ;;  %s78_s19 = int_to_ptr.vmem [resolvable:$true] %s77_s19 }
  0x33   :  { %s5179_s6 = scalar_lea.vmem %s56_s17, 1024  ;;  %p5184_p7 = scmp.lt.s32.totalorder %s56_s17, %s56_s17 }
  0x34   :  { %p5180_p6 = scmp.ne.s32.totalorder %s56_s17, %s5179_s6  ;;  %p5185_p8 = scmp.lt.s32.totalorder %s5179_s6, %s5179_s6 }
  0x36   :  { %p5186_p9 = por %p5185_p8, %p5184_p7 }
  0x38   :  { %p5187_p10 = pnand %p5186_p9, %p5180_p6 }
  0x3a   :  { %5190 = shalt.err (!%p5187_p10)
}
  0x3b   :  { %61 = dma.hbm_to_vmem [thread:$0]  %s6374_s2, 1024, %s56_s17, [#allocation9], %s5307_s30, %s5307_s30, %s5308_s14  }
  0x3c   :  { %s5199_s0 = scalar_lea.vmem %s78_s19, 3072  ;;  %p5204_p12 = scmp.lt.s32.totalorder %s78_s19, %s78_s19 }
  0x3d   :  { %p5200_p11 = scmp.ne.s32.totalorder %s78_s19, %s5199_s0  ;;  %p5205_p13 = scmp.lt.s32.totalorder %s5199_s0, %s5199_s0 }
  0x3f   :  { %p5206_p0 = por %p5205_p13, %p5204_p12 }
  0x41   :  { %p5207_p1 = pnand %p5206_p0, %p5200_p11 }
  0x43   :  { %5210 = shalt.err (!%p5207_p1)
}
  0x44   :  { %83 = dma.hbm_to_vmem [thread:$0]  %s6376_s4, 3072, %s78_s19, [#allocation12], %s5311_s1, %s5311_s1, %s5312_s26  }
  0x45   :  { %s5315_s24 = smov [#allocation16]   ;;  %s5316_s27 = smov [#allocation17]  }
  0x46   :  { %s105_s25 = sshll.u32 %s5315_s24, 4  ;;  %s119_s3 = sshll.u32 %s5316_s27, 4  ;;  %s106_s25 = int_to_ptr.vmem [resolvable:$true] %s105_s25  ;;  %s120_s3 = int_to_ptr.vmem [resolvable:$true] %s119_s3 }
  0x47   :  { %s5219_s2 = scalar_lea.vmem %s106_s25, 3072  ;;  %p5224_p3 = scmp.lt.s32.totalorder %s106_s25, %s106_s25 }
  0x48   :  { %p5220_p2 = scmp.ne.s32.totalorder %s106_s25, %s5219_s2  ;;  %p5225_p4 = scmp.lt.s32.totalorder %s5219_s2, %s5219_s2 }
  0x4a   :  { %p5226_p5 = por %p5225_p4, %p5224_p3 }
  0x4c   :  { %p5227_p6 = pnand %p5226_p5, %p5220_p2 }
  0x4e   :  { %5230 = shalt.err (!%p5227_p6)
}
  0x4f   :  { %111 = dma.hbm_to_vmem [thread:$0]  %s6380_s8, 3072, %s106_s25, [#allocation15], %s5311_s1, %s5311_s1, %s5312_s26  }
  0x50   :  { %s5239_s4 = scalar_lea.vmem %s120_s3, 1024  ;;  %p5244_p8 = scmp.lt.s32.totalorder %s120_s3, %s120_s3 }
  0x51   :  { %p5240_p7 = scmp.ne.s32.totalorder %s120_s3, %s5239_s4  ;;  %p5245_p9 = scmp.lt.s32.totalorder %s5239_s4, %s5239_s4 }
  0x53   :  { %p5246_p10 = por %p5245_p9, %p5244_p8 }
  0x55   :  { %p5247_p11 = pnand %p5246_p10, %p5240_p7 }
  0x57   :  { %5250 = shalt.err (!%p5247_p11)
}
  0x58   :  { %125 = dma.hbm_to_vmem [thread:$0]  %s6382_s10, 1024, %s120_s3, [#allocation18], %s5307_s30, %s5307_s30, %s5308_s14  }
  0x59   :  { %5291 = dma.done.wait [#allocation6], 128  }
  0x5a   :  { %5292 = vsyncadd [#allocation6], 4294967168 }
  0x5b   :  { %5293 = dma.done.wait [#allocation9], 2048  }
  0x5c   :  { %5294 = vsyncadd [#allocation9], 4294965248 }
  0x5d   :  { %5295 = dma.done.wait [#allocation12], 3088  }
  0x5e   :  { %5296 = vsyncadd [#allocation12], 4294964208 }
  0x5f   :  { %5297 = dma.done.wait [#allocation15], 6144  }
  0x60   :  { %5298 = vsyncadd [#allocation15], 4294961152 }
  0x61   :  { %5299 = dma.done.wait [#allocation18], 1024  }
  0x62   :  { %5300 = vsyncadd [#allocation18], 4294966272  ;;  %v6386_v0 = vmov 0.0   ;;  %vm5318_vm0 = vmmov 0   ;;  %v4638_v1 = vld [vmem:[#allocation10 + $0x38] sm:$0xff]   ;;  %v4639_v2 = vld [vmem:[#allocation10 + $0x30] sm:$0xff]  }
  0x63   :  { %4355 = vmatprep.subr.bf16.mxu1 %v6386_v0  ;;  %4371 = vmatprep.mubr.msk.bf16.mxu1 %vm5318_vm0, %v6386_v0  ;;  %v4640_v3 = vld [vmem:[#allocation10 + $0x28] sm:$0xff]   ;;  %v4641_v4 = vld [vmem:[#allocation10 + $0x20] sm:$0xff]   ;;  %v4642_v7 = vld [vmem:[#allocation10 + $0x18] sm:$0xff]   ;;  %v6388_v32 = vmov 0  }
  0x64   :  { %4375 = vmatprep.subr.bf16.mxu0 %v6386_v0  ;;  %4391 = vmatprep.mubr.msk.bf16.mxu0 %vm5318_vm0, %v6386_v0  ;;  %v4650_v5 = vld [vmem:[#allocation16 + $0xb0] ss:$12 sps:$4 sm:$0xff]   ;;  %v4654_v6 = vld [vmem:[#allocation16 + $0x98] ss:$12 sps:$4 sm:$0xff]   ;;  %v4658_v9 = vld [vmem:[#allocation16 + $0x80] ss:$12 sps:$4 sm:$0xff]  }
  0x65   :  { %4356 = vmatpush3.bf16.msra.mxu1 %v4638_v1  ;;  %4376 = vmatpush3.bf16.msra.mxu0 %v4650_v5  ;;  %v4643_v8 = vld [vmem:[#allocation10 + $0x10] sm:$0xff]   ;;  %v4644_v10 = vld [vmem:[#allocation10 + $0x8] sm:$0xff]   ;;  %v4645_v11 = vld [vmem:[#allocation10] sm:$0xff]  }
  0x66   :  { %4357 = vmatprep.subr.bf16.mxu1 %v6386_v0  ;;  %4377 = vmatprep.subr.bf16.mxu0 %v6386_v0  ;;  %v4649_v12 = vld [vmem:[#allocation16 + $0xac] ss:$12 sps:$4 sm:$0xff]   ;;  %v4647_v14 = vld [vmem:[#allocation16 + $0xa8] ss:$12 sps:$4 sm:$0xff]   ;;  %v4651_v16 = vld [vmem:[#allocation16 + $0x90] ss:$12 sps:$4 sm:$0xff]  }
  0x67   :  { %v4646_v13 = vld [vmem:[#allocation5] sm:$0xff]   ;;  %v4661_v19 = vld [vmem:[#allocation16 + $0x64] ss:$12 sps:$4 sm:$0xff]   ;;  %v4659_v20 = vld [vmem:[#allocation16 + $0x60] ss:$12 sps:$4 sm:$0xff]  }
  0x68   :  { %v4653_v15 = vld [vmem:[#allocation16 + $0x94] ss:$12 sps:$4 sm:$0xff]   ;;  %v4657_v17 = vld [vmem:[#allocation16 + $0x7c] ss:$12 sps:$4 sm:$0xff]   ;;  %v4655_v18 = vld [vmem:[#allocation16 + $0x78] ss:$12 sps:$4 sm:$0xff]  }
  0x69   :  { %4358 = vmatpush3.bf16.msra.mxu1 %v4639_v2  ;;  %4378 = vmatpush3.bf16.msra.mxu0 %v4654_v6  ;;  %v4662_v21 = vld [vmem:[#allocation16 + $0x68] ss:$12 sps:$4 sm:$0xff]   ;;  %v4665_v22 = vld [vmem:[#allocation16 + $0x4c] ss:$12 sps:$4 sm:$0xff]   ;;  %v4666_v24 = vld [vmem:[#allocation16 + $0x50] ss:$12 sps:$4 sm:$0xff]  }
  0x6a   :  { %4359 = vmatprep.subr.bf16.mxu1 %v6386_v0  ;;  %4379 = vmatprep.subr.bf16.mxu0 %v6386_v0  ;;  %v4663_v23 = vld [vmem:[#allocation16 + $0x48] ss:$12 sps:$4 sm:$0xff]   ;;  %v4667_v25 = vld [vmem:[#allocation16 + $0x30] ss:$12 sps:$4 sm:$0xff]   ;;  %v4670_v27 = vld [vmem:[#allocation16 + $0x38] ss:$12 sps:$4 sm:$0xff]  }
  0x6b   :  { %v4669_v26 = vld [vmem:[#allocation16 + $0x34] ss:$12 sps:$4 sm:$0xff]   ;;  %v4673_v28 = vld [vmem:[#allocation16 + $0x1c] ss:$12 sps:$4 sm:$0xff]   ;;  %v4671_v29 = vld [vmem:[#allocation16 + $0x18] ss:$12 sps:$4 sm:$0xff]  }
  0x6c   :  { %v4674_v30 = vld [vmem:[#allocation16 + $0x20] ss:$12 sps:$4 sm:$0xff]   ;;  %v4677_v31 = vld [vmem:[#allocation16 + $0x4] ss:$12 sps:$4 sm:$0xff]   ;;  %v4678_v34 = vld [vmem:[#allocation16 + $0x8] ss:$12 sps:$4 sm:$0xff]  }
  0x6d   :  { %4360 = vmatpush3.bf16.msra.mxu1 %v4640_v3  ;;  %4380 = vmatpush3.bf16.msra.mxu0 %v4658_v9  ;;  %v4675_v33 = vld [vmem:[#allocation16] ss:$12 sps:$4 sm:$0xff]   ;;  %v4682_v36 = vld [vmem:[#allocation13 + $0xb0] ss:$12 sps:$4 sm:$0xff]   ;;  %v4679_v46 = vld [vmem:[#allocation13 + $0xa8] ss:$12 sps:$4 sm:$0xff]  }
  0x6e   :  { %4361 = vmatprep.subr.bf16.mxu1 %v6386_v0  ;;  %4381 = vmatprep.subr.bf16.mxu0 %v6386_v0  ;;  %v4681_v35 = vld [vmem:[#allocation13 + $0xac] ss:$12 sps:$4 sm:$0xff]   ;;  %v3934_v37 = vld [vmem:[#allocation11] ss:$0 sm:$0xff]  ;;  %v4685_v48 = vld [vmem:[#allocation13 + $0x94] ss:$12 sps:$4 sm:$0xff]  }
  0x6f   :  { %v4686_v49 = vld [vmem:[#allocation13 + $0x98] ss:$12 sps:$4 sm:$0xff]   ;;  %v4683_v51 = vld [vmem:[#allocation13 + $0x90] ss:$12 sps:$4 sm:$0xff]   ;;  %v4690_v53 = vld [vmem:[#allocation13 + $0x80] ss:$12 sps:$4 sm:$0xff]  }
  0x70   :  { %v4711_v50 = vld [vmem:[#allocation8] sm:$0xff]   ;;  %v4694_v56 = vld [vmem:[#allocation13 + $0x68] ss:$12 sps:$4 sm:$0xff]   ;;  %v4697_v58 = vld [vmem:[#allocation13 + $0x4c] ss:$12 sps:$4 sm:$0xff]  }
  0x71   :  { %4362 = vmatpush3.bf16.msra.mxu1 %v4641_v4  ;;  %4382 = vmatpush3.bf16.msra.mxu0 %v4662_v21  ;;  %v4689_v52 = vld [vmem:[#allocation13 + $0x7c] ss:$12 sps:$4 sm:$0xff]   ;;  %v4687_v54 = vld [vmem:[#allocation13 + $0x78] ss:$12 sps:$4 sm:$0xff]   ;;  %v4691_v57 = vld [vmem:[#allocation13 + $0x60] ss:$12 sps:$4 sm:$0xff]  }
  0x72   :  { %4363 = vmatprep.subr.bf16.mxu1 %v6386_v0  ;;  %4383 = vmatprep.subr.bf16.mxu0 %v6386_v0  ;;  %v4693_v55 = vld [vmem:[#allocation13 + $0x64] ss:$12 sps:$4 sm:$0xff]   ;;  %v4695_v60 = vld [vmem:[#allocation13 + $0x48] ss:$12 sps:$4 sm:$0xff]   ;;  %v4706_v2 = vld [vmem:[#allocation13 + $0x20] ss:$12 sps:$4 sm:$0xff]  }
  0x73   :  { %v4698_v59 = vld [vmem:[#allocation13 + $0x50] ss:$12 sps:$4 sm:$0xff]   ;;  %v4701_v61 = vld [vmem:[#allocation13 + $0x34] ss:$12 sps:$4 sm:$0xff]   ;;  %v4702_v62 = vld [vmem:[#allocation13 + $0x38] ss:$12 sps:$4 sm:$0xff]  }
  0x74   :  { %v4699_v63 = vld [vmem:[#allocation13 + $0x30] ss:$12 sps:$4 sm:$0xff]   ;;  %v4703_v3 = vld [vmem:[#allocation13 + $0x18] ss:$12 sps:$4 sm:$0xff]   ;;  %v4710_v5 = vld [vmem:[#allocation13 + $0x8] ss:$12 sps:$4 sm:$0xff]  }
  0x75   :  { %4364 = vmatpush3.bf16.msra.mxu1 %v4642_v7  ;;  %4384 = vmatpush3.bf16.msra.mxu0 %v4666_v24  ;;  %v4705_v1 = vld [vmem:[#allocation13 + $0x1c] ss:$12 sps:$4 sm:$0xff]   ;;  %v4709_v4 = vld [vmem:[#allocation13 + $0x4] ss:$12 sps:$4 sm:$0xff]   ;;  %v4707_v6 = vld [vmem:[#allocation13] ss:$12 sps:$4 sm:$0xff]  }
  0x76   :  { %4365 = vmatprep.subr.bf16.mxu1 %v6386_v0  ;;  %4385 = vmatprep.subr.bf16.mxu0 %v6386_v0  ;;  %v5471_v7 = vld [vmem:[#allocation14 + $0xac] ss:$12 sps:$4 sm:$0xff]   ;;  %v5473_v9 = vld [vmem:[#allocation14 + $0xa8] ss:$12 sps:$4 sm:$0xff]  }
  0x77   :  { %v5495_v21 = vld [vmem:[#allocation14 + $0x60] ss:$12 sps:$4 sm:$0xff]  }
  0x78   :  { %v4730_v24 = vld [vmem:[#allocation8 + $0x28] sm:$0xff]  }
  0x79   :  { %4366 = vmatpush3.bf16.msra.mxu1 %v4643_v8  ;;  %4386 = vmatpush3.bf16.msra.mxu0 %v4670_v27  ;;  %v4712_v8 = vld [vmem:[#allocation8 + $0x8] sm:$0xff]   ;;  %v4738_v27 = vld [vmem:[#allocation8 + $0x30] sm:$0xff]  }
  0x7a   :  { %4367 = vmatprep.subr.bf16.mxu1 %v6386_v0  ;;  %4387 = vmatprep.subr.bf16.mxu0 %v6386_v0 }
  0x7d   :  { %4368 = vmatpush3.bf16.msra.mxu1 %v4644_v10  ;;  %4388 = vmatpush3.bf16.msra.mxu0 %v4674_v30  ;;  %v4719_v10 = vld [vmem:[#allocation14 + $0xb0] ss:$12 sps:$4 sm:$0xff]  }
  0x7e   :  { %4369 = vmatprep.subr.bf16.mxu1 %v6386_v0  ;;  %4389 = vmatprep.subr.bf16.mxu0 %v6386_v0  ;;  %v5513_v30 = vld [vmem:[#allocation14 + $0x1c] ss:$12 sps:$4 sm:$0xff]  }
  0x81   :  { %4370 = vmatpush3.bf16.msra.mxu1 %v4645_v11  ;;  %4390 = vmatpush3.bf16.msra.mxu0 %v4678_v34  ;;  %v5476_v11 = vld [vmem:[#allocation14 + $0x94] ss:$12 sps:$4 sm:$0xff]   ;;  %v5521_v34 = vld [vmem:[#allocation14 + $0x4] ss:$12 sps:$4 sm:$0xff]  }
  0x82   :  { %455 = vmatprep.subr.bf16.mxu1 %v4649_v12  ;;  %4395 = vmatprep.subr.bf16.mxu0 %v4682_v36  ;;  %v4720_v12 = vld [vmem:[#allocation8 + $0x10] sm:$0xff]  }
  0x84   :  { %4372 = vmatmul.mubr.bf16.vlgmr.msra.gmra.mxu1 %v4646_v13  ;;  %v5480_v13 = vld [vmem:[#allocation14 + $0x90] ss:$12 sps:$4 sm:$0xff]  }
  0x85   :  { %456 = vmatpush1.bf16.msra.mxu1 %v4647_v14  ;;  %487 = vmatprep.mubr.bf16.mxu1 %v6388_v32  ;;  %v4728_v14 = vld [vmem:[#allocation14 + $0x98] ss:$12 sps:$4 sm:$0xff]  }
  0x86   :  { %457 = vmatprep.subr.bf16.mxu1 %v4653_v15  ;;  %v5484_v15 = vld [vmem:[#allocation14 + $0x7c] ss:$12 sps:$4 sm:$0xff]  }
  0x89   :  { %458 = vmatpush1.bf16.msra.mxu1 %v4651_v16  ;;  %v4721_v16 = vld [vmem:[#allocation8 + $0x18] sm:$0xff]  }
  0x8a   :  { %459 = vmatprep.subr.bf16.mxu1 %v4657_v17  ;;  %v5488_v17 = vld [vmem:[#allocation14 + $0x78] ss:$12 sps:$4 sm:$0xff]  }
  0x8d   :  { %460 = vmatpush1.bf16.msra.mxu1 %v4655_v18  ;;  %v5491_v18 = vld [vmem:[#allocation14 + $0x64] ss:$12 sps:$4 sm:$0xff]  }
  0x8e   :  { %461 = vmatprep.subr.bf16.mxu1 %v4661_v19  ;;  %v4729_v19 = vld [vmem:[#allocation8 + $0x20] sm:$0xff]  }
  0x91   :  { %462 = vmatpush1.bf16.msra.mxu1 %v4659_v20  ;;  %v4737_v20 = vld [vmem:[#allocation14 + $0x80] ss:$12 sps:$4 sm:$0xff]  }
  0x92   :  { %463 = vmatprep.subr.bf16.mxu1 %v4665_v22  ;;  %v5499_v22 = vld [vmem:[#allocation14 + $0x4c] ss:$12 sps:$4 sm:$0xff]  }
  0x95   :  { %464 = vmatpush1.bf16.msra.mxu1 %v4663_v23  ;;  %v4746_v23 = vld [vmem:[#allocation14 + $0x68] ss:$12 sps:$4 sm:$0xff]  }
  0x96   :  { %465 = vmatprep.subr.bf16.mxu1 %v4669_v26  ;;  %v5506_v26 = vld [vmem:[#allocation14 + $0x34] ss:$12 sps:$4 sm:$0xff]  }
  0x99   :  { %466 = vmatpush1.bf16.msra.mxu1 %v4667_v25  ;;  %v5503_v25 = vld [vmem:[#allocation14 + $0x48] ss:$12 sps:$4 sm:$0xff]  }
  0x9a   :  { %467 = vmatprep.subr.bf16.mxu1 %v4673_v28  ;;  %v4747_v28 = vld [vmem:[#allocation14 + $0x50] ss:$12 sps:$4 sm:$0xff]  }
  0x9d   :  { %468 = vmatpush1.bf16.msra.mxu1 %v4671_v29  ;;  %v5509_v29 = vld [vmem:[#allocation14 + $0x30] ss:$12 sps:$4 sm:$0xff]  }
  0x9e   :  { %469 = vmatprep.subr.bf16.mxu1 %v4677_v31  ;;  %v4739_v31 = vld [vmem:[#allocation8 + $0x38] sm:$0xff]  }
  0xa1   :  { %470 = vmatpush1.bf16.msra.mxu1 %v4675_v33  ;;  %v5517_v33 = vld [vmem:[#allocation14 + $0x18] ss:$12 sps:$4 sm:$0xff]  }
  0xa2   :  { %780 = vmatprep.subr.bf16.mxu1 %v4681_v35  ;;  %v4748_v35 = vld [vmem:[#allocation14 + $0x38] ss:$12 sps:$4 sm:$0xff]  }
 0x144   :  { %v266_v38 = vpop.f32.mrf.mxu1 }
 0x145   :  { %v267_v39 = vadd.f32 %v3934_v37, %v266_v38  ;;  %v4750_v38 = vld [vmem:[#allocation14 + $0x8] ss:$12 sps:$4 sm:$0xff]  }
 0x146   :  { %v4373_v40 = vpop.f32.mrf.mxu1 }
 0x147   :  { %4863 = vtanh.f32 %v267_v39  ;;  %v4751_v39 = vld [vmem:[#allocation14 + $0xb0] ss:$12 sps:$4 sm:$0xff]   ;;  %v4752_v40 = vld [vmem:[#allocation14 + $0x98] ss:$12 sps:$4 sm:$0xff]  }
 0x148   :  { %v269_v41 = vpop.f32.mrf.mxu1 }
 0x149   :  { %v270_v42 = vadd.f32 %v3934_v37, %v269_v41  ;;  %v4749_v37 = vld [vmem:[#allocation14 + $0x20] ss:$12 sps:$4 sm:$0xff]  }
 0x14a   :  { %v4374_v43 = vpop.f32.mrf.mxu1  ;;  %v4753_v41 = vld [vmem:[#allocation14 + $0x80] ss:$12 sps:$4 sm:$0xff]  }
 0x14b   :  { %4865 = vtanh.f32 %v270_v42  ;;  %v4754_v42 = vld [vmem:[#allocation14 + $0x68] ss:$12 sps:$4 sm:$0xff]   ;;  %v4755_v43 = vld [vmem:[#allocation14 + $0x50] ss:$12 sps:$4 sm:$0xff]  }
 0x154   :  { %v5460_v44 = vpop.eup %4863 }
 0x158   :  { %v5462_v45 = vpop.eup %4865 }
 0x159   :  { %v5466_v47 = vpack.c.bf16 %v5462_v45, %v5460_v44 }
 0x15b   :  { %488 = vmatmul.mubr.bf16.vlgmr.msra.gmra.mxu1 %v5466_v47  ;;  %4392 = vmatmul.mubr.bf16.vlgmr.msra.gmra.mxu0 %v5466_v47 }
 0x15c   :  { %781 = vmatpush1.bf16.msra.mxu1 %v4679_v46  ;;  %4396 = vmatpush3.bf16.msra.mxu0 %v4682_v36  ;;  %v5524_v36 = vld [vmem:[#allocation14] ss:$12 sps:$4 sm:$0xff]   ;;  %v4756_v46 = vld [vmem:[#allocation14 + $0x38] ss:$12 sps:$4 sm:$0xff]  }
 0x15d   :  { %782 = vmatprep.subr.bf16.mxu1 %v4685_v48  ;;  %4397 = vmatprep.subr.bf16.mxu0 %v4686_v49  ;;  %v4758_v48 = vld [vmem:[#allocation14 + $0x8] ss:$12 sps:$4 sm:$0xff]  }
 0x15e   :  { %812 = vmatprep.mubr.bf16.mxu1 %v6388_v32  ;;  %4411 = vmatprep.mubr.bf16.mxu0 %v4711_v50 }
 0x160   :  { %783 = vmatpush1.bf16.msra.mxu1 %v4683_v51  ;;  %4398 = vmatpush3.bf16.msra.mxu0 %v4686_v49 }
 0x161   :  { %784 = vmatprep.subr.bf16.mxu1 %v4689_v52  ;;  %4399 = vmatprep.subr.bf16.mxu0 %v4690_v53 }
 0x164   :  { %785 = vmatpush1.bf16.msra.mxu1 %v4687_v54  ;;  %4400 = vmatpush3.bf16.msra.mxu0 %v4690_v53  ;;  %v312_v54 = vlaneseq }
 0x165   :  { %786 = vmatprep.subr.bf16.mxu1 %v4693_v55  ;;  %4401 = vmatprep.subr.bf16.mxu0 %v4694_v56 }
 0x168   :  { %787 = vmatpush1.bf16.msra.mxu1 %v4691_v57  ;;  %4402 = vmatpush3.bf16.msra.mxu0 %v4694_v56  ;;  %v313_v56 = vshrl.u32 %v312_v54, 7  ;;  %v587_v57 = vld [vmem:[%s6377_s5] sm:$0x7] }
 0x169   :  { %788 = vmatprep.subr.bf16.mxu1 %v4697_v58  ;;  %4403 = vmatprep.subr.bf16.mxu0 %v4698_v59 }
 0x16c   :  { %789 = vmatpush1.bf16.msra.mxu1 %v4695_v60  ;;  %4404 = vmatpush3.bf16.msra.mxu0 %v4698_v59  ;;  %v5581_v59 = vsub.s32 2, %v313_v56 }
 0x16d   :  { %790 = vmatprep.subr.bf16.mxu1 %v4701_v61  ;;  %4405 = vmatprep.subr.bf16.mxu0 %v4702_v62 }
 0x16e   :  { %v5584_v60 = vrot.slane %v587_v57, %v5581_v59 }
 0x170   :  { %791 = vmatpush1.bf16.msra.mxu1 %v4699_v63  ;;  %4406 = vmatpush3.bf16.msra.mxu0 %v4702_v62 }
 0x171   :  { %792 = vmatprep.subr.bf16.mxu1 %v4705_v1  ;;  %4407 = vmatprep.subr.bf16.mxu0 %v4706_v2 }
 0x174   :  { %793 = vmatpush1.bf16.msra.mxu1 %v4703_v3  ;;  %4408 = vmatpush3.bf16.msra.mxu0 %v4706_v2 }
 0x175   :  { %794 = vmatprep.subr.bf16.mxu1 %v4709_v4  ;;  %4409 = vmatprep.subr.bf16.mxu0 %v4710_v5 }
 0x178   :  { %795 = vmatpush1.bf16.msra.mxu1 %v4707_v6  ;;  %4410 = vmatpush3.bf16.msra.mxu0 %v4710_v5  ;;  %v5599_v6 = vsub.s32 0, %v313_v56 }
 0x179   :  { %1224 = vmatprep.subr.bf16.mxu0 %v5471_v7  ;;  %4427 = vmatprep.subr.bf16.mxu1 %v6386_v0 }
 0x17b   :  { %813 = vmatmul.mubr.bf16.vlgmr.msra.gmra.mxu1 %v4711_v50  ;;  %4412 = vmatmul.mubr.bf16.vlgmr.msra.gmra.mxu0 %v4712_v8 }
 0x17c   :  { %1225 = vmatpush1.bf16.msra.mxu0 %v5473_v9  ;;  %4428 = vmatpush3.bf16.msra.mxu1 %v4719_v10 }
 0x17d   :  { %1226 = vmatprep.subr.bf16.mxu0 %v5476_v11  ;;  %822 = vmatprep.mubr.bf16.mxu1 %v6388_v32 }
 0x17e   :  { %4415 = vmatprep.mubr.bf16.mxu0 %v4720_v12  ;;  %4429 = vmatprep.subr.bf16.mxu1 %v6386_v0 }
 0x180   :  { %1227 = vmatpush1.bf16.msra.mxu0 %v5480_v13  ;;  %4430 = vmatpush3.bf16.msra.mxu1 %v4728_v14  ;;  %v318_v14 = vsub.s32 1, %v313_v56 }
 0x181   :  { %1228 = vmatprep.subr.bf16.mxu0 %v5484_v15  ;;  %4431 = vmatprep.subr.bf16.mxu1 %v6386_v0 }
 0x183   :  { %823 = vmatmul.mubr.bf16.gmra.mxu1 %v4712_v8  ;;  %4416 = vmatmul.mubr.bf16.gmra.mxu0 %v4721_v16 }
 0x184   :  { %1229 = vmatpush1.bf16.msra.mxu0 %v5488_v17  ;;  %832 = vmatprep.mubr.bf16.mxu1 %v6388_v32 }
 0x185   :  { %1230 = vmatprep.subr.bf16.mxu0 %v5491_v18  ;;  %4419 = vmatprep.mubr.bf16.mxu0 %v4729_v19 }
 0x186   :  { %4432 = vmatpush3.bf16.msra.mxu1 %v4737_v20  ;;  %v5611_v20 = vrot.slane %v587_v57, %v318_v14 }
 0x187   :  { %4433 = vmatprep.subr.bf16.mxu1 %v6386_v0 }
 0x188   :  { %1231 = vmatpush1.bf16.msra.mxu0 %v5495_v21 }
 0x189   :  { %1232 = vmatprep.subr.bf16.mxu0 %v5499_v22 }
 0x18a   :  { %4434 = vmatpush3.bf16.msra.mxu1 %v4746_v23 }
 0x18b   :  { %833 = vmatmul.mubr.bf16.gmra.mxu1 %v4720_v12  ;;  %4420 = vmatmul.mubr.bf16.gmra.mxu0 %v4730_v24  ;;  %v5609_v12 = vrot.slane %v587_v57, %v5599_v6 }
 0x18c   :  { %1233 = vmatpush1.bf16.msra.mxu0 %v5503_v25  ;;  %842 = vmatprep.mubr.bf16.mxu1 %v6388_v32 }
 0x18d   :  { %1234 = vmatprep.subr.bf16.mxu0 %v5506_v26  ;;  %4423 = vmatprep.mubr.bf16.mxu0 %v4738_v27 }
 0x18e   :  { %4435 = vmatprep.subr.bf16.mxu1 %v6386_v0 }
 0x18f   :  { %4436 = vmatpush3.bf16.msra.mxu1 %v4747_v28 }
 0x190   :  { %1235 = vmatpush1.bf16.msra.mxu0 %v5509_v29  ;;  %4437 = vmatprep.subr.bf16.mxu1 %v6386_v0 }
 0x191   :  { %1236 = vmatprep.subr.bf16.mxu0 %v5513_v30 }
 0x193   :  { %843 = vmatmul.mubr.bf16.gmra.mxu1 %v4721_v16  ;;  %4424 = vmatmul.mubr.bf16.gmra.mxu0 %v4739_v31 }
 0x194   :  { %1237 = vmatpush1.bf16.msra.mxu0 %v5517_v33  ;;  %852 = vmatprep.mubr.bf16.mxu1 %v6388_v32 }
 0x195   :  { %1238 = vmatprep.subr.bf16.mxu0 %v5521_v34  ;;  %1256 = vmatprep.mubr.bf16.mxu0 %v6388_v32 }
 0x196   :  { %4438 = vmatpush3.bf16.msra.mxu1 %v4748_v35 }
 0x197   :  { %4439 = vmatprep.subr.bf16.mxu1 %v6386_v0 }
 0x198   :  { %1239 = vmatpush1.bf16.msra.mxu0 %v5524_v36 }
 0x199   :  { %1530 = vmatprep.subr.bf16.mxu0 %v5471_v7 }
 0x19a   :  { %4440 = vmatpush3.bf16.msra.mxu1 %v4749_v37 }
 0x19b   :  { %853 = vmatmul.mubr.bf16.gmra.mxu1 %v4729_v19  ;;  %1257 = vmatmul.mubr.bf16.vlgmr.msra.gmra.mxu0 %v5466_v47 }
 0x19c   :  { %862 = vmatprep.mubr.bf16.mxu1 %v6388_v32  ;;  %4441 = vmatprep.subr.bf16.mxu1 %v6386_v0 }
 0x19d   :  { %1531 = vmatpush1.bf16.msra.mxu0 %v5473_v9  ;;  %1562 = vmatprep.mubr.bf16.mxu0 %v6388_v32 }
 0x19e   :  { %4442 = vmatpush3.bf16.msra.mxu1 %v4750_v38  ;;  %1532 = vmatprep.subr.bf16.mxu0 %v5476_v11 }
 0x19f   :  { %4447 = vmatprep.subr.bf16.mxu1 %v6386_v0 }
 0x1a1   :  { %1533 = vmatpush1.bf16.msra.mxu0 %v5480_v13 }
 0x1a2   :  { %1534 = vmatprep.subr.bf16.mxu0 %v5484_v15 }
 0x1a3   :  { %863 = vmatmul.mubr.bf16.gmra.mxu1 %v4730_v24 }
 0x1a4   :  { %872 = vmatprep.mubr.bf16.mxu1 %v6388_v32 }
 0x1a5   :  { %1535 = vmatpush1.bf16.msra.mxu0 %v5488_v17 }
 0x1a6   :  { %1536 = vmatprep.subr.bf16.mxu0 %v5491_v18 }
 0x1a9   :  { %1537 = vmatpush1.bf16.msra.mxu0 %v5495_v21 }
 0x1aa   :  { %1538 = vmatprep.subr.bf16.mxu0 %v5499_v22 }
 0x1ab   :  { %873 = vmatmul.mubr.bf16.gmra.mxu1 %v4738_v27 }
 0x1ac   :  { %882 = vmatprep.mubr.bf16.mxu1 %v6388_v32 }
 0x1ad   :  { %1539 = vmatpush1.bf16.msra.mxu0 %v5503_v25 }
 0x1ae   :  { %1540 = vmatprep.subr.bf16.mxu0 %v5506_v26 }
 0x1b1   :  { %1541 = vmatpush1.bf16.msra.mxu0 %v5509_v29 }
 0x1b2   :  { %1542 = vmatprep.subr.bf16.mxu0 %v5513_v30 }
 0x1b3   :  { %883 = vmatmul.mubr.bf16.gmra.mxu1 %v4739_v31 }
 0x1b4   :  { %4443 = vmatprep.mubr.msk.bf16.mxu1 %vm5318_vm0, %v6386_v0 }
 0x1b5   :  { %1543 = vmatpush1.bf16.msra.mxu0 %v5517_v33 }
 0x1b6   :  { %1544 = vmatprep.subr.bf16.mxu0 %v5521_v34 }
 0x1b9   :  { %1545 = vmatpush1.bf16.msra.mxu0 %v5524_v36 }
 0x1ba   :  { %1837 = vmatprep.subr.bf16.mxu0 %v5471_v7 }
 0x1bb   :  { %4444 = vmatmul.mubr.bf16.vlgmr.msra.gmra.mxu1 %v5466_v47  ;;  %v4757_v47 = vld [vmem:[#allocation14 + $0x20] ss:$12 sps:$4 sm:$0xff]  }
 0x1bc   :  { %4463 = vmatprep.mubr.msk.bf16.mxu1 %vm5318_vm0, %v6386_v0  ;;  %4448 = vmatpush3.bf16.msra.mxu1 %v4751_v39 }
 0x1bd   :  { %4449 = vmatprep.subr.bf16.mxu1 %v6386_v0 }
 0x1c0   :  { %4450 = vmatpush3.bf16.msra.mxu1 %v4752_v40 }
 0x1c1   :  { %4451 = vmatprep.subr.bf16.mxu1 %v6386_v0 }
 0x1c4   :  { %4452 = vmatpush3.bf16.msra.mxu1 %v4753_v41 }
 0x1c5   :  { %4453 = vmatprep.subr.bf16.mxu1 %v6386_v0 }
 0x1c8   :  { %4454 = vmatpush3.bf16.msra.mxu1 %v4754_v42 }
 0x1c9   :  { %4455 = vmatprep.subr.bf16.mxu1 %v6386_v0 }
 0x1cc   :  { %4456 = vmatpush3.bf16.msra.mxu1 %v4755_v43 }
 0x1cd   :  { %4457 = vmatprep.subr.bf16.mxu1 %v6386_v0 }
 0x1d0   :  { %4458 = vmatpush3.bf16.msra.mxu1 %v4756_v46 }
 0x1d1   :  { %4459 = vmatprep.subr.bf16.mxu1 %v6386_v0 }
 0x1d4   :  { %4460 = vmatpush3.bf16.msra.mxu1 %v4757_v47 }
 0x1d5   :  { %4461 = vmatprep.subr.bf16.mxu1 %v6386_v0 }
 0x1d8   :  { %4462 = vmatpush3.bf16.msra.mxu1 %v4758_v48 }
 0x1d9   :  { %4467 = vmatprep.subr.bf16.mxu1 %v6386_v0 }
 0x21b   :  { %v5566_v49 = vpop.f32.mrf.mxu0  ;;  %v5572_v53 = vpop.f32.mrf.mxu1 }
 0x21d   :  { %v4393_v50 = vpop.f32.mrf.mxu0  ;;  %v5574_v55 = vpop.f32.mrf.mxu1 }
 0x21f   :  { %v5569_v51 = vpop.f32.mrf.mxu0  ;;  %v5579_v58 = vpop.f32.mrf.mxu1 }
 0x221   :  { %v4394_v52 = vpop.f32.mrf.mxu0  ;;  %v5586_v61 = vpop.f32.mrf.mxu1 }
 0x23b   :  { %v5588_v62 = vpop.f32.mrf.mxu1  ;;  %v4413_v63 = vpop.f32.mrf.mxu0 }
 0x23c   :  { %v5591_v1 = vadd.f32 %v4413_v63, %v5584_v60 }
 0x23d   :  { %v5593_v2 = vpop.f32.mrf.mxu1  ;;  %v5595_v3 = vpop.f32.mrf.mxu0 }
 0x23f   :  { %v5597_v4 = vpop.f32.mrf.mxu1  ;;  %v4414_v5 = vpop.f32.mrf.mxu0 }
 0x240   :  { %v5602_v7 = vadd.f32 %v4414_v5, %v5584_v60 }
 0x241   :  { %v5604_v8 = vpop.f32.mrf.mxu1  ;;  %v5606_v10 = vpop.f32.mrf.mxu0 }
 0x243   :  { %v824_v16 = vpop.f32.mrf.mxu1  ;;  %v4417_v19 = vpop.f32.mrf.mxu0 }
 0x244   :  { %v5614_v23 = vadd.f32 %v824_v16, %v5609_v12  ;;  %v5617_v24 = vadd.f32 %v4417_v19, %v5584_v60 }
 0x245   :  { %v826_v27 = vpop.f32.mrf.mxu1  ;;  %v943_v28 = vpop.f32.mrf.mxu0 }
 0x246   :  { %6390 = vst [vmem:[#allocation29_spill] sm:$0xff] %v5617_v24  ;;  %v5620_v31 = vadd.f32 %v826_v27, %v5611_v20  ;;  %v5623_v35 = vadd.f32 %v943_v28, %v5584_v60 }
 0x247   :  { %v828_v37 = vpop.f32.mrf.mxu1  ;;  %v4418_v38 = vpop.f32.mrf.mxu0 }
 0x248   :  { %6391 = vst [vmem:[#allocation30_spill] sm:$0xff] %v5623_v35  ;;  %v5626_v39 = vadd.f32 %v828_v37, %v5609_v12  ;;  %v5629_v40 = vadd.f32 %v4418_v38, %v5584_v60 }
 0x249   :  { %v830_v41 = vpop.f32.mrf.mxu1  ;;  %v946_v42 = vpop.f32.mrf.mxu0 }
 0x24a   :  { %6392 = vst [vmem:[#allocation31_spill] sm:$0xff] %v5629_v40  ;;  %v5632_v43 = vadd.f32 %v830_v41, %v5611_v20  ;;  %v5635_v46 = vadd.f32 %v946_v42, %v5584_v60 }
 0x24b   :  { %v834_v47 = vpop.f32.mrf.mxu1  ;;  %v4421_v48 = vpop.f32.mrf.mxu0 }
 0x24c   :  { %6393 = vst [vmem:[#allocation32_spill] sm:$0xff] %v5635_v46  ;;  %v5638_v50 = vadd.f32 %v834_v47, %v5609_v12  ;;  %v5641_v52 = vadd.f32 %v4421_v48, %v5584_v60 }
 0x24d   :  { %v836_v54 = vpop.f32.mrf.mxu1  ;;  %v959_v56 = vpop.f32.mrf.mxu0 }
 0x24e   :  { %6394 = vst [vmem:[#allocation33_spill] sm:$0xff] %v5641_v52  ;;  %v5644_v57 = vadd.f32 %v836_v54, %v5611_v20  ;;  %v5647_v63 = vadd.f32 %v959_v56, %v5584_v60 }
 0x24f   :  { %v838_v5 = vpop.f32.mrf.mxu1  ;;  %v4422_v16 = vpop.f32.mrf.mxu0 }
 0x250   :  { %6395 = vst [vmem:[#allocation34_spill] sm:$0xff] %v5647_v63  ;;  %v5650_v19 = vadd.f32 %v838_v5, %v5609_v12  ;;  %v5653_v27 = vadd.f32 %v4422_v16, %v5584_v60 }
 0x251   :  { %v840_v28 = vpop.f32.mrf.mxu1  ;;  %v962_v37 = vpop.f32.mrf.mxu0 }
 0x252   :  { %6396 = vst [vmem:[#allocation35_spill] sm:$0xff] %v5653_v27  ;;  %v5656_v38 = vadd.f32 %v840_v28, %v5611_v20  ;;  %v5659_v41 = vadd.f32 %v962_v37, %v5584_v60 }
 0x253   :  { %v844_v42 = vpop.f32.mrf.mxu1  ;;  %v4425_v47 = vpop.f32.mrf.mxu0 }
 0x254   :  { %6397 = vst [vmem:[#allocation36_spill] sm:$0xff] %v5659_v41  ;;  %v5662_v48 = vadd.f32 %v844_v42, %v5609_v12  ;;  %v5665_v54 = vadd.f32 %v4425_v47, %v5584_v60  ;;  %v5682_v42 = vld [vmem:[%s6379_s7] sm:$0x7] }
 0x255   :  { %v846_v56 = vpop.f32.mrf.mxu1  ;;  %v975_v5 = vpop.f32.mrf.mxu0  ;;  %v5710_v24 = vrot.slane %v5682_v42, %v5599_v6 }
 0x256   :  { %6398 = vst [vmem:[#allocation37_spill] sm:$0xff] %v5662_v48  ;;  %6399 = vst [vmem:[#allocation38_spill] sm:$0xff] %v5665_v54  ;;  %v5668_v16 = vadd.f32 %v846_v56, %v5611_v20  ;;  %v5671_v0 = vadd.f32 %v975_v5, %v5584_v60  ;;  %v5685_v56 = vrot.slane %v5682_v42, %v318_v14 }
 0x257   :  { %v848_v28 = vpop.f32.mrf.mxu1  ;;  %v4426_v32 = vpop.f32.mrf.mxu0 }
 0x258   :  { %6400 = vst [vmem:[#allocation39_spill] sm:$0xff] %v5668_v16  ;;  %6401 = vst [vmem:[#allocation40_spill] sm:$0xff] %v5671_v0  ;;  %v5674_v37 = vadd.f32 %v848_v28, %v5609_v12  ;;  %v5677_v27 = vadd.f32 %v4426_v32, %v5584_v60  ;;  %v5696_v32 = vld [vmem:[%s6381_s9] sm:$0x7] }
 0x259   :  { %v850_v47 = vpop.f32.mrf.mxu1  ;;  %v978_v54 = vpop.f32.mrf.mxu0  ;;  %v319_v52 = vrot.slane %v5696_v32, %v318_v14 }
 0x25a   :  { %6402 = vst [vmem:[#allocation41_spill] sm:$0xff] %v5674_v37  ;;  %6403 = vst [vmem:[#allocation42_spill] sm:$0xff] %v5677_v27  ;;  %v5688_v5 = vadd.f32 %v850_v47, %v5611_v20  ;;  %v5691_v0 = vadd.f32 %v978_v54, %v5584_v60  ;;  %v817_v47 = vadd.f32 %v5593_v2, %v5611_v20 }
 0x25b   :  { %v854_v28 = vpop.f32.mrf.mxu1  ;;  %v1258_v27 = vpop.f32.mrf.mxu0  ;;  %v5713_v14 = vadd.f32 %v5574_v55, %v319_v52 }
 0x25c   :  { %6404 = vst [vmem:[#allocation43_spill] sm:$0xff] %v5688_v5  ;;  %6405 = vst [vmem:[#allocation44_spill] sm:$0xff] %v5691_v0  ;;  %v5700_v41 = vadd.f32 %v854_v28, %v5609_v12  ;;  %v1259_v16 = vadd.f32 %v1258_v27, %v5710_v24 }
 0x25d   :  { %v856_v63 = vpop.f32.mrf.mxu1  ;;  %v1260_v40 = vpop.f32.mrf.mxu0 }
 0x25e   :  { %6406 = vst [vmem:[#allocation45_spill] sm:$0xff] %v5700_v41  ;;  %v5705_v54 = vadd.f32 %v856_v63, %v5611_v20  ;;  %v1261_v0 = vadd.f32 %v1260_v40, %v5685_v56  ;;  %v821_v40 = vadd.f32 %v5604_v8, %v5611_v20  ;;  %v815_v8 = vadd.f32 %v5588_v62, %v5609_v12 }
 0x25f   :  { %v858_v37 = vpop.f32.mrf.mxu1  ;;  %v1262_v5 = vpop.f32.mrf.mxu0 }
 0x260   :  { %6407 = vst [vmem:[#allocation46_spill] sm:$0xff] %v5705_v54  ;;  %v1324_v28 = vadd.f32 %v1261_v0, %v817_v47  ;;  %v5716_v41 = vadd.f32 %v858_v37, %v5609_v12  ;;  %v1263_v0 = vadd.f32 %v1262_v5, %v5710_v24  ;;  %v315_v47 = vrot.slane %v5696_v32, %v5599_v6 }
 0x261   :  { %v860_v48 = vpop.f32.mrf.mxu1  ;;  %v1264_v2 = vpop.f32.mrf.mxu0 }
 0x262   :  { %v1326_v63 = vadd.f32 %v1324_v28, %v5713_v14  ;;  %v5720_v54 = vadd.f32 %v860_v48, %v5611_v20  ;;  %v1265_v46 = vadd.f32 %v1264_v2, %v5685_v56  ;;  %v5733_v48 = vadd.f32 %v5586_v61, %v319_v52 }
 0x263   :  { %v864_v55 = vpop.f32.mrf.mxu1  ;;  %v819_v2 = vadd.f32 %v5597_v4, %v5609_v12  ;;  %v5747_v52 = vadd.f32 %v5572_v53, %v315_v47 }
 0x264   :  { %v4026_v35 = vmul.f32 -1.442695, %v1326_v63  ;;  %v5728_v37 = vadd.f32 %v864_v55, %v5609_v12  ;;  %v1325_v28 = vadd.f32 %v1265_v46, %v821_v40  ;;  %v1308_v63 = vadd.f32 %v1259_v16, %v815_v8 }
 0x265   :  { %v866_v27 = vpop.f32.mrf.mxu1  ;;  %v1309_v6 = vadd.f32 %v1263_v0, %v819_v2  ;;  %v5750_v40 = vadd.f32 %v5579_v58, %v315_v47 }
 0x266   :  { %6408 = vst [vmem:[#allocation47_spill] sm:$0xff] %v5728_v37  ;;  %4867 = vpow2.f32 %v4026_v35  ;;  %v5740_v5 = vadd.f32 %v866_v27, %v5611_v20  ;;  %v1327_v55 = vadd.f32 %v1325_v28, %v5733_v48  ;;  %v1310_v35 = vadd.f32 %v1308_v63, %v5747_v52 }
 0x267   :  { %v868_v37 = vpop.f32.mrf.mxu1  ;;  %v1311_v0 = vadd.f32 %v1309_v6, %v5750_v40 }
 0x268   :  { %v5744_v61 = vadd.f32 %v868_v37, %v5609_v12  ;;  %v4027_v62 = vmul.f32 -1.442695, %v1327_v55  ;;  %v4024_v28 = vmul.f32 -1.442695, %v1310_v35 }
 0x269   :  { %v870_v46 = vpop.f32.mrf.mxu1  ;;  %v4025_v58 = vmul.f32 -1.442695, %v1311_v0 }
 0x26a   :  { %v5753_v4 = vadd.f32 %v870_v46, %v5611_v20  ;;  %4869 = vpow2.f32 %v4027_v62 }
 0x26b   :  { %v874_v16 = vpop.f32.mrf.mxu1  ;;  %4871 = vpow2.f32 %v4024_v28  ;;  %v5780_v28 = vrot.slane %v5682_v42, %v5581_v59 }
 0x26c   :  { %v5758_v37 = vadd.f32 %v874_v16, %v5609_v12  ;;  %4873 = vpow2.f32 %v4025_v58 }
 0x26d   :  { %v876_v8 = vpop.f32.mrf.mxu1 }
 0x26e   :  { %v5761_v53 = vadd.f32 %v876_v8, %v5611_v20 }
 0x26f   :  { %v878_v27 = vpop.f32.mrf.mxu1 }
 0x270   :  { %v5764_v47 = vadd.f32 %v878_v27, %v5609_v12 }
 0x271   :  { %v880_v2 = vpop.f32.mrf.mxu1 }
 0x272   :  { %6409 = vst [vmem:[#allocation48_spill] sm:$0xff] %v5764_v47  ;;  %v5767_v63 = vadd.f32 %v880_v2, %v5611_v20 }
 0x273   :  { %v4868_v55 = vpop.eup %4867  ;;  %v884_v6 = vpop.f32.mrf.mxu1 }
 0x274   :  { %v1334_v62 = vadd.f32 1.0, %v4868_v55  ;;  %v5770_v46 = vadd.f32 %v884_v6, %v5609_v12  ;;  %v323_v6 = vrot.slane %v5696_v32, %v5581_v59 }
 0x275   :  { %v886_v16 = vpop.f32.mrf.mxu1 }
 0x276   :  { %6410 = vst [vmem:[#allocation49_spill] sm:$0xff] %v5770_v46  ;;  %4875 = vrcp.f32 %v1334_v62  ;;  %v5773_v35 = vadd.f32 %v886_v16, %v5611_v20 }
 0x277   :  { %v888_v0 = vpop.f32.mrf.mxu1  ;;  %v4870_v8 = vpop.eup %4869 }
 0x278   :  { %6411 = vst [vmem:[#allocation50_spill] sm:$0xff] %v5773_v35  ;;  %v5776_v27 = vadd.f32 %v888_v0, %v5609_v12  ;;  %v1335_v2 = vadd.f32 1.0, %v4870_v8  ;;  %v4872_v12 = vpop.eup %4871  ;;  %v5789_v0 = vadd.f32 %v5566_v49, %v323_v6 }
 0x279   :  { %v890_v47 = vpop.f32.mrf.mxu1  ;;  %v4874_v8 = vpop.eup %4873 }
 0x27a   :  { %6412 = vst [vmem:[#allocation51_spill] sm:$0xff] %v5776_v27  ;;  %v5783_v58 = vadd.f32 %v890_v47, %v5611_v20  ;;  %4877 = vrcp.f32 %v1335_v2  ;;  %v1318_v20 = vadd.f32 1.0, %v4872_v12  ;;  %v928_v2 = vadd.f32 %v5595_v3, %v5584_v60 }
 0x27b   :  { %v1301_v55 = vpop.f32.mrf.mxu1  ;;  %v1319_v59 = vadd.f32 1.0, %v4874_v8 }
 0x27c   :  { %6413 = vst [vmem:[#allocation52_spill] sm:$0xff] %v5783_v58  ;;  %v1302_v16 = vadd.f32 %v1301_v55, %v5780_v28  ;;  %v5796_v55 = vadd.f32 %v5569_v51, %v323_v6  ;;  %4879 = vrcp.f32 %v1318_v20 }
 0x27d   :  { %v4445_v62 = vpop.f32.mrf.mxu1  ;;  %4881 = vrcp.f32 %v1319_v59 }
 0x27e   :  { %v1340_v42 = vadd.f32 %v1302_v16, %v5789_v0 }
 0x27f   :  { %v1304_v46 = vpop.f32.mrf.mxu1 }
 0x280   :  { %v1305_v47 = vadd.f32 %v1304_v46, %v5780_v28 }
 0x281   :  { %v4446_v27 = vpop.f32.mrf.mxu1 }
 0x282   :  { %v1341_v49 = vadd.f32 %v1305_v47, %v5796_v55  ;;  %v931_v27 = vadd.f32 %v5606_v10, %v5584_v60  ;;  %v6414_v10 = vmov 0  }
 0x283   :  { %v4876_v35 = vpop.eup %4875 }
 0x284   :  { %v1342_v32 = vmul.f32 %v4876_v35, %v1340_v42 }
 0x286   :  { %v1344_v62 = vadd.f32 %v1342_v32, %v928_v2 }
 0x287   :  { %v4878_v58 = vpop.eup %4877 }
 0x288   :  { %4883 = vtanh.f32 %v1344_v62  ;;  %v1343_v16 = vmul.f32 %v4878_v58, %v1341_v49 }
 0x289   :  { %v4880_v12 = vpop.eup %4879 }
 0x28a   :  { %v1345_v46 = vadd.f32 %v1343_v16, %v931_v27  ;;  %v4882_v3 = vpop.eup %4881  ;;  %v1348_v35 = vsub.f32 1.0, %v4880_v12  ;;  %v1352_v20 = vmul.f32 %v4880_v12, %v5460_v44  ;;  %v6415_v44 = vmov 0.0  }
 0x28b   :  { %v1349_v42 = vsub.f32 1.0, %v4882_v3  ;;  %v1353_v47 = vmul.f32 %v4882_v3, %v5462_v45  ;;  %v4759_v45 = vld [vmem:[#allocation14 + $0xb0] ss:$12 sps:$4 sm:$0xff]  }
 0x28c   :  { %4885 = vtanh.f32 %v1345_v46 }
 0x295   :  { %v4884_v8 = vpop.eup %4883 }
 0x296   :  { %v1350_v51 = vmul.f32 %v4884_v8, %v1348_v35 }
 0x298   :  { %v5803_v59 = vadd.f32 %v1352_v20, %v1350_v51 }
 0x299   :  { %v4886_v6 = vpop.eup %4885 }
 0x29a   :  { %v1351_v2 = vmul.f32 %v4886_v6, %v1349_v42 }
 0x29c   :  { %v5805_v32 = vadd.f32 %v1353_v47, %v1351_v2 }
 0x29e   :  { %v5809_v60 = vpack.c.bf16 %v5805_v32, %v5803_v59 }
 0x2a0   :  { %1563 = vmatmul.mubr.bf16.vlgmr.msra.gmra.mxu0 %v5809_v60  ;;  %4464 = vmatmul.mubr.bf16.vlgmr.msra.gmra.mxu1 %v5809_v60 }
 0x2a1   :  { %1838 = vmatpush1.bf16.msra.mxu0 %v5473_v9  ;;  %1869 = vmatprep.mubr.bf16.mxu0 %v6414_v10  ;;  %v4760_v9 = vld [vmem:[#allocation14 + $0x98] ss:$12 sps:$4 sm:$0xff]  }
 0x2a2   :  { %1839 = vmatprep.subr.bf16.mxu0 %v5476_v11  ;;  %4483 = vmatprep.mubr.msk.bf16.mxu1 %vm5318_vm0, %v6415_v44  ;;  %v4761_v11 = vld [vmem:[#allocation14 + $0x80] ss:$12 sps:$4 sm:$0xff]  }
 0x2a3   :  { %4468 = vmatpush3.bf16.msra.mxu1 %v4759_v45 }
 0x2a4   :  { %4469 = vmatprep.subr.bf16.mxu1 %v6415_v44 }
 0x2a5   :  { %1840 = vmatpush1.bf16.msra.mxu0 %v5480_v13  ;;  %v4762_v13 = vld [vmem:[#allocation14 + $0x68] ss:$12 sps:$4 sm:$0xff]  }
 0x2a6   :  { %1841 = vmatprep.subr.bf16.mxu0 %v5484_v15  ;;  %v4763_v15 = vld [vmem:[#allocation14 + $0x50] ss:$12 sps:$4 sm:$0xff]  }
 0x2a7   :  { %4470 = vmatpush3.bf16.msra.mxu1 %v4760_v9 }
 0x2a8   :  { %4471 = vmatprep.subr.bf16.mxu1 %v6415_v44 }
 0x2a9   :  { %1842 = vmatpush1.bf16.msra.mxu0 %v5488_v17  ;;  %v4764_v17 = vld [vmem:[#allocation14 + $0x38] ss:$12 sps:$4 sm:$0xff]  }
 0x2aa   :  { %1843 = vmatprep.subr.bf16.mxu0 %v5491_v18  ;;  %v4765_v18 = vld [vmem:[#allocation14 + $0x20] ss:$12 sps:$4 sm:$0xff]  }
 0x2ab   :  { %4472 = vmatpush3.bf16.msra.mxu1 %v4761_v11 }
 0x2ac   :  { %4473 = vmatprep.subr.bf16.mxu1 %v6415_v44 }
 0x2ad   :  { %1844 = vmatpush1.bf16.msra.mxu0 %v5495_v21  ;;  %v4766_v21 = vld [vmem:[#allocation14 + $0x8] ss:$12 sps:$4 sm:$0xff]  }
 0x2ae   :  { %1845 = vmatprep.subr.bf16.mxu0 %v5499_v22 }
 0x2af   :  { %4474 = vmatpush3.bf16.msra.mxu1 %v4762_v13 }
 0x2b0   :  { %4475 = vmatprep.subr.bf16.mxu1 %v6415_v44 }
 0x2b1   :  { %1846 = vmatpush1.bf16.msra.mxu0 %v5503_v25 }
 0x2b2   :  { %1847 = vmatprep.subr.bf16.mxu0 %v5506_v26 }
 0x2b3   :  { %4476 = vmatpush3.bf16.msra.mxu1 %v4763_v15 }
 0x2b4   :  { %4477 = vmatprep.subr.bf16.mxu1 %v6415_v44 }
 0x2b5   :  { %1848 = vmatpush1.bf16.msra.mxu0 %v5509_v29 }
 0x2b6   :  { %1849 = vmatprep.subr.bf16.mxu0 %v5513_v30 }
 0x2b7   :  { %4478 = vmatpush3.bf16.msra.mxu1 %v4764_v17 }
 0x2b8   :  { %4479 = vmatprep.subr.bf16.mxu1 %v6415_v44 }
 0x2b9   :  { %1850 = vmatpush1.bf16.msra.mxu0 %v5517_v33 }
 0x2ba   :  { %1851 = vmatprep.subr.bf16.mxu0 %v5521_v34 }
 0x2bb   :  { %4480 = vmatpush3.bf16.msra.mxu1 %v4765_v18 }
 0x2bc   :  { %4481 = vmatprep.subr.bf16.mxu1 %v6415_v44 }
 0x2bd   :  { %1852 = vmatpush1.bf16.msra.mxu0 %v5524_v36 }
 0x2bf   :  { %4482 = vmatpush3.bf16.msra.mxu1 %v4766_v21 }
 0x2c0   :  { %4487 = vmatprep.subr.bf16.mxu1 %v6415_v44 }
 0x360   :  { %v1564_v22 = vpop.f32.mrf.mxu0  ;;  %v1607_v25 = vpop.f32.mrf.mxu1 }
 0x361   :  { %v1565_v36 = vadd.f32 %v1564_v22, %v5710_v24  ;;  %v1608_v11 = vadd.f32 %v1607_v25, %v5780_v28 }
 0x362   :  { %v1566_v26 = vpop.f32.mrf.mxu0  ;;  %v4465_v29 = vpop.f32.mrf.mxu1 }
 0x363   :  { %v1567_v30 = vadd.f32 %v1566_v26, %v5685_v56  ;;  %v1614_v46 = vadd.f32 %v1565_v36, %v5614_v23 }
 0x364   :  { %v1568_v33 = vpop.f32.mrf.mxu0  ;;  %v1610_v34 = vpop.f32.mrf.mxu1 }
 0x365   :  { %v1630_v58 = vadd.f32 %v1567_v30, %v5620_v31  ;;  %v1569_v3 = vadd.f32 %v1568_v33, %v5710_v24  ;;  %v1616_v42 = vadd.f32 %v1614_v46, %v5747_v52  ;;  %v1611_v18 = vadd.f32 %v1610_v34, %v5780_v28 }
 0x366   :  { %v1570_v62 = vpop.f32.mrf.mxu0  ;;  %v4466_v49 = vpop.f32.mrf.mxu1 }
 0x367   :  { %v1632_v27 = vadd.f32 %v1630_v58, %v5713_v14  ;;  %v1571_v16 = vadd.f32 %v1570_v62, %v5685_v56  ;;  %v1615_v31 = vadd.f32 %v1569_v3, %v5626_v39  ;;  %v4052_v6 = vmul.f32 -1.442695, %v1616_v42  ;;  %v5878_v42 = vld [vmem:[#allocation14 + $0x94] ss:$12 sps:$4 sm:$0xff]  }
 0x368   :  { %v1646_v39 = vadd.f32 %v1608_v11, %v5789_v0  ;;  %v1647_v29 = vadd.f32 %v1611_v18, %v5796_v55  ;;  %v4786_v11 = vld [vmem:[#allocation14 + $0x50] ss:$12 sps:$4 sm:$0xff]   ;;  %v5915_v18 = vld [vmem:[#allocation14 + $0x18] ss:$12 sps:$4 sm:$0xff]  }
 0x369   :  { %v4054_v12 = vmul.f32 -1.442695, %v1632_v27  ;;  %v1631_v8 = vadd.f32 %v1571_v16, %v5632_v43  ;;  %v1617_v2 = vadd.f32 %v1615_v31, %v5750_v40  ;;  %v5881_v31 = vld [vmem:[#allocation14 + $0x90] ss:$12 sps:$4 sm:$0xff]  }
 0x36b   :  { %4887 = vpow2.f32 %v4054_v12  ;;  %v1633_v35 = vadd.f32 %v1631_v8, %v5733_v48  ;;  %v4053_v20 = vmul.f32 -1.442695, %v1617_v2  ;;  %v5888_v2 = vld [vmem:[#allocation14 + $0x78] ss:$12 sps:$4 sm:$0xff]  }
 0x36d   :  { %v4055_v51 = vmul.f32 -1.442695, %v1633_v35  ;;  %v5874_v35 = vld [vmem:[#allocation14 + $0xa8] ss:$12 sps:$4 sm:$0xff]  }
 0x36f   :  { %4889 = vpow2.f32 %v4055_v51  ;;  %v4774_v51 = vld [vmem:[#allocation14 + $0x98] ss:$12 sps:$4 sm:$0xff]  }
 0x370   :  { %4891 = vpow2.f32 %v4052_v6  ;;  %v5885_v6 = vld [vmem:[#allocation14 + $0x7c] ss:$12 sps:$4 sm:$0xff]  }
 0x371   :  { %4893 = vpow2.f32 %v4053_v20  ;;  %v4778_v20 = vld [vmem:[#allocation14 + $0x80] ss:$12 sps:$4 sm:$0xff]  }
 0x378   :  { %v4888_v23 = vpop.eup %4887 }
 0x379   :  { %v1640_v47 = vadd.f32 1.0, %v4888_v23  ;;  %v5892_v23 = vld [vmem:[#allocation14 + $0x60] ss:$12 sps:$4 sm:$0xff]  }
 0x37b   :  { %4895 = vrcp.f32 %v1640_v47  ;;  %v5894_v47 = vld [vmem:[#allocation14 + $0x64] ss:$12 sps:$4 sm:$0xff]  }
 0x37c   :  { %v4890_v45 = vpop.eup %4889 }
 0x37d   :  { %v1641_v43 = vadd.f32 1.0, %v4890_v45  ;;  %v4892_v9 = vpop.eup %4891  ;;  %v4782_v45 = vld [vmem:[#allocation14 + $0x68] ss:$12 sps:$4 sm:$0xff]  }
 0x37e   :  { %v1624_v13 = vadd.f32 1.0, %v4892_v9  ;;  %v4894_v15 = vpop.eup %4893  ;;  %v5901_v9 = vld [vmem:[#allocation14 + $0x48] ss:$12 sps:$4 sm:$0xff]  }
 0x37f   :  { %4897 = vrcp.f32 %v1641_v43  ;;  %v1625_v22 = vadd.f32 1.0, %v4894_v15  ;;  %v5897_v43 = vld [vmem:[#allocation14 + $0x4c] ss:$12 sps:$4 sm:$0xff]   ;;  %v5908_v15 = vld [vmem:[#allocation14 + $0x30] ss:$12 sps:$4 sm:$0xff]  }
 0x380   :  { %4899 = vrcp.f32 %v1624_v13  ;;  %v5905_v13 = vld [vmem:[#allocation14 + $0x34] ss:$12 sps:$4 sm:$0xff]  }
 0x388   :  { %v4896_v17 = vpop.eup %4895 }
 0x389   :  { %v1648_v21 = vmul.f32 %v4896_v17, %v1646_v39  ;;  %v4790_v39 = vld [vmem:[#allocation14 + $0x38] ss:$12 sps:$4 sm:$0xff]   ;;  %v5912_v17 = vld [vmem:[#allocation14 + $0x1c] ss:$12 sps:$4 sm:$0xff]  }
 0x38b   :  { %v1650_v26 = vadd.f32 %v1648_v21, %v5591_v1  ;;  %v4794_v21 = vld [vmem:[#allocation14 + $0x20] ss:$12 sps:$4 sm:$0xff]  }
 0x38c   :  { %v4898_v30 = vpop.eup %4897 }
 0x38d   :  { %4901 = vtanh.f32 %v1650_v26  ;;  %v1649_v33 = vmul.f32 %v4898_v30, %v1647_v29  ;;  %v4900_v36 = vpop.eup %4899  ;;  %v5922_v26 = vld [vmem:[#allocation14] ss:$12 sps:$4 sm:$0xff]   ;;  %v4798_v29 = vld [vmem:[#allocation14 + $0x8] ss:$12 sps:$4 sm:$0xff]  }
 0x38e   :  { %4903 = vrcp.f32 %v1625_v22  ;;  %v1654_v58 = vsub.f32 1.0, %v4900_v36  ;;  %v1658_v34 = vmul.f32 %v4900_v36, %v5803_v59  ;;  %v5872_v59 = vld [vmem:[#allocation14 + $0xac] ss:$12 sps:$4 sm:$0xff]   ;;  %v5919_v22 = vld [vmem:[#allocation14 + $0x4] ss:$12 sps:$4 sm:$0xff]  }
 0x38f   :  { %v1651_v25 = vadd.f32 %v1649_v33, %v5602_v7  ;;  %2144 = vmatprep.subr.bf16.mxu0 %v5872_v59 }
 0x391   :  { %4905 = vtanh.f32 %v1651_v25 }
 0x39a   :  { %v4902_v62 = vpop.eup %4901 }
 0x39b   :  { %v4904_v49 = vpop.eup %4903  ;;  %v1656_v27 = vmul.f32 %v4902_v62, %v1654_v58 }
 0x39c   :  { %v1655_v46 = vsub.f32 1.0, %v4904_v49  ;;  %v1659_v3 = vmul.f32 %v4904_v49, %v5805_v32  ;;  %v4770_v32 = vld [vmem:[#allocation14 + $0xb0] ss:$12 sps:$4 sm:$0xff]  }
 0x39d   :  { %v5858_v16 = vadd.f32 %v1658_v34, %v1656_v27 }
 0x39e   :  { %v4906_v1 = vpop.eup %4905 }
 0x39f   :  { %v1657_v12 = vmul.f32 %v4906_v1, %v1655_v46 }
 0x3a1   :  { %v5861_v8 = vadd.f32 %v1659_v3, %v1657_v12 }
 0x3a3   :  { %v5865_v7 = vpack.c.bf16 %v5861_v8, %v5858_v16 }
 0x3a5   :  { %1870 = vmatmul.mubr.bf16.vlgmr.msra.gmra.mxu0 %v5865_v7  ;;  %4484 = vmatmul.mubr.bf16.vlgmr.msra.gmra.mxu1 %v5865_v7 }
 0x3a6   :  { %2176 = vmatprep.mubr.bf16.mxu0 %v6414_v10  ;;  %4503 = vmatprep.mubr.msk.bf16.mxu1 %vm5318_vm0, %v6415_v44 }
 0x3a7   :  { %2145 = vmatpush1.bf16.msra.mxu0 %v5874_v35  ;;  %4488 = vmatpush3.bf16.msra.mxu1 %v4770_v32 }
 0x3a8   :  { %4489 = vmatprep.subr.bf16.mxu1 %v6415_v44  ;;  %2146 = vmatprep.subr.bf16.mxu0 %v5878_v42 }
 0x3ab   :  { %2147 = vmatpush1.bf16.msra.mxu0 %v5881_v31  ;;  %4490 = vmatpush3.bf16.msra.mxu1 %v4774_v51 }
 0x3ac   :  { %4491 = vmatprep.subr.bf16.mxu1 %v6415_v44  ;;  %2148 = vmatprep.subr.bf16.mxu0 %v5885_v6 }
 0x3af   :  { %2149 = vmatpush1.bf16.msra.mxu0 %v5888_v2  ;;  %4492 = vmatpush3.bf16.msra.mxu1 %v4778_v20 }
 0x3b0   :  { %4493 = vmatprep.subr.bf16.mxu1 %v6415_v44  ;;  %2150 = vmatprep.subr.bf16.mxu0 %v5894_v47 }
 0x3b3   :  { %2151 = vmatpush1.bf16.msra.mxu0 %v5892_v23  ;;  %4494 = vmatpush3.bf16.msra.mxu1 %v4782_v45 }
 0x3b4   :  { %2152 = vmatprep.subr.bf16.mxu0 %v5897_v43  ;;  %4495 = vmatprep.subr.bf16.mxu1 %v6415_v44 }
 0x3b7   :  { %2153 = vmatpush1.bf16.msra.mxu0 %v5901_v9  ;;  %4496 = vmatpush3.bf16.msra.mxu1 %v4786_v11 }
 0x3b8   :  { %2154 = vmatprep.subr.bf16.mxu0 %v5905_v13  ;;  %4497 = vmatprep.subr.bf16.mxu1 %v6415_v44 }
 0x3bb   :  { %2155 = vmatpush1.bf16.msra.mxu0 %v5908_v15  ;;  %4498 = vmatpush3.bf16.msra.mxu1 %v4790_v39 }
 0x3bc   :  { %2156 = vmatprep.subr.bf16.mxu0 %v5912_v17  ;;  %4499 = vmatprep.subr.bf16.mxu1 %v6415_v44 }
 0x3bf   :  { %2157 = vmatpush1.bf16.msra.mxu0 %v5915_v18  ;;  %4500 = vmatpush3.bf16.msra.mxu1 %v4794_v21 }
 0x3c0   :  { %2158 = vmatprep.subr.bf16.mxu0 %v5919_v22  ;;  %4501 = vmatprep.subr.bf16.mxu1 %v6415_v44 }
 0x3c3   :  { %2159 = vmatpush1.bf16.msra.mxu0 %v5922_v26  ;;  %4502 = vmatpush3.bf16.msra.mxu1 %v4798_v29 }
 0x3c4   :  { %2451 = vmatprep.subr.bf16.mxu0 %v5872_v59  ;;  %4507 = vmatprep.subr.bf16.mxu1 %v6415_v44 }
 0x465   :  { %v1871_v30 = vpop.f32.mrf.mxu0  ;;  %v1914_v33 = vpop.f32.mrf.mxu1 }
 0x466   :  { %v1872_v27 = vadd.f32 %v1871_v30, %v5710_v24 }
 0x467   :  { %v1873_v25 = vpop.f32.mrf.mxu0  ;;  %v4485_v36 = vpop.f32.mrf.mxu1 }
 0x468   :  { %v1874_v58 = vadd.f32 %v1873_v25, %v5685_v56  ;;  %v1921_v32 = vadd.f32 %v1872_v27, %v5638_v50  ;;  %v1915_v27 = vadd.f32 %v1914_v33, %v5780_v28 }
 0x469   :  { %v1875_v62 = vpop.f32.mrf.mxu0  ;;  %v1917_v49 = vpop.f32.mrf.mxu1 }
 0x46a   :  { %v1937_v34 = vadd.f32 %v1874_v58, %v5644_v57  ;;  %v1876_v20 = vadd.f32 %v1875_v62, %v5710_v24  ;;  %v1923_v39 = vadd.f32 %v1921_v32, %v5747_v52 }
 0x46b   :  { %v1877_v46 = vpop.f32.mrf.mxu0  ;;  %v4486_v1 = vpop.f32.mrf.mxu1 }
 0x46c   :  { %v1939_v12 = vadd.f32 %v1937_v34, %v5713_v14  ;;  %v1878_v3 = vadd.f32 %v1877_v46, %v5685_v56  ;;  %v1922_v57 = vadd.f32 %v1876_v20, %v5650_v19  ;;  %v4080_v29 = vmul.f32 -1.442695, %v1923_v39 }
 0x46d   :  { %v1953_v19 = vadd.f32 %v1915_v27, %v5789_v0 }
 0x46e   :  { %v4082_v51 = vmul.f32 -1.442695, %v1939_v12  ;;  %v1938_v45 = vadd.f32 %v1878_v3, %v5656_v38  ;;  %v1924_v30 = vadd.f32 %v1922_v57, %v5750_v40  ;;  %v1918_v12 = vadd.f32 %v1917_v49, %v5780_v28  ;;  %v6417_v57 = vld [vmem:[#allocation32_spill] sm:$0xff] }
 0x470   :  { %4907 = vpow2.f32 %v4082_v51  ;;  %v1940_v11 = vadd.f32 %v1938_v45, %v5733_v48  ;;  %v4081_v25 = vmul.f32 -1.442695, %v1924_v30  ;;  %v6416_v51 = vld [vmem:[#allocation30_spill] sm:$0xff]  ;;  %v1954_v45 = vadd.f32 %v1918_v12, %v5796_v55 }
 0x471   :  { %v4803_v12 = vld [vmem:[#allocation14 + $0x50] ss:$12 sps:$4 sm:$0xff]  }
 0x472   :  { %v4083_v21 = vmul.f32 -1.442695, %v1940_v11 }
 0x474   :  { %4909 = vpow2.f32 %v4083_v21 }
 0x475   :  { %4911 = vpow2.f32 %v4080_v29 }
 0x476   :  { %4913 = vpow2.f32 %v4081_v25 }
 0x47d   :  { %v4908_v50 = vpop.eup %4907 }
 0x47e   :  { %v1947_v36 = vadd.f32 1.0, %v4908_v50 }
 0x480   :  { %4915 = vrcp.f32 %v1947_v36 }
 0x481   :  { %v4910_v58 = vpop.eup %4909 }
 0x482   :  { %v1948_v38 = vadd.f32 1.0, %v4910_v58  ;;  %v4912_v62 = vpop.eup %4911 }
 0x483   :  { %v1931_v34 = vadd.f32 1.0, %v4912_v62  ;;  %v4914_v46 = vpop.eup %4913 }
 0x484   :  { %4917 = vrcp.f32 %v1948_v38  ;;  %v1932_v32 = vadd.f32 1.0, %v4914_v46 }
 0x485   :  { %4919 = vrcp.f32 %v1931_v34 }
 0x48d   :  { %v4916_v1 = vpop.eup %4915 }
 0x48e   :  { %v1955_v3 = vmul.f32 %v4916_v1, %v1953_v19  ;;  %v4801_v19 = vld [vmem:[#allocation14 + $0x80] ss:$12 sps:$4 sm:$0xff]   ;;  %v4802_v1 = vld [vmem:[#allocation14 + $0x68] ss:$12 sps:$4 sm:$0xff]  }
 0x490   :  { %v1957_v20 = vadd.f32 %v1955_v3, %v6416_v51  ;;  %v4804_v3 = vld [vmem:[#allocation14 + $0x38] ss:$12 sps:$4 sm:$0xff]   ;;  %v4806_v51 = vld [vmem:[#allocation14 + $0x8] ss:$12 sps:$4 sm:$0xff]  }
 0x491   :  { %v4918_v11 = vpop.eup %4917 }
 0x492   :  { %4921 = vtanh.f32 %v1957_v20  ;;  %v1956_v39 = vmul.f32 %v4918_v11, %v1954_v45  ;;  %v4920_v21 = vpop.eup %4919 }
 0x493   :  { %4923 = vrcp.f32 %v1932_v32  ;;  %v1961_v29 = vsub.f32 1.0, %v4920_v21  ;;  %v1965_v49 = vmul.f32 %v4920_v21, %v5858_v16  ;;  %v4799_v16 = vld [vmem:[#allocation14 + $0xb0] ss:$12 sps:$4 sm:$0xff]   ;;  %v4805_v32 = vld [vmem:[#allocation14 + $0x20] ss:$12 sps:$4 sm:$0xff]  }
 0x494   :  { %v1958_v33 = vadd.f32 %v1956_v39, %v6417_v57 }
 0x496   :  { %4925 = vtanh.f32 %v1958_v33 }
 0x49f   :  { %v4922_v30 = vpop.eup %4921 }
 0x4a0   :  { %v4924_v25 = vpop.eup %4923  ;;  %v1963_v50 = vmul.f32 %v4922_v30, %v1961_v29  ;;  %v6418_v30 = vld [vmem:[#allocation39_spill] sm:$0xff] }
 0x4a1   :  { %v1962_v58 = vsub.f32 1.0, %v4924_v25  ;;  %v1966_v27 = vmul.f32 %v4924_v25, %v5861_v8  ;;  %v4800_v8 = vld [vmem:[#allocation14 + $0x98] ss:$12 sps:$4 sm:$0xff]  }
 0x4a2   :  { %v5948_v36 = vadd.f32 %v1965_v49, %v1963_v50 }
 0x4a3   :  { %v4926_v38 = vpop.eup %4925 }
 0x4a4   :  { %v1964_v62 = vmul.f32 %v4926_v38, %v1962_v58 }
 0x4a6   :  { %v5951_v34 = vadd.f32 %v1966_v27, %v1964_v62  ;;  %v6419_v62 = vld [vmem:[#allocation37_spill] sm:$0xff] }
 0x4a8   :  { %v5955_v46 = vpack.c.bf16 %v5951_v34, %v5948_v36 }
 0x4aa   :  { %2177 = vmatmul.mubr.bf16.vlgmr.msra.gmra.mxu0 %v5955_v46  ;;  %4504 = vmatmul.mubr.bf16.vlgmr.msra.gmra.mxu1 %v5955_v46 }
 0x4ab   :  { %2452 = vmatpush1.bf16.msra.mxu0 %v5874_v35  ;;  %2483 = vmatprep.mubr.bf16.mxu0 %v6414_v10 }
 0x4ac   :  { %2453 = vmatprep.subr.bf16.mxu0 %v5878_v42  ;;  %4523 = vmatprep.mubr.msk.bf16.mxu1 %vm5318_vm0, %v6415_v44 }
 0x4ad   :  { %4508 = vmatpush3.bf16.msra.mxu1 %v4799_v16 }
 0x4ae   :  { %4509 = vmatprep.subr.bf16.mxu1 %v6415_v44 }
 0x4af   :  { %2454 = vmatpush1.bf16.msra.mxu0 %v5881_v31 }
 0x4b0   :  { %2455 = vmatprep.subr.bf16.mxu0 %v5885_v6 }
 0x4b1   :  { %4510 = vmatpush3.bf16.msra.mxu1 %v4800_v8 }
 0x4b2   :  { %4511 = vmatprep.subr.bf16.mxu1 %v6415_v44 }
 0x4b3   :  { %2456 = vmatpush1.bf16.msra.mxu0 %v5888_v2 }
 0x4b4   :  { %2457 = vmatprep.subr.bf16.mxu0 %v5894_v47 }
 0x4b5   :  { %4512 = vmatpush3.bf16.msra.mxu1 %v4801_v19  ;;  %v6420_v19 = vld [vmem:[#allocation43_spill] sm:$0xff] }
 0x4b6   :  { %4513 = vmatprep.subr.bf16.mxu1 %v6415_v44 }
 0x4b7   :  { %2458 = vmatpush1.bf16.msra.mxu0 %v5892_v23 }
 0x4b8   :  { %2459 = vmatprep.subr.bf16.mxu0 %v5897_v43 }
 0x4b9   :  { %4514 = vmatpush3.bf16.msra.mxu1 %v4802_v1 }
 0x4ba   :  { %4515 = vmatprep.subr.bf16.mxu1 %v6415_v44 }
 0x4bb   :  { %2460 = vmatpush1.bf16.msra.mxu0 %v5901_v9 }
 0x4bc   :  { %2461 = vmatprep.subr.bf16.mxu0 %v5905_v13 }
 0x4bd   :  { %4516 = vmatpush3.bf16.msra.mxu1 %v4803_v12 }
 0x4be   :  { %4517 = vmatprep.subr.bf16.mxu1 %v6415_v44 }
 0x4bf   :  { %2462 = vmatpush1.bf16.msra.mxu0 %v5908_v15 }
 0x4c0   :  { %2463 = vmatprep.subr.bf16.mxu0 %v5912_v17 }
 0x4c1   :  { %4518 = vmatpush3.bf16.msra.mxu1 %v4804_v3 }
 0x4c2   :  { %4519 = vmatprep.subr.bf16.mxu1 %v6415_v44 }
 0x4c3   :  { %2464 = vmatpush1.bf16.msra.mxu0 %v5915_v18 }
 0x4c4   :  { %2465 = vmatprep.subr.bf16.mxu0 %v5919_v22 }
 0x4c5   :  { %4520 = vmatpush3.bf16.msra.mxu1 %v4805_v32  ;;  %v6421_v32 = vld [vmem:[#allocation41_spill] sm:$0xff] }
 0x4c6   :  { %4521 = vmatprep.subr.bf16.mxu1 %v6415_v44 }
 0x4c7   :  { %2466 = vmatpush1.bf16.msra.mxu0 %v5922_v26 }
 0x4c8   :  { %2758 = vmatprep.subr.bf16.mxu0 %v5872_v59 }
 0x4c9   :  { %4522 = vmatpush3.bf16.msra.mxu1 %v4806_v51 }
 0x4ca   :  { %4527 = vmatprep.subr.bf16.mxu1 %v6415_v44 }
 0x56a   :  { %v2178_v20 = vpop.f32.mrf.mxu0  ;;  %v2221_v45 = vpop.f32.mrf.mxu1 }
 0x56b   :  { %v2179_v29 = vadd.f32 %v2178_v20, %v5710_v24 }
 0x56c   :  { %v2180_v11 = vpop.f32.mrf.mxu0  ;;  %v4505_v39 = vpop.f32.mrf.mxu1 }
 0x56d   :  { %v2181_v57 = vadd.f32 %v2180_v11, %v5685_v56  ;;  %v2228_v27 = vadd.f32 %v2179_v29, %v6419_v62 }
 0x56e   :  { %v2182_v33 = vpop.f32.mrf.mxu0  ;;  %v2224_v21 = vpop.f32.mrf.mxu1 }
 0x56f   :  { %v2244_v25 = vadd.f32 %v2181_v57, %v6418_v30  ;;  %v2183_v8 = vadd.f32 %v2182_v33, %v5710_v24  ;;  %v2230_v3 = vadd.f32 %v2228_v27, %v5747_v52 }
 0x570   :  { %v2184_v50 = vpop.f32.mrf.mxu0  ;;  %v4506_v49 = vpop.f32.mrf.mxu1 }
 0x571   :  { %v2246_v58 = vadd.f32 %v2244_v25, %v5713_v14  ;;  %v2185_v38 = vadd.f32 %v2184_v50, %v5685_v56  ;;  %v2229_v51 = vadd.f32 %v2183_v8, %v6421_v32  ;;  %v4108_v11 = vmul.f32 -1.442695, %v2230_v3 }
 0x572   :  { %v2222_v49 = vadd.f32 %v2221_v45, %v5780_v28 }
 0x573   :  { %v4110_v16 = vmul.f32 -1.442695, %v2246_v58  ;;  %v2245_v1 = vadd.f32 %v2185_v38, %v6420_v19  ;;  %v2231_v39 = vadd.f32 %v2229_v51, %v5750_v40 }
 0x574   :  { %v2260_v62 = vadd.f32 %v2222_v49, %v5789_v0 }
 0x575   :  { %4927 = vpow2.f32 %v4110_v16  ;;  %v2247_v12 = vadd.f32 %v2245_v1, %v5733_v48  ;;  %v4109_v57 = vmul.f32 -1.442695, %v2231_v39  ;;  %v2225_v16 = vadd.f32 %v2224_v21, %v5780_v28  ;;  %v6422_v1 = vld [vmem:[#allocation29_spill] sm:$0xff] }
 0x577   :  { %v4111_v20 = vmul.f32 -1.442695, %v2247_v12  ;;  %v2261_v3 = vadd.f32 %v2225_v16, %v5796_v55  ;;  %v4810_v16 = vld [vmem:[#allocation14 + $0x68] ss:$12 sps:$4 sm:$0xff]  }
 0x579   :  { %4929 = vpow2.f32 %v4111_v20  ;;  %v6423_v20 = vld [vmem:[#allocation31_spill] sm:$0xff] }
 0x57a   :  { %4931 = vpow2.f32 %v4108_v11 }
 0x57b   :  { %4933 = vpow2.f32 %v4109_v57 }
 0x582   :  { %v4928_v29 = vpop.eup %4927 }
 0x583   :  { %v2254_v30 = vadd.f32 1.0, %v4928_v29 }
 0x585   :  { %4935 = vrcp.f32 %v2254_v30 }
 0x586   :  { %v4930_v33 = vpop.eup %4929 }
 0x587   :  { %v2255_v25 = vadd.f32 1.0, %v4930_v33  ;;  %v4932_v50 = vpop.eup %4931 }
 0x588   :  { %v2238_v58 = vadd.f32 1.0, %v4932_v50  ;;  %v4934_v38 = vpop.eup %4933 }
 0x589   :  { %4937 = vrcp.f32 %v2255_v25  ;;  %v2239_v19 = vadd.f32 1.0, %v4934_v38 }
 0x58a   :  { %4939 = vrcp.f32 %v2238_v58 }
 0x592   :  { %v4936_v27 = vpop.eup %4935 }
 0x593   :  { %v2262_v8 = vmul.f32 %v4936_v27, %v2260_v62  ;;  %v4809_v27 = vld [vmem:[#allocation14 + $0x80] ss:$12 sps:$4 sm:$0xff]  }
 0x595   :  { %v2264_v12 = vadd.f32 %v2262_v8, %v6422_v1  ;;  %v4811_v8 = vld [vmem:[#allocation14 + $0x50] ss:$12 sps:$4 sm:$0xff]   ;;  %v4814_v1 = vld [vmem:[#allocation14 + $0x8] ss:$12 sps:$4 sm:$0xff]  }
 0x596   :  { %v4938_v32 = vpop.eup %4937 }
 0x597   :  { %4941 = vtanh.f32 %v2264_v12  ;;  %v2263_v51 = vmul.f32 %v4938_v32, %v2261_v3  ;;  %v4940_v11 = vpop.eup %4939 }
 0x598   :  { %4943 = vrcp.f32 %v2239_v19  ;;  %v2268_v39 = vsub.f32 1.0, %v4940_v11  ;;  %v2272_v21 = vmul.f32 %v4940_v11, %v5948_v36  ;;  %v4807_v36 = vld [vmem:[#allocation14 + $0xb0] ss:$12 sps:$4 sm:$0xff]   ;;  %v4812_v19 = vld [vmem:[#allocation14 + $0x38] ss:$12 sps:$4 sm:$0xff]  }
 0x599   :  { %v2265_v45 = vadd.f32 %v2263_v51, %v6423_v20 }
 0x59b   :  { %4945 = vtanh.f32 %v2265_v45 }
 0x5a4   :  { %v4942_v57 = vpop.eup %4941 }
 0x5a5   :  { %v4944_v29 = vpop.eup %4943  ;;  %v2270_v30 = vmul.f32 %v4942_v57, %v2268_v39  ;;  %v6424_v57 = vld [vmem:[#allocation46_spill] sm:$0xff] }
 0x5a6   :  { %v2269_v25 = vsub.f32 1.0, %v4944_v29  ;;  %v2273_v58 = vmul.f32 %v4944_v29, %v5951_v34  ;;  %v4808_v34 = vld [vmem:[#allocation14 + $0x98] ss:$12 sps:$4 sm:$0xff]  }
 0x5a7   :  { %v6005_v33 = vadd.f32 %v2272_v21, %v2270_v30 }
 0x5a8   :  { %v4946_v50 = vpop.eup %4945 }
 0x5a9   :  { %v2271_v49 = vmul.f32 %v4946_v50, %v2269_v25 }
 0x5ab   :  { %v6008_v38 = vadd.f32 %v2273_v58, %v2271_v49  ;;  %v6425_v49 = vld [vmem:[#allocation45_spill] sm:$0xff] }
 0x5ad   :  { %v6012_v62 = vpack.c.bf16 %v6008_v38, %v6005_v33 }
 0x5af   :  { %2484 = vmatmul.mubr.bf16.vlgmr.msra.gmra.mxu0 %v6012_v62  ;;  %4524 = vmatmul.mubr.bf16.vlgmr.msra.gmra.mxu1 %v6012_v62 }
 0x5b0   :  { %2759 = vmatpush1.bf16.msra.mxu0 %v5874_v35  ;;  %2790 = vmatprep.mubr.bf16.mxu0 %v6414_v10 }
 0x5b1   :  { %2760 = vmatprep.subr.bf16.mxu0 %v5878_v42  ;;  %4543 = vmatprep.mubr.msk.bf16.mxu1 %vm5318_vm0, %v6415_v44 }
 0x5b2   :  { %4528 = vmatpush3.bf16.msra.mxu1 %v4807_v36 }
 0x5b3   :  { %4529 = vmatprep.subr.bf16.mxu1 %v6415_v44 }
 0x5b4   :  { %2761 = vmatpush1.bf16.msra.mxu0 %v5881_v31 }
 0x5b5   :  { %2762 = vmatprep.subr.bf16.mxu0 %v5885_v6 }
 0x5b6   :  { %4530 = vmatpush3.bf16.msra.mxu1 %v4808_v34 }
 0x5b7   :  { %4531 = vmatprep.subr.bf16.mxu1 %v6415_v44 }
 0x5b8   :  { %2763 = vmatpush1.bf16.msra.mxu0 %v5888_v2 }
 0x5b9   :  { %2764 = vmatprep.subr.bf16.mxu0 %v5894_v47 }
 0x5ba   :  { %4532 = vmatpush3.bf16.msra.mxu1 %v4809_v27 }
 0x5bb   :  { %4533 = vmatprep.subr.bf16.mxu1 %v6415_v44 }
 0x5bc   :  { %2765 = vmatpush1.bf16.msra.mxu0 %v5892_v23 }
 0x5bd   :  { %2766 = vmatprep.subr.bf16.mxu0 %v5897_v43 }
 0x5be   :  { %4534 = vmatpush3.bf16.msra.mxu1 %v4810_v16 }
 0x5bf   :  { %4535 = vmatprep.subr.bf16.mxu1 %v6415_v44 }
 0x5c0   :  { %2767 = vmatpush1.bf16.msra.mxu0 %v5901_v9 }
 0x5c1   :  { %2768 = vmatprep.subr.bf16.mxu0 %v5905_v13 }
 0x5c2   :  { %4536 = vmatpush3.bf16.msra.mxu1 %v4811_v8 }
 0x5c3   :  { %4537 = vmatprep.subr.bf16.mxu1 %v6415_v44 }
 0x5c4   :  { %2769 = vmatpush1.bf16.msra.mxu0 %v5908_v15 }
 0x5c5   :  { %2770 = vmatprep.subr.bf16.mxu0 %v5912_v17 }
 0x5c6   :  { %4538 = vmatpush3.bf16.msra.mxu1 %v4812_v19 }
 0x5c7   :  { %4539 = vmatprep.subr.bf16.mxu1 %v6415_v44 }
 0x5c8   :  { %2771 = vmatpush1.bf16.msra.mxu0 %v5915_v18 }
 0x5c9   :  { %2772 = vmatprep.subr.bf16.mxu0 %v5919_v22 }
 0x5cc   :  { %2773 = vmatpush1.bf16.msra.mxu0 %v5922_v26 }
 0x5cd   :  { %3065 = vmatprep.subr.bf16.mxu0 %v5872_v59  ;;  %v4813_v59 = vld [vmem:[#allocation14 + $0x20] ss:$12 sps:$4 sm:$0xff]  }
 0x5ce   :  { %4540 = vmatpush3.bf16.msra.mxu1 %v4813_v59 }
 0x5cf   :  { %4541 = vmatprep.subr.bf16.mxu1 %v6415_v44 }
 0x5d2   :  { %4542 = vmatpush3.bf16.msra.mxu1 %v4814_v1 }
 0x5d3   :  { %4547 = vmatprep.subr.bf16.mxu1 %v6415_v44 }
 0x66f   :  { %v2485_v12 = vpop.f32.mrf.mxu0  ;;  %v2528_v3 = vpop.f32.mrf.mxu1 }
 0x670   :  { %v2486_v39 = vadd.f32 %v2485_v12, %v5710_v24 }
 0x671   :  { %v2487_v32 = vpop.f32.mrf.mxu0  ;;  %v4525_v51 = vpop.f32.mrf.mxu1 }
 0x672   :  { %v2488_v20 = vadd.f32 %v2487_v32, %v5685_v56  ;;  %v2535_v58 = vadd.f32 %v2486_v39, %v6425_v49 }
 0x673   :  { %v2489_v45 = vpop.f32.mrf.mxu0  ;;  %v2531_v11 = vpop.f32.mrf.mxu1 }
 0x674   :  { %v2551_v29 = vadd.f32 %v2488_v20, %v6424_v57  ;;  %v2490_v34 = vadd.f32 %v2489_v45, %v5710_v24  ;;  %v2537_v8 = vadd.f32 %v2535_v58, %v5747_v52  ;;  %v2529_v57 = vadd.f32 %v2528_v3, %v5780_v28  ;;  %v6426_v58 = vld [vmem:[#allocation34_spill] sm:$0xff] }
 0x675   :  { %v2491_v30 = vpop.f32.mrf.mxu0  ;;  %v4526_v21 = vpop.f32.mrf.mxu1 }
 0x676   :  { %v2553_v25 = vadd.f32 %v2551_v29, %v5713_v14  ;;  %v2492_v50 = vadd.f32 %v2491_v30, %v5685_v56  ;;  %v2536_v19 = vadd.f32 %v2490_v34, %v5716_v41  ;;  %v4136_v1 = vmul.f32 -1.442695, %v2537_v8  ;;  %v6427_v8 = vld [vmem:[#allocation36_spill] sm:$0xff] }
 0x677   :  { %v2567_v41 = vadd.f32 %v2529_v57, %v5789_v0 }
 0x678   :  { %v4138_v36 = vmul.f32 -1.442695, %v2553_v25  ;;  %v2552_v27 = vadd.f32 %v2492_v50, %v5720_v54  ;;  %v2538_v12 = vadd.f32 %v2536_v19, %v5750_v40  ;;  %v2532_v25 = vadd.f32 %v2531_v11, %v5780_v28 }
 0x67a   :  { %4947 = vpow2.f32 %v4138_v36  ;;  %v2554_v16 = vadd.f32 %v2552_v27, %v5733_v48  ;;  %v4137_v32 = vmul.f32 -1.442695, %v2538_v12  ;;  %v2568_v34 = vadd.f32 %v2532_v25, %v5796_v55 }
 0x67c   :  { %v4139_v59 = vmul.f32 -1.442695, %v2554_v16 }
 0x67e   :  { %4949 = vpow2.f32 %v4139_v59 }
 0x67f   :  { %4951 = vpow2.f32 %v4136_v1 }
 0x680   :  { %4953 = vpow2.f32 %v4137_v32 }
 0x687   :  { %v4948_v51 = vpop.eup %4947 }
 0x688   :  { %v2561_v20 = vadd.f32 1.0, %v4948_v51 }
 0x68a   :  { %4955 = vrcp.f32 %v2561_v20 }
 0x68b   :  { %v4950_v45 = vpop.eup %4949 }
 0x68c   :  { %v2562_v54 = vadd.f32 1.0, %v4950_v45  ;;  %v4952_v39 = vpop.eup %4951 }
 0x68d   :  { %v2545_v29 = vadd.f32 1.0, %v4952_v39  ;;  %v4954_v30 = vpop.eup %4953 }
 0x68e   :  { %4957 = vrcp.f32 %v2562_v54  ;;  %v2546_v49 = vadd.f32 1.0, %v4954_v30 }
 0x68f   :  { %4959 = vrcp.f32 %v2545_v29 }
 0x697   :  { %v4956_v21 = vpop.eup %4955 }
 0x698   :  { %v2569_v50 = vmul.f32 %v4956_v21, %v2567_v41 }
 0x69a   :  { %v2571_v36 = vadd.f32 %v2569_v50, %v6426_v58  ;;  %v6428_v50 = vld [vmem:[#allocation47_spill] sm:$0xff] }
 0x69b   :  { %v4958_v27 = vpop.eup %4957 }
 0x69c   :  { %4961 = vtanh.f32 %v2571_v36  ;;  %v2570_v16 = vmul.f32 %v4958_v27, %v2568_v34  ;;  %v4960_v19 = vpop.eup %4959 }
 0x69d   :  { %4963 = vrcp.f32 %v2546_v49  ;;  %v2575_v59 = vsub.f32 1.0, %v4960_v19  ;;  %v2579_v11 = vmul.f32 %v4960_v19, %v6005_v33 }
 0x69e   :  { %v2572_v3 = vadd.f32 %v2570_v16, %v6427_v8 }
 0x6a0   :  { %4965 = vtanh.f32 %v2572_v3 }
 0x6a9   :  { %v4962_v1 = vpop.eup %4961 }
 0x6aa   :  { %v4964_v12 = vpop.eup %4963  ;;  %v2577_v32 = vmul.f32 %v4962_v1, %v2575_v59 }
 0x6ab   :  { %v2576_v20 = vsub.f32 1.0, %v4964_v12  ;;  %v2580_v39 = vmul.f32 %v4964_v12, %v6008_v38 }
 0x6ac   :  { %v6062_v51 = vadd.f32 %v2579_v11, %v2577_v32 }
 0x6ad   :  { %v4966_v45 = vpop.eup %4965 }
 0x6ae   :  { %v2578_v54 = vmul.f32 %v4966_v45, %v2576_v20 }
 0x6b0   :  { %v6065_v57 = vadd.f32 %v2580_v39, %v2578_v54 }
 0x6b2   :  { %v6069_v29 = vpack.c.bf16 %v6065_v57, %v6062_v51 }
 0x6b4   :  { %2791 = vmatmul.mubr.bf16.vlgmr.msra.gmra.mxu0 %v6069_v29  ;;  %4544 = vmatmul.mubr.bf16.vlgmr.msra.gmra.mxu1 %v6069_v29 }
 0x6b5   :  { %3066 = vmatpush1.bf16.msra.mxu0 %v5874_v35  ;;  %3097 = vmatprep.mubr.bf16.mxu0 %v6414_v10  ;;  %v4815_v35 = vld [vmem:[#allocation14 + $0xb0] ss:$12 sps:$4 sm:$0xff]  }
 0x6b6   :  { %3067 = vmatprep.subr.bf16.mxu0 %v5878_v42  ;;  %4563 = vmatprep.mubr.msk.bf16.mxu1 %vm5318_vm0, %v6415_v44  ;;  %v4816_v42 = vld [vmem:[#allocation14 + $0x98] ss:$12 sps:$4 sm:$0xff]  }
 0x6b7   :  { %4548 = vmatpush3.bf16.msra.mxu1 %v4815_v35 }
 0x6b8   :  { %4549 = vmatprep.subr.bf16.mxu1 %v6415_v44 }
 0x6b9   :  { %3068 = vmatpush1.bf16.msra.mxu0 %v5881_v31  ;;  %v4817_v31 = vld [vmem:[#allocation14 + $0x80] ss:$12 sps:$4 sm:$0xff]  }
 0x6ba   :  { %3069 = vmatprep.subr.bf16.mxu0 %v5885_v6  ;;  %v4818_v6 = vld [vmem:[#allocation14 + $0x68] ss:$12 sps:$4 sm:$0xff]  }
 0x6bb   :  { %4550 = vmatpush3.bf16.msra.mxu1 %v4816_v42 }
 0x6bc   :  { %4551 = vmatprep.subr.bf16.mxu1 %v6415_v44 }
 0x6bd   :  { %3070 = vmatpush1.bf16.msra.mxu0 %v5888_v2  ;;  %v4819_v2 = vld [vmem:[#allocation14 + $0x50] ss:$12 sps:$4 sm:$0xff]  }
 0x6be   :  { %3071 = vmatprep.subr.bf16.mxu0 %v5894_v47  ;;  %v4821_v47 = vld [vmem:[#allocation14 + $0x20] ss:$12 sps:$4 sm:$0xff]  }
 0x6bf   :  { %4552 = vmatpush3.bf16.msra.mxu1 %v4817_v31 }
 0x6c0   :  { %4553 = vmatprep.subr.bf16.mxu1 %v6415_v44 }
 0x6c1   :  { %3072 = vmatpush1.bf16.msra.mxu0 %v5892_v23  ;;  %v4820_v23 = vld [vmem:[#allocation14 + $0x38] ss:$12 sps:$4 sm:$0xff]  }
 0x6c2   :  { %3073 = vmatprep.subr.bf16.mxu0 %v5897_v43  ;;  %v4822_v43 = vld [vmem:[#allocation14 + $0x8] ss:$12 sps:$4 sm:$0xff]  }
 0x6c3   :  { %4554 = vmatpush3.bf16.msra.mxu1 %v4818_v6  ;;  %v6429_v6 = vld [vmem:[#allocation33_spill] sm:$0xff] }
 0x6c4   :  { %4555 = vmatprep.subr.bf16.mxu1 %v6415_v44 }
 0x6c5   :  { %3074 = vmatpush1.bf16.msra.mxu0 %v5901_v9 }
 0x6c6   :  { %3075 = vmatprep.subr.bf16.mxu0 %v5905_v13 }
 0x6c7   :  { %4556 = vmatpush3.bf16.msra.mxu1 %v4819_v2 }
 0x6c8   :  { %4557 = vmatprep.subr.bf16.mxu1 %v6415_v44 }
 0x6c9   :  { %3076 = vmatpush1.bf16.msra.mxu0 %v5908_v15 }
 0x6ca   :  { %3077 = vmatprep.subr.bf16.mxu0 %v5912_v17 }
 0x6cb   :  { %4558 = vmatpush3.bf16.msra.mxu1 %v4820_v23 }
 0x6cc   :  { %4559 = vmatprep.subr.bf16.mxu1 %v6415_v44 }
 0x6cd   :  { %3078 = vmatpush1.bf16.msra.mxu0 %v5915_v18 }
 0x6ce   :  { %3079 = vmatprep.subr.bf16.mxu0 %v5919_v22 }
 0x6cf   :  { %4560 = vmatpush3.bf16.msra.mxu1 %v4821_v47 }
 0x6d0   :  { %4561 = vmatprep.subr.bf16.mxu1 %v6415_v44 }
 0x6d1   :  { %3080 = vmatpush1.bf16.msra.mxu0 %v5922_v26 }
 0x6d3   :  { %4562 = vmatpush3.bf16.msra.mxu1 %v4822_v43 }
 0x6d4   :  { %4567 = vmatprep.subr.bf16.mxu1 %v6415_v44 }
 0x774   :  { %v2792_v9 = vpop.f32.mrf.mxu0  ;;  %v2835_v13 = vpop.f32.mrf.mxu1 }
 0x775   :  { %v2793_v33 = vadd.f32 %v2792_v9, %v5710_v24  ;;  %v2836_v20 = vadd.f32 %v2835_v13, %v5780_v28  ;;  %v6430_v9 = vld [vmem:[#allocation35_spill] sm:$0xff] }
 0x776   :  { %v2794_v15 = vpop.f32.mrf.mxu0  ;;  %v4545_v17 = vpop.f32.mrf.mxu1 }
 0x777   :  { %v2795_v18 = vadd.f32 %v2794_v15, %v5685_v56  ;;  %v2842_v49 = vadd.f32 %v2793_v33, %v6428_v50 }
 0x778   :  { %v2796_v22 = vpop.f32.mrf.mxu0  ;;  %v2838_v26 = vpop.f32.mrf.mxu1 }
 0x779   :  { %v2858_v38 = vadd.f32 %v2795_v18, %v5740_v5  ;;  %v2797_v36 = vadd.f32 %v2796_v22, %v5710_v24  ;;  %v2844_v16 = vadd.f32 %v2842_v49, %v5747_v52  ;;  %v2839_v35 = vadd.f32 %v2838_v26, %v5780_v28 }
 0x77a   :  { %v2798_v30 = vpop.f32.mrf.mxu0  ;;  %v4546_v41 = vpop.f32.mrf.mxu1 }
 0x77b   :  { %v2860_v21 = vadd.f32 %v2858_v38, %v5713_v14  ;;  %v2799_v25 = vadd.f32 %v2798_v30, %v5685_v56  ;;  %v2843_v5 = vadd.f32 %v2797_v36, %v5744_v61  ;;  %v4164_v3 = vmul.f32 -1.442695, %v2844_v16  ;;  %v4826_v36 = vld [vmem:[#allocation14 + $0xb0] ss:$12 sps:$4 sm:$0xff]  }
 0x77c   :  { %v2874_v61 = vadd.f32 %v2836_v20, %v5789_v0  ;;  %v2875_v23 = vadd.f32 %v2839_v35, %v5796_v55  ;;  %v4833_v16 = vld [vmem:[#allocation14 + $0x7c] ss:$12 sps:$4 sm:$0xff]  }
 0x77d   :  { %v4166_v58 = vmul.f32 -1.442695, %v2860_v21  ;;  %v2859_v34 = vadd.f32 %v2799_v25, %v5753_v4  ;;  %v2845_v19 = vadd.f32 %v2843_v5, %v5750_v40  ;;  %v4831_v5 = vld [vmem:[#allocation14 + $0x78] ss:$12 sps:$4 sm:$0xff]   ;;  %v4849_v20 = vld [vmem:[#allocation14 + $0x1c] ss:$12 sps:$4 sm:$0xff]  }
 0x77e   :  { %v4854_v35 = vld [vmem:[#allocation14 + $0x8] ss:$12 sps:$4 sm:$0xff]  }
 0x77f   :  { %4967 = vpow2.f32 %v4166_v58  ;;  %v2861_v27 = vadd.f32 %v2859_v34, %v5733_v48  ;;  %v4165_v59 = vmul.f32 -1.442695, %v2845_v19  ;;  %v4823_v58 = vld [vmem:[#allocation14 + $0xa8] ss:$12 sps:$4 sm:$0xff]   ;;  %v4827_v34 = vld [vmem:[#allocation14 + $0x90] ss:$12 sps:$4 sm:$0xff]  }
 0x780   :  { %v4838_v19 = vld [vmem:[#allocation14 + $0x68] ss:$12 sps:$4 sm:$0xff]  }
 0x781   :  { %v4167_v8 = vmul.f32 -1.442695, %v2861_v27  ;;  %v4830_v27 = vld [vmem:[#allocation14 + $0x98] ss:$12 sps:$4 sm:$0xff]  }
 0x783   :  { %4969 = vpow2.f32 %v4167_v8  ;;  %v4837_v8 = vld [vmem:[#allocation14 + $0x64] ss:$12 sps:$4 sm:$0xff]  }
 0x784   :  { %4971 = vpow2.f32 %v4164_v3  ;;  %v4835_v3 = vld [vmem:[#allocation14 + $0x60] ss:$12 sps:$4 sm:$0xff]  }
 0x785   :  { %4973 = vpow2.f32 %v4165_v59  ;;  %v4841_v59 = vld [vmem:[#allocation14 + $0x4c] ss:$12 sps:$4 sm:$0xff]  }
 0x78c   :  { %v4968_v1 = vpop.eup %4967 }
 0x78d   :  { %v2868_v12 = vadd.f32 1.0, %v4968_v1  ;;  %v4839_v1 = vld [vmem:[#allocation14 + $0x48] ss:$12 sps:$4 sm:$0xff]  }
 0x78f   :  { %4975 = vrcp.f32 %v2868_v12  ;;  %v4842_v12 = vld [vmem:[#allocation14 + $0x50] ss:$12 sps:$4 sm:$0xff]  }
 0x790   :  { %v4970_v32 = vpop.eup %4969 }
 0x791   :  { %v2869_v4 = vadd.f32 1.0, %v4970_v32  ;;  %v4972_v11 = vpop.eup %4971  ;;  %v4845_v32 = vld [vmem:[#allocation14 + $0x34] ss:$12 sps:$4 sm:$0xff]  }
 0x792   :  { %v2852_v45 = vadd.f32 1.0, %v4972_v11  ;;  %v4974_v54 = vpop.eup %4973  ;;  %v4846_v11 = vld [vmem:[#allocation14 + $0x38] ss:$12 sps:$4 sm:$0xff]  }
 0x793   :  { %4977 = vrcp.f32 %v2869_v4  ;;  %v2853_v31 = vadd.f32 1.0, %v4974_v54  ;;  %v4843_v4 = vld [vmem:[#allocation14 + $0x30] ss:$12 sps:$4 sm:$0xff]   ;;  %v4850_v54 = vld [vmem:[#allocation14 + $0x20] ss:$12 sps:$4 sm:$0xff]  }
 0x794   :  { %4979 = vrcp.f32 %v2852_v45  ;;  %v4847_v45 = vld [vmem:[#allocation14 + $0x18] ss:$12 sps:$4 sm:$0xff]  }
 0x79c   :  { %v4976_v39 = vpop.eup %4975 }
 0x79d   :  { %v2876_v42 = vmul.f32 %v4976_v39, %v2874_v61  ;;  %v4853_v61 = vld [vmem:[#allocation14 + $0x4] ss:$12 sps:$4 sm:$0xff]   ;;  %v4851_v39 = vld [vmem:[#allocation14] ss:$12 sps:$4 sm:$0xff]  }
 0x79f   :  { %v2878_v2 = vadd.f32 %v2876_v42, %v6429_v6  ;;  %v6138_v42 = vld [vmem:[#allocation17 + $0x38] sm:$0xff]  }
 0x7a0   :  { %v4978_v47 = vpop.eup %4977 }
 0x7a1   :  { %4981 = vtanh.f32 %v2878_v2  ;;  %v2877_v43 = vmul.f32 %v4978_v47, %v2875_v23  ;;  %v4980_v15 = vpop.eup %4979 }
 0x7a2   :  { %4983 = vrcp.f32 %v2853_v31  ;;  %v2882_v17 = vsub.f32 1.0, %v4980_v15  ;;  %v2886_v26 = vmul.f32 %v4980_v15, %v6062_v51  ;;  %v4825_v51 = vld [vmem:[#allocation14 + $0xac] ss:$12 sps:$4 sm:$0xff]  }
 0x7a3   :  { %v2879_v13 = vadd.f32 %v2877_v43, %v6430_v9  ;;  %3372 = vmatprep.subr.bf16.mxu0 %v4825_v51  ;;  %v6431_v51 = vld [vmem:[#allocation48_spill] sm:$0xff] }
 0x7a5   :  { %4985 = vtanh.f32 %v2879_v13 }
 0x7ae   :  { %v4982_v18 = vpop.eup %4981 }
 0x7af   :  { %v4984_v22 = vpop.eup %4983  ;;  %v2884_v33 = vmul.f32 %v4982_v18, %v2882_v17 }
 0x7b0   :  { %v2883_v30 = vsub.f32 1.0, %v4984_v22  ;;  %v2887_v25 = vmul.f32 %v4984_v22, %v6065_v57  ;;  %v4829_v57 = vld [vmem:[#allocation14 + $0x94] ss:$12 sps:$4 sm:$0xff]  }
 0x7b1   :  { %v6118_v38 = vadd.f32 %v2886_v26, %v2884_v33 }
 0x7b2   :  { %v4986_v41 = vpop.eup %4985 }
 0x7b3   :  { %v2885_v21 = vmul.f32 %v4986_v41, %v2883_v30 }
 0x7b5   :  { %v6121_v50 = vadd.f32 %v2887_v25, %v2885_v21 }
 0x7b7   :  { %v6125_v49 = vpack.c.bf16 %v6121_v50, %v6118_v38 }
 0x7b9   :  { %3098 = vmatmul.mubr.bf16.vlgmr.msra.gmra.mxu0 %v6125_v49  ;;  %4564 = vmatmul.mubr.bf16.vlgmr.msra.gmra.mxu1 %v6125_v49 }
 0x7ba   :  { %3404 = vmatprep.mubr.bf16.mxu0 %v6414_v10  ;;  %4583 = vmatprep.mubr.msk.bf16.mxu1 %vm5318_vm0, %v6415_v44  ;;  %v4834_v10 = vld [vmem:[#allocation14 + $0x80] ss:$12 sps:$4 sm:$0xff]  }
 0x7bb   :  { %3373 = vmatpush1.bf16.msra.mxu0 %v4823_v58  ;;  %4568 = vmatpush3.bf16.msra.mxu1 %v4826_v36 }
 0x7bc   :  { %4569 = vmatprep.subr.bf16.mxu1 %v6415_v44  ;;  %3374 = vmatprep.subr.bf16.mxu0 %v4829_v57 }
 0x7bf   :  { %3375 = vmatpush1.bf16.msra.mxu0 %v4827_v34  ;;  %4570 = vmatpush3.bf16.msra.mxu1 %v4830_v27 }
 0x7c0   :  { %4571 = vmatprep.subr.bf16.mxu1 %v6415_v44  ;;  %3376 = vmatprep.subr.bf16.mxu0 %v4833_v16 }
 0x7c3   :  { %3377 = vmatpush1.bf16.msra.mxu0 %v4831_v5  ;;  %4572 = vmatpush3.bf16.msra.mxu1 %v4834_v10 }
 0x7c4   :  { %4573 = vmatprep.subr.bf16.mxu1 %v6415_v44  ;;  %3378 = vmatprep.subr.bf16.mxu0 %v4837_v8 }
 0x7c7   :  { %3379 = vmatpush1.bf16.msra.mxu0 %v4835_v3  ;;  %4574 = vmatpush3.bf16.msra.mxu1 %v4838_v19 }
 0x7c8   :  { %3380 = vmatprep.subr.bf16.mxu0 %v4841_v59  ;;  %4575 = vmatprep.subr.bf16.mxu1 %v6415_v44 }
 0x7cb   :  { %3381 = vmatpush1.bf16.msra.mxu0 %v4839_v1  ;;  %4576 = vmatpush3.bf16.msra.mxu1 %v4842_v12 }
 0x7cc   :  { %3382 = vmatprep.subr.bf16.mxu0 %v4845_v32  ;;  %4577 = vmatprep.subr.bf16.mxu1 %v6415_v44 }
 0x7cf   :  { %3383 = vmatpush1.bf16.msra.mxu0 %v4843_v4  ;;  %4578 = vmatpush3.bf16.msra.mxu1 %v4846_v11  ;;  %v6432_v4 = vld [vmem:[#allocation40_spill] sm:$0xff] }
 0x7d0   :  { %3384 = vmatprep.subr.bf16.mxu0 %v4849_v20  ;;  %4579 = vmatprep.subr.bf16.mxu1 %v6415_v44 }
 0x7d3   :  { %3385 = vmatpush1.bf16.msra.mxu0 %v4847_v45  ;;  %4580 = vmatpush3.bf16.msra.mxu1 %v4850_v54 }
 0x7d4   :  { %3386 = vmatprep.subr.bf16.mxu0 %v4853_v61  ;;  %4581 = vmatprep.subr.bf16.mxu1 %v6415_v44  ;;  %v6433_v61 = vld [vmem:[#allocation44_spill] sm:$0xff] }
 0x7d7   :  { %3387 = vmatpush1.bf16.msra.mxu0 %v4851_v39  ;;  %4582 = vmatpush3.bf16.msra.mxu1 %v4854_v35 }
 0x7d8   :  { %4587 = vmatprep.subr.bf16.mxu0 %v6138_v42 }
 0x879   :  { %v3099_v31 = vpop.f32.mrf.mxu0  ;;  %v3142_v6 = vpop.f32.mrf.mxu1 }
 0x87a   :  { %v3100_v13 = vadd.f32 %v3099_v31, %v5710_v24  ;;  %v3143_v10 = vadd.f32 %v3142_v6, %v5780_v28 }
 0x87b   :  { %v3101_v2 = vpop.f32.mrf.mxu0  ;;  %v4565_v23 = vpop.f32.mrf.mxu1 }
 0x87c   :  { %v3102_v47 = vadd.f32 %v3101_v2, %v5685_v56  ;;  %v3149_v33 = vadd.f32 %v3100_v13, %v5758_v37  ;;  %v3181_v19 = vadd.f32 %v3143_v10, %v5789_v0 }
 0x87d   :  { %v3103_v43 = vpop.f32.mrf.mxu0  ;;  %v3145_v9 = vpop.f32.mrf.mxu1 }
 0x87e   :  { %v3165_v15 = vadd.f32 %v3102_v47, %v5761_v53  ;;  %v3104_v30 = vadd.f32 %v3103_v43, %v5710_v24  ;;  %v3151_v25 = vadd.f32 %v3149_v33, %v5747_v52  ;;  %v3146_v1 = vadd.f32 %v3145_v9, %v5780_v28  ;;  %v4858_v33 = vld [vmem:[#allocation17 + $0x20] sm:$0xff]  }
 0x87f   :  { %v3105_v17 = vpop.f32.mrf.mxu0  ;;  %v4566_v18 = vpop.f32.mrf.mxu1 }
 0x880   :  { %v3167_v44 = vadd.f32 %v3165_v15, %v5713_v14  ;;  %v3106_v22 = vadd.f32 %v3105_v17, %v5685_v56  ;;  %v3150_v53 = vadd.f32 %v3104_v30, %v6431_v51  ;;  %v4192_v36 = vmul.f32 -1.442695, %v3151_v25  ;;  %v4861_v30 = vld [vmem:[#allocation17 + $0x8] sm:$0xff]  }
 0x881   :  { %v3182_v20 = vadd.f32 %v3146_v1, %v5796_v55 }
 0x882   :  { %v4194_v26 = vmul.f32 -1.442695, %v3167_v44  ;;  %v3166_v41 = vadd.f32 %v3106_v22, %v5767_v63  ;;  %v3152_v57 = vadd.f32 %v3150_v53, %v5750_v40  ;;  %v4856_v22 = vld [vmem:[#allocation17 + $0x30] sm:$0xff]  }
 0x884   :  { %4987 = vpow2.f32 %v4194_v26  ;;  %v3168_v21 = vadd.f32 %v3166_v41, %v5733_v48  ;;  %v4193_v34 = vmul.f32 -1.442695, %v3152_v57  ;;  %v4860_v26 = vld [vmem:[#allocation17 + $0x10] sm:$0xff]   ;;  %v4862_v41 = vld [vmem:[#allocation17] sm:$0xff]  }
 0x886   :  { %v4195_v58 = vmul.f32 -1.442695, %v3168_v21 }
 0x888   :  { %4989 = vpow2.f32 %v4195_v58 }
 0x889   :  { %4991 = vpow2.f32 %v4192_v36 }
 0x88a   :  { %4993 = vpow2.f32 %v4193_v34 }
 0x891   :  { %v4988_v37 = vpop.eup %4987 }
 0x892   :  { %v3175_v27 = vadd.f32 1.0, %v4988_v37 }
 0x894   :  { %4995 = vrcp.f32 %v3175_v27 }
 0x895   :  { %v4990_v16 = vpop.eup %4989 }
 0x896   :  { %v3176_v63 = vadd.f32 1.0, %v4990_v16  ;;  %v4992_v5 = vpop.eup %4991 }
 0x897   :  { %v3159_v8 = vadd.f32 1.0, %v4992_v5  ;;  %v4994_v3 = vpop.eup %4993 }
 0x898   :  { %4997 = vrcp.f32 %v3176_v63  ;;  %v3160_v32 = vadd.f32 1.0, %v4994_v3  ;;  %v6436_v63 = vld [vmem:[#allocation52_spill] sm:$0xff]  ;;  %v6437_v3 = vld [vmem:[#allocation51_spill] sm:$0xff] }
 0x899   :  { %4999 = vrcp.f32 %v3159_v8 }
 0x8a1   :  { %v4996_v59 = vpop.eup %4995 }
 0x8a2   :  { %v3183_v12 = vmul.f32 %v4996_v59, %v3181_v19 }
 0x8a4   :  { %v3185_v11 = vadd.f32 %v3183_v12, %v6432_v4 }
 0x8a5   :  { %v4998_v45 = vpop.eup %4997 }
 0x8a6   :  { %5001 = vtanh.f32 %v3185_v11  ;;  %v3184_v54 = vmul.f32 %v4998_v45, %v3182_v20  ;;  %v5000_v35 = vpop.eup %4999 }
 0x8a7   :  { %5003 = vrcp.f32 %v3160_v32  ;;  %v3189_v31 = vsub.f32 1.0, %v5000_v35  ;;  %v3193_v47 = vmul.f32 %v5000_v35, %v6118_v38  ;;  %v4857_v38 = vld [vmem:[#allocation17 + $0x28] sm:$0xff]  }
 0x8a8   :  { %v3186_v39 = vadd.f32 %v3184_v54, %v6433_v61 }
 0x8aa   :  { %5005 = vtanh.f32 %v3186_v39 }
 0x8b3   :  { %v5002_v6 = vpop.eup %5001 }
 0x8b4   :  { %v5004_v2 = vpop.eup %5003  ;;  %v3191_v23 = vmul.f32 %v5002_v6, %v3189_v31 }
 0x8b5   :  { %v3190_v9 = vsub.f32 1.0, %v5004_v2  ;;  %v3194_v17 = vmul.f32 %v5004_v2, %v6121_v50  ;;  %v4859_v50 = vld [vmem:[#allocation17 + $0x18] sm:$0xff]  }
 0x8b6   :  { %v6161_v43 = vadd.f32 %v3193_v47, %v3191_v23 }
 0x8b7   :  { %v5006_v13 = vpop.eup %5005 }
 0x8b8   :  { %v3192_v15 = vmul.f32 %v5006_v13, %v3190_v9 }
 0x8ba   :  { %v6164_v18 = vadd.f32 %v3194_v17, %v3192_v15 }
 0x8bc   :  { %v3211_v44 = vpack.c.bf16 %v6164_v18, %v6161_v43 }
 0x8be   :  { %3405 = vmatmul.mubr.bf16.vlgmr.msra.gmra.mxu0 %v3211_v44  ;;  %4584 = vmatmul.mubr.bf16.vlgmr.msra.gmra.mxu1 %v3211_v44 }
 0x8bf   :  { %4588 = vmatpush3.bf16.msra.mxu0 %v6138_v42  ;;  %4603 = vmatprep.mubr.bf16.mxu0 %v5809_v60 }
 0x8c0   :  { %4589 = vmatprep.subr.bf16.mxu0 %v4856_v22 }
 0x8c3   :  { %4590 = vmatpush3.bf16.msra.mxu0 %v4856_v22 }
 0x8c4   :  { %4591 = vmatprep.subr.bf16.mxu0 %v4857_v38 }
 0x8c7   :  { %4592 = vmatpush3.bf16.msra.mxu0 %v4857_v38  ;;  %v6438_v38 = vld [vmem:[#allocation38_spill] sm:$0xff] }
 0x8c8   :  { %4593 = vmatprep.subr.bf16.mxu0 %v4858_v33 }
 0x8cb   :  { %4594 = vmatpush3.bf16.msra.mxu0 %v4858_v33 }
 0x8cc   :  { %4595 = vmatprep.subr.bf16.mxu0 %v4859_v50 }
 0x8cf   :  { %4596 = vmatpush3.bf16.msra.mxu0 %v4859_v50 }
 0x8d0   :  { %4597 = vmatprep.subr.bf16.mxu0 %v4860_v26 }
 0x8d3   :  { %4598 = vmatpush3.bf16.msra.mxu0 %v4860_v26 }
 0x8d4   :  { %4599 = vmatprep.subr.bf16.mxu0 %v4861_v30 }
 0x8d7   :  { %4600 = vmatpush3.bf16.msra.mxu0 %v4861_v30 }
 0x8d8   :  { %4601 = vmatprep.subr.bf16.mxu0 %v4862_v41 }
 0x8db   :  { %4602 = vmatpush3.bf16.msra.mxu0 %v4862_v41 }
 0x8de   :  { %4604 = vmatmul.mubr.bf16.vlgmr.msra.gmra.mxu0 %v5865_v7  ;;  %v6434_v7 = vld [vmem:[#allocation50_spill] sm:$0xff] }
 0x8df   :  { %4607 = vmatprep.mubr.bf16.mxu0 %v5955_v46 }
 0x8e6   :  { %4608 = vmatmul.mubr.bf16.gmra.mxu0 %v6012_v62 }
 0x8e7   :  { %4611 = vmatprep.mubr.bf16.mxu0 %v6069_v29 }
 0x8ee   :  { %4612 = vmatmul.mubr.bf16.gmra.mxu0 %v6125_v49  ;;  %v6435_v49 = vld [vmem:[#allocation49_spill] sm:$0xff] }
 0x8ef   :  { %4615 = vmatprep.mubr.bf16.mxu0 %v3211_v44 }
 0x97e   :  { %v3406_v60 = vpop.f32.mrf.mxu0  ;;  %v3449_v42 = vpop.f32.mrf.mxu1 }
 0x97f   :  { %v3407_v36 = vadd.f32 %v3406_v60, %v5710_v24  ;;  %v3450_v45 = vadd.f32 %v3449_v42, %v5780_v28 }
 0x980   :  { %v3408_v21 = vpop.f32.mrf.mxu0  ;;  %v4585_v25 = vpop.f32.mrf.mxu1 }
 0x981   :  { %v3409_v51 = vadd.f32 %v3408_v21, %v5685_v56  ;;  %v3456_v37 = vadd.f32 %v3407_v36, %v6435_v49  ;;  %v3488_v2 = vadd.f32 %v3450_v45, %v5789_v0  ;;  %v6439_v21 = vld [vmem:[#allocation42_spill] sm:$0xff] }
 0x982   :  { %v3410_v53 = vpop.f32.mrf.mxu0  ;;  %v3452_v58 = vpop.f32.mrf.mxu1 }
 0x983   :  { %v3472_v57 = vadd.f32 %v3409_v51, %v6434_v7  ;;  %v3411_v16 = vadd.f32 %v3410_v53, %v5710_v24  ;;  %v3458_v8 = vadd.f32 %v3456_v37, %v5747_v52  ;;  %v3453_v9 = vadd.f32 %v3452_v58, %v5780_v28 }
 0x984   :  { %v3412_v46 = vpop.f32.mrf.mxu0  ;;  %v4586_v34 = vpop.f32.mrf.mxu1 }
 0x985   :  { %v3474_v62 = vadd.f32 %v3472_v57, %v5713_v14  ;;  %v3413_v29 = vadd.f32 %v3412_v46, %v5685_v56  ;;  %v3457_v19 = vadd.f32 %v3411_v16, %v6437_v3  ;;  %v4220_v1 = vmul.f32 -1.442695, %v3458_v8 }
 0x986   :  { %v3489_v33 = vadd.f32 %v3453_v9, %v5796_v55 }
 0x987   :  { %v4222_v27 = vmul.f32 -1.442695, %v3474_v62  ;;  %v3473_v5 = vadd.f32 %v3413_v29, %v6436_v63  ;;  %v3459_v14 = vadd.f32 %v3457_v19, %v5750_v40 }
 0x989   :  { %5007 = vpow2.f32 %v4222_v27  ;;  %v3475_v10 = vadd.f32 %v3473_v5, %v5733_v48  ;;  %v4221_v56 = vmul.f32 -1.442695, %v3459_v14  ;;  %v6190_v48 = vld [vmem:[%s6383_s11] ss:$0 sm:$0xff]  ;;  %s5320_s11 = smov [#allocation20]  }
 0x98a   :  { %s3914_s26 = sshll.u32 %s5320_s11, 4  ;;  %s3915_s26 = int_to_ptr.vmem [resolvable:$true] %s3914_s26 }
 0x98b   :  { %v4223_v59 = vmul.f32 -1.442695, %v3475_v10  ;;  %s5251_s17 = scalar_lea.vmem %s3915_s26, 256  ;;  %p5256_p13 = scmp.lt.s32.totalorder %s3915_s26, %s3915_s26 }
 0x98c   :  { %p5252_p12 = scmp.ne.s32.totalorder %s3915_s26, %s5251_s17  ;;  %p5257_p0 = scmp.lt.s32.totalorder %s5251_s17, %s5251_s17 }
 0x98d   :  { %5009 = vpow2.f32 %v4223_v59 }
 0x98e   :  { %5011 = vpow2.f32 %v4220_v1  ;;  %p5258_p1 = por %p5257_p0, %p5256_p13 }
 0x98f   :  { %5013 = vpow2.f32 %v4221_v56 }
 0x990   :  { %p5259_p2 = pnand %p5258_p1, %p5252_p12 }
 0x996   :  { %v5008_v12 = vpop.eup %5007 }
 0x997   :  { %v3482_v32 = vadd.f32 1.0, %v5008_v12 }
 0x999   :  { %5015 = vrcp.f32 %v3482_v32 }
 0x99a   :  { %v5010_v24 = vpop.eup %5009 }
 0x99b   :  { %v3483_v4 = vadd.f32 1.0, %v5010_v24  ;;  %v5012_v20 = vpop.eup %5011 }
 0x99c   :  { %v3466_v39 = vadd.f32 1.0, %v5012_v20  ;;  %v5014_v6 = vpop.eup %5013 }
 0x99d   :  { %5017 = vrcp.f32 %v3483_v4  ;;  %v3467_v17 = vadd.f32 1.0, %v5014_v6 }
 0x99e   :  { %v4605_v52 = vpop.f32.mrf.mxu0  ;;  %5019 = vrcp.f32 %v3466_v39 }
 0x99f   :  { %v6193_v11 = vadd.f32 %v4605_v52, %v6190_v48 }
 0x9a0   :  { %v3642_v40 = vpop.f32.mrf.mxu0 }
 0x9a1   :  { %v6197_v54 = vadd.f32 %v6190_v48, %v3642_v40  ;;  %3709 = vmax.xlane.f32.xlu1 %v6193_v11 }
 0x9a2   :  { %v4606_v61 = vpop.f32.mrf.mxu0 }
 0x9a3   :  { %v6201_v35 = vadd.f32 %v4606_v61, %v6190_v48  ;;  %3705 = vmax.xlane.f32.xlu0 %v6197_v54 }
 0x9a4   :  { %v3645_v31 = vpop.f32.mrf.mxu0 }
 0x9a5   :  { %v6206_v23 = vadd.f32 %v6190_v48, %v3645_v31  ;;  %3711 = vmax.xlane.f32.xlu1 %v6201_v35 }
 0x9a6   :  { %v5016_v47 = vpop.eup %5015  ;;  %v4609_v13 = vpop.f32.mrf.mxu0 }
 0x9a7   :  { %v3490_v15 = vmul.f32 %v5016_v47, %v3488_v2  ;;  %3707 = vmax.xlane.f32.xlu0 %v6206_v23  ;;  %v6212_v22 = vadd.f32 %v4609_v13, %v6190_v48 }
 0x9a8   :  { %v3658_v44 = vpop.f32.mrf.mxu0 }
 0x9a9   :  { %v3492_v0 = vadd.f32 %v3490_v15, %v6438_v38  ;;  %v6221_v60 = vadd.f32 %v6190_v48, %v3658_v44 }
 0x9aa   :  { %v4610_v50 = vpop.f32.mrf.mxu0  ;;  %v5018_v26 = vpop.eup %5017 }
 0x9ab   :  { %v6217_v30 = vadd.f32 %v4610_v50, %v6190_v48  ;;  %3717 = vmax.xlane.f32.xlu0 %v6212_v22  ;;  %5021 = vtanh.f32 %v3492_v0  ;;  %v3491_v28 = vmul.f32 %v5018_v26, %v3489_v33  ;;  %v5020_v7 = vpop.eup %5019 }
 0x9ac   :  { %5023 = vrcp.f32 %v3467_v17  ;;  %v3661_v41 = vpop.f32.mrf.mxu0  ;;  %v3496_v62 = vsub.f32 1.0, %v5020_v7  ;;  %v3500_v27 = vmul.f32 %v5020_v7, %v6161_v43 }
 0x9ad   :  { %3719 = vmax.xlane.f32.xlu1 %v6217_v30  ;;  %v3493_v25 = vadd.f32 %v3491_v28, %v6439_v21  ;;  %v6226_v55 = vadd.f32 %v6190_v48, %v3661_v41 }
 0x9ae   :  { %v4613_v42 = vpop.f32.mrf.mxu0 }
 0x9af   :  { %3713 = vmax.xlane.f32.xlu0 %v6221_v60  ;;  %5025 = vtanh.f32 %v3493_v25  ;;  %v6230_v53 = vadd.f32 %v4613_v42, %v6190_v48 }
 0x9b0   :  { %v3674_v51 = vpop.f32.mrf.mxu0 }
 0x9b1   :  { %3715 = vmax.xlane.f32.xlu1 %v6226_v55  ;;  %v6238_v46 = vadd.f32 %v6190_v48, %v3674_v51 }
 0x9b2   :  { %v4614_v58 = vpop.f32.mrf.mxu0 }
 0x9b3   :  { %v6234_v36 = vadd.f32 %v4614_v58, %v6190_v48  ;;  %3725 = vmax.xlane.f32.xlu0 %v6230_v53 }
 0x9b4   :  { %v3677_v57 = vpop.f32.mrf.mxu0 }
 0x9b5   :  { %3727 = vmax.xlane.f32.xlu1 %v6234_v36  ;;  %v6242_v34 = vadd.f32 %v6190_v48, %v3677_v57 }
 0x9b7   :  { %3721 = vmax.xlane.f32.xlu0 %v6238_v46 }
 0x9b8   :  { %v5022_v29 = vpop.eup %5021 }
 0x9b9   :  { %v5024_v49 = vpop.eup %5023  ;;  %3723 = vmax.xlane.f32.xlu1 %v6242_v34  ;;  %v3498_v37 = vmul.f32 %v5022_v29, %v3496_v62 }
 0x9ba   :  { %v3497_v63 = vsub.f32 1.0, %v5024_v49  ;;  %v3501_v8 = vmul.f32 %v5024_v49, %v6164_v18 }
 0x9bb   :  { %v3502_v16 = vadd.f32 %v3500_v27, %v3498_v37 }
 0x9bc   :  { %v5026_v5 = vpop.eup %5025 }
 0x9bd   :  { %3511 = vst [vmem:[#allocation20] sm:$0xff] %v3502_v16  ;;  %v3499_v10 = vmul.f32 %v5026_v5, %v3497_v63 }
 0x9bf   :  { %v3503_v3 = vadd.f32 %v3501_v8, %v3499_v10 }
 0x9c1   :  { %3512 = vst [vmem:[#allocation20 + $0x8] sm:$0xff] %v3503_v3  ;;  %v3536_v19 = vpack.c.bf16 %v3503_v3, %v3502_v16 }
 0x9c3   :  { %4616 = vmatmul.mubr.bf16.gmra.mxu0 %v3536_v19 }
 0xa2a   :  { %v6250_v1 = vpop.xlane.xlu1 %3709 }
 0xa2b   :  { %v3739_v24 = vsub.f32 %v6193_v11, %v6250_v1 }
 0xa2c   :  { %v6248_v59 = vpop.xlane.xlu0 %3705 }
 0xa2d   :  { %v3737_v32 = vsub.f32 %v6197_v54, %v6248_v59  ;;  %v3757_v45 = vmul.f32 1.442695, %v3739_v24 }
 0xa2e   :  { %v6254_v56 = vpop.xlane.xlu1 %3711 }
 0xa2f   :  { %v3753_v4 = vmul.f32 1.442695, %v3737_v32  ;;  %v3740_v40 = vsub.f32 %v6201_v35, %v6254_v56 }
 0xa30   :  { %v6252_v14 = vpop.xlane.xlu0 %3707 }
 0xa31   :  { %v3738_v52 = vsub.f32 %v6206_v23, %v6252_v14  ;;  %5027 = vpow2.f32 %v3753_v4  ;;  %v3759_v2 = vmul.f32 1.442695, %v3740_v40 }
 0xa32   :  { %5029 = vpow2.f32 %v3757_v45 }
 0xa33   :  { %v3755_v31 = vmul.f32 1.442695, %v3738_v52 }
 0xa34   :  { %v6256_v43 = vpop.xlane.xlu0 %3717 }
 0xa35   :  { %v3743_v47 = vsub.f32 %v6212_v22, %v6256_v43  ;;  %5031 = vpow2.f32 %v3755_v31 }
 0xa36   :  { %v6258_v12 = vpop.xlane.xlu1 %3719  ;;  %5033 = vpow2.f32 %v3759_v2 }
 0xa37   :  { %v3765_v33 = vmul.f32 1.442695, %v3743_v47  ;;  %v3744_v50 = vsub.f32 %v6217_v30, %v6258_v12 }
 0xa38   :  { %v6262_v18 = vpop.xlane.xlu0 %3713 }
 0xa39   :  { %v3741_v61 = vsub.f32 %v6221_v60, %v6262_v18  ;;  %v3767_v51 = vmul.f32 1.442695, %v3744_v50 }
 0xa3a   :  { %v6268_v20 = vpop.xlane.xlu1 %3715 }
 0xa3b   :  { %v3761_v9 = vmul.f32 1.442695, %v3741_v61  ;;  %v3742_v17 = vsub.f32 %v6226_v55, %v6268_v20 }
 0xa3c   :  { %v6274_v39 = vpop.xlane.xlu0 %3725 }
 0xa3d   :  { %5035 = vpow2.f32 %v3761_v9  ;;  %v3763_v28 = vmul.f32 1.442695, %v3742_v17  ;;  %v3747_v58 = vsub.f32 %v6230_v53, %v6274_v39 }
 0xa3e   :  { %v6278_v13 = vpop.xlane.xlu1 %3727  ;;  %5037 = vpow2.f32 %v3765_v33  ;;  %v5028_v29 = vpop.eup %5027 }
 0xa3f   :  { %5039 = vpow2.f32 %v3763_v28  ;;  %v3773_v49 = vmul.f32 1.442695, %v3747_v58  ;;  %v5030_v37 = vpop.eup %5029  ;;  %v3748_v27 = vsub.f32 %v6234_v36, %v6278_v13 }
 0xa40   :  { %v6285_v38 = vpop.xlane.xlu0 %3721  ;;  %5041 = vpow2.f32 %v3767_v51 }
 0xa41   :  { %v3745_v41 = vsub.f32 %v6238_v46, %v6285_v38 }
 0xa42   :  { %v6298_v25 = vpop.xlane.xlu1 %3723  ;;  %v5032_v63 = vpop.eup %5031 }
 0xa43   :  { %v3769_v7 = vmul.f32 1.442695, %v3745_v41  ;;  %v3746_v57 = vsub.f32 %v6242_v34, %v6298_v25  ;;  %v5034_v5 = vpop.eup %5033 }
 0xa45   :  { %5043 = vpow2.f32 %v3769_v7  ;;  %v3771_v16 = vmul.f32 1.442695, %v3746_v57 }
 0xa46   :  { %5045 = vpow2.f32 %v3773_v49 }
 0xa47   :  { %5047 = vpow2.f32 %v3771_v16 }
 0xa4a   :  { %v5036_v10 = vpop.eup %5035 }
 0xa4b   :  { %v5038_v8 = vpop.eup %5037 }
 0xa4c   :  { %v5040_v3 = vpop.eup %5039 }
 0xa4d   :  { %v5042_v19 = vpop.eup %5041 }
 0xa52   :  { %v5044_v32 = vpop.eup %5043 }
 0xa53   :  { %v5046_v24 = vpop.eup %5045 }
 0xa54   :  { %v5048_v4 = vpop.eup %5047 }
 0xa83   :  { %v4617_v6 = vpop.f32.mrf.mxu0 }
 0xa84   :  { %v6293_v42 = vadd.f32 %v4617_v6, %v6190_v48 }
 0xa85   :  { %v3690_v15 = vpop.f32.mrf.mxu0 }
 0xa86   :  { %v6283_v44 = vadd.f32 %v6190_v48, %v3690_v15 }
 0xa87   :  { %v4618_v0 = vpop.f32.mrf.mxu0 }
 0xa88   :  { %3729 = vmax.xlane.f32.xlu0 %v6283_v44  ;;  %v6307_v62 = vadd.f32 %v4618_v0, %v6190_v48 }
 0xa89   :  { %v3693_v26 = vpop.f32.mrf.mxu0 }
 0xa8a   :  { %v6296_v21 = vadd.f32 %v6190_v48, %v3693_v26  ;;  %v3775_v48 = vmul.f32 1.442695, %v3748_v27 }
 0xa8c   :  { %3731 = vmax.xlane.f32.xlu1 %v6296_v21  ;;  %3733 = vmax.xlane.f32.xlu0 %v6293_v42  ;;  %5049 = vpow2.f32 %v3775_v48 }
 0xa90   :  { %3735 = vmax.xlane.f32.xlu1 %v6307_v62  ;;  %3785 = vadd.xlane.f32.xlu0 %v5028_v29 }
 0xa94   :  { %3787 = vadd.xlane.f32.xlu1 %v5032_v63  ;;  %3789 = vadd.xlane.f32.xlu0 %v5030_v37 }
 0xa98   :  { %3791 = vadd.xlane.f32.xlu1 %v5034_v5  ;;  %3793 = vadd.xlane.f32.xlu0 %v5036_v10 }
 0xa99   :  { %v5050_v52 = vpop.eup %5049 }
 0xa9c   :  { %3795 = vadd.xlane.f32.xlu1 %v5040_v3  ;;  %3797 = vadd.xlane.f32.xlu0 %v5038_v8 }
 0xaa0   :  { %3799 = vadd.xlane.f32.xlu1 %v5042_v19  ;;  %3801 = vadd.xlane.f32.xlu0 %v5044_v32 }
 0xaa4   :  { %3803 = vadd.xlane.f32.xlu1 %v5048_v4  ;;  %3805 = vadd.xlane.f32.xlu0 %v5046_v24 }
 0xaa8   :  { %3807 = vadd.xlane.f32.xlu1 %v5050_v52 }
 0xb11   :  { %v6312_v40 = vpop.xlane.xlu0 %3729 }
 0xb12   :  { %v3749_v45 = vsub.f32 %v6283_v44, %v6312_v40 }
 0xb14   :  { %v3777_v61 = vmul.f32 1.442695, %v3749_v45 }
 0xb15   :  { %v6316_v31 = vpop.xlane.xlu1 %3731  ;;  %v6318_v6 = vpop.xlane.xlu0 %3733 }
 0xb16   :  { %5051 = vpow2.f32 %v3777_v61  ;;  %v3750_v2 = vsub.f32 %v6296_v21, %v6316_v31  ;;  %v3751_v47 = vsub.f32 %v6293_v42, %v6318_v6 }
 0xb18   :  { %v3779_v9 = vmul.f32 1.442695, %v3750_v2  ;;  %v3781_v15 = vmul.f32 1.442695, %v3751_v47 }
 0xb19   :  { %v6324_v17 = vpop.xlane.xlu1 %3735  ;;  %v3786_v0 = vpop.xlane.xlu0 %3785 }
 0xb1a   :  { %5053 = vpow2.f32 %v3779_v9  ;;  %v3752_v33 = vsub.f32 %v6307_v62, %v6324_v17 }
 0xb1b   :  { %5055 = vpow2.f32 %v3781_v15 }
 0xb1c   :  { %v3783_v50 = vmul.f32 1.442695, %v3752_v33  ;;  %5057 = vlog2.f32 %v3786_v0 }
 0xb1d   :  { %v3788_v26 = vpop.xlane.xlu1 %3787  ;;  %v3790_v28 = vpop.xlane.xlu0 %3789 }
 0xb1e   :  { %5059 = vpow2.f32 %v3783_v50 }
 0xb1f   :  { %5061 = vlog2.f32 %v3788_v26 }
 0xb20   :  { %5063 = vlog2.f32 %v3790_v28 }
 0xb21   :  { %v3792_v41 = vpop.xlane.xlu1 %3791  ;;  %v3794_v51 = vpop.xlane.xlu0 %3793 }
 0xb22   :  { %5065 = vlog2.f32 %v3792_v41 }
 0xb23   :  { %v5052_v58 = vpop.eup %5051  ;;  %5067 = vlog2.f32 %v3794_v51 }
 0xb24   :  { %3809 = vadd.xlane.f32.xlu0 %v5052_v58 }
 0xb25   :  { %v3796_v7 = vpop.xlane.xlu1 %3795  ;;  %v3798_v57 = vpop.xlane.xlu0 %3797 }
 0xb26   :  { %5069 = vlog2.f32 %v3796_v7 }
 0xb27   :  { %v5054_v29 = vpop.eup %5053  ;;  %5071 = vlog2.f32 %v3798_v57 }
 0xb28   :  { %v5056_v49 = vpop.eup %5055  ;;  %3811 = vadd.xlane.f32.xlu1 %v5054_v29 }
 0xb29   :  { %v5058_v37 = vpop.eup %5057  ;;  %3813 = vadd.xlane.f32.xlu0 %v5056_v49  ;;  %v3800_v27 = vpop.xlane.xlu1 %3799 }
 0xb2a   :  { %v3802_v16 = vpop.xlane.xlu0 %3801  ;;  %v3818_v63 = vmul.f32 0.6931472, %v5058_v37  ;;  %5073 = vlog2.f32 %v3800_v27 }
 0xb2b   :  { %v5060_v5 = vpop.eup %5059  ;;  %5075 = vlog2.f32 %v3802_v16 }
 0xb2c   :  { %v5062_v10 = vpop.eup %5061  ;;  %v3849_v48 = vadd.f32 %v3818_v63, %v6248_v59  ;;  %3815 = vadd.xlane.f32.xlu1 %v5060_v5 }
 0xb2d   :  { %v5064_v8 = vpop.eup %5063  ;;  %v3820_v3 = vmul.f32 0.6931472, %v5062_v10  ;;  %v3804_v19 = vpop.xlane.xlu1 %3803 }
 0xb2e   :  { %v3806_v32 = vpop.xlane.xlu0 %3805  ;;  %v3865_v24 = vsub.f32 %v6197_v54, %v3849_v48  ;;  %v3822_v4 = vmul.f32 0.6931472, %v5064_v8  ;;  %5077 = vlog2.f32 %v3804_v19 }
 0xb2f   :  { %v5066_v52 = vpop.eup %5065  ;;  %v3850_v45 = vadd.f32 %v3820_v3, %v6252_v14  ;;  %5079 = vlog2.f32 %v3806_v32 }
 0xb30   :  { %v5068_v61 = vpop.eup %5067  ;;  %3881 = vst [vmem:[#allocation19] sm:$0xff] %v3865_v24  ;;  %v3851_v2 = vadd.f32 %v3822_v4, %v6250_v1  ;;  %v3824_v47 = vmul.f32 0.6931472, %v5066_v52 }
 0xb31   :  { %v3866_v59 = vsub.f32 %v6206_v23, %v3850_v45  ;;  %v3826_v9 = vmul.f32 0.6931472, %v5068_v61  ;;  %v3808_v15 = vpop.xlane.xlu1 %3807 }
 0xb32   :  { %v3867_v0 = vsub.f32 %v6193_v11, %v3851_v2  ;;  %v3852_v33 = vadd.f32 %v3824_v47, %v6254_v56  ;;  %5081 = vlog2.f32 %v3808_v15 }
 0xb33   :  { %v5070_v54 = vpop.eup %5069  ;;  %3882 = vst [vmem:[#allocation19 + $0x8] sm:$0xff] %v3866_v59  ;;  %v3853_v50 = vadd.f32 %v3826_v9, %v6262_v18 }
 0xb34   :  { %v5072_v14 = vpop.eup %5071  ;;  %3883 = vst [vmem:[#allocation19 + $0x10] sm:$0xff] %v3867_v0  ;;  %v3868_v26 = vsub.f32 %v6201_v35, %v3852_v33  ;;  %v3828_v28 = vmul.f32 0.6931472, %v5070_v54 }
 0xb35   :  { %v3869_v1 = vsub.f32 %v6221_v60, %v3853_v50  ;;  %v3830_v41 = vmul.f32 0.6931472, %v5072_v14 }
 0xb36   :  { %3884 = vst [vmem:[#allocation19 + $0x18] sm:$0xff] %v3868_v26  ;;  %v3854_v23 = vadd.f32 %v3828_v28, %v6268_v20 }
 0xb37   :  { %v5074_v51 = vpop.eup %5073  ;;  %3885 = vst [vmem:[#allocation19 + $0x20] sm:$0xff] %v3869_v1  ;;  %v3855_v11 = vadd.f32 %v3830_v41, %v6256_v43 }
 0xb38   :  { %v5076_v56 = vpop.eup %5075  ;;  %v3870_v58 = vsub.f32 %v6226_v55, %v3854_v23  ;;  %v3832_v7 = vmul.f32 0.6931472, %v5074_v51 }
 0xb39   :  { %v3871_v18 = vsub.f32 %v6212_v22, %v3855_v11  ;;  %v3834_v57 = vmul.f32 0.6931472, %v5076_v56 }
 0xb3a   :  { %3886 = vst [vmem:[#allocation19 + $0x28] sm:$0xff] %v3870_v58  ;;  %v3856_v35 = vadd.f32 %v3832_v7, %v6258_v12 }
 0xb3b   :  { %v5078_v29 = vpop.eup %5077  ;;  %3887 = vst [vmem:[#allocation19 + $0x30] sm:$0xff] %v3871_v18  ;;  %v3857_v60 = vadd.f32 %v3834_v57, %v6285_v38 }
 0xb3c   :  { %v5080_v49 = vpop.eup %5079  ;;  %v3872_v20 = vsub.f32 %v6217_v30, %v3856_v35  ;;  %v3836_v37 = vmul.f32 0.6931472, %v5078_v29 }
 0xb3d   :  { %v3873_v43 = vsub.f32 %v6238_v46, %v3857_v60  ;;  %v3838_v27 = vmul.f32 0.6931472, %v5080_v49 }
 0xb3e   :  { %3888 = vst [vmem:[#allocation19 + $0x38] sm:$0xff] %v3872_v20  ;;  %v3858_v55 = vadd.f32 %v3836_v37, %v6298_v25 }
 0xb3f   :  { %v5082_v16 = vpop.eup %5081  ;;  %3889 = vst [vmem:[#allocation19 + $0x40] sm:$0xff] %v3873_v43  ;;  %v3859_v22 = vadd.f32 %v3838_v27, %v6274_v39 }
 0xb40   :  { %v3874_v12 = vsub.f32 %v6242_v34, %v3858_v55  ;;  %v3840_v63 = vmul.f32 0.6931472, %v5082_v16 }
 0xb41   :  { %v3875_v5 = vsub.f32 %v6230_v53, %v3859_v22 }
 0xb42   :  { %3890 = vst [vmem:[#allocation19 + $0x48] sm:$0xff] %v3874_v12  ;;  %v3860_v38 = vadd.f32 %v3840_v63, %v6278_v13 }
 0xb43   :  { %3891 = vst [vmem:[#allocation19 + $0x50] sm:$0xff] %v3875_v5 }
 0xb44   :  { %v3876_v30 = vsub.f32 %v6234_v36, %v3860_v38 }
 0xb46   :  { %3892 = vst [vmem:[#allocation19 + $0x58] sm:$0xff] %v3876_v30 }
 0xb47   :  { %5262 = shalt.err (!%p5259_p2)
}
 0xb48   :  { %s5321_s18 = smov 128   ;;  %s5322_s19 = smov 8  }
 0xb49   :  { %3920 = dma.vmem_to_hbm [thread:$0]  %s3915_s26, 256, %s6385_s13, [#allocation21], %s5321_s18, %s5321_s18, %s5322_s19  }
 0xb4a   :  { %s5323_s13 = smov [#allocation19]  }
 0xb4b   :  { %s3902_s21 = sshll.u32 %s5323_s13, 4  ;;  %s3903_s21 = int_to_ptr.vmem [resolvable:$true] %s3902_s21 }
 0xb4c   :  { %s5271_s0 = scalar_lea.vmem %s3903_s21, 2048  ;;  %p5276_p4 = scmp.lt.s32.totalorder %s3903_s21, %s3903_s21 }
 0xb4d   :  { %p5272_p3 = scmp.ne.s32.totalorder %s3903_s21, %s5271_s0  ;;  %p5277_p5 = scmp.lt.s32.totalorder %s5271_s0, %s5271_s0 }
 0xb4f   :  { %p5278_p6 = por %p5277_p5, %p5276_p4 }
 0xb51   :  { %p5279_p7 = pnand %p5278_p6, %p5272_p3 }
 0xbad   :  { %v3810_v53 = vpop.xlane.xlu0 %3809 }
 0xbae   :  { %5083 = vlog2.f32 %v3810_v53 }
 0xbb1   :  { %v3812_v36 = vpop.xlane.xlu1 %3811 }
 0xbb2   :  { %5085 = vlog2.f32 %v3812_v36  ;;  %v3814_v46 = vpop.xlane.xlu0 %3813 }
 0xbb3   :  { %5087 = vlog2.f32 %v3814_v46 }
 0xbb5   :  { %v3816_v34 = vpop.xlane.xlu1 %3815 }
 0xbb6   :  { %5089 = vlog2.f32 %v3816_v34 }
 0xbbb   :  { %v5084_v39 = vpop.eup %5083 }
 0xbbc   :  { %v3842_v13 = vmul.f32 0.6931472, %v5084_v39 }
 0xbbe   :  { %v3861_v25 = vadd.f32 %v3842_v13, %v6312_v40 }
 0xbbf   :  { %v5086_v10 = vpop.eup %5085 }
 0xbc0   :  { %v5088_v48 = vpop.eup %5087  ;;  %v3877_v8 = vsub.f32 %v6283_v44, %v3861_v25  ;;  %v3844_v3 = vmul.f32 0.6931472, %v5086_v10 }
 0xbc1   :  { %v3846_v19 = vmul.f32 0.6931472, %v5088_v48 }
 0xbc2   :  { %3893 = vst [vmem:[#allocation19 + $0x60] sm:$0xff] %v3877_v8  ;;  %v3862_v32 = vadd.f32 %v3844_v3, %v6316_v31 }
 0xbc3   :  { %v5090_v24 = vpop.eup %5089  ;;  %v3863_v4 = vadd.f32 %v3846_v19, %v6318_v6 }
 0xbc4   :  { %v3878_v52 = vsub.f32 %v6296_v21, %v3862_v32  ;;  %v3848_v45 = vmul.f32 0.6931472, %v5090_v24 }
 0xbc5   :  { %v3879_v61 = vsub.f32 %v6293_v42, %v3863_v4 }
 0xbc6   :  { %3894 = vst [vmem:[#allocation19 + $0x68] sm:$0xff] %v3878_v52  ;;  %v3864_v40 = vadd.f32 %v3848_v45, %v6324_v17 }
 0xbc7   :  { %3895 = vst [vmem:[#allocation19 + $0x70] sm:$0xff] %v3879_v61 }
 0xbc8   :  { %v3880_v44 = vsub.f32 %v6307_v62, %v3864_v40 }
 0xbca   :  { %3896 = vst [vmem:[#allocation19 + $0x78] sm:$0xff] %v3880_v44 }
 0xbcb   :  { %5282 = shalt.err (!%p5279_p7)
}
 0xbcc   :  { %3908 = dma.vmem_to_hbm [thread:$0]  %s3903_s21, 2048, %s6384_s12, [#allocation7], %s5321_s18, %s5321_s18, %s5322_s19  }
 0xbcd   :  { %5301 = dma.done.wait [#allocation7], 2048  }
 0xbce   :  { %5302 = vsyncadd [#allocation7], 4294965248 }
 0xbcf   :  { %5303 = dma.done.wait [#allocation21], 256  }
 0xbd0   :  { %5304 = vsyncadd [#allocation21], 4294967040 }
 0xbd1   :  { %3927 = vsyncpa [#allocation6], 1 }
 0xbd2   :  { %3928 = vsyncpa [#allocation9], 1 }
 0xbd3   :  { %3929 = vsyncpa [#allocation12], 1 }
 0xbd4   :  { %3930 = vsyncpa [#allocation15], 1 }
 0xbd5   :  { %3931 = vsyncpa [#allocation18], 1 }
 0xbd6   :  { %3932 = vsyncpa [#allocation7], 1 }
 0xbd7   :  { %3933 = vsyncpa [#allocation21], 1 }

</bundles_post_ra>
